<compile_context>
chip_gen: v7x
topology: tpu7x:2x2x1
jax: 0.10.0
libtpu: 0.0.40
codegen_flags: <defaults>
</compile_context>

<pallas_src>
import jax
import jax.numpy as jnp
from jax.experimental import pallas as pl
from jax.experimental.pallas import tpu as pltpu

BN_EPS = 1e-5
LRELU_SLOPE = 0.2

MXU_DTYPE = jnp.bfloat16       # matmul-input dtype (f32 accumulation on MXU)
ACT_DTYPE = jnp.bfloat16       # inter-layer activation storage dtype
DEFAULT_BLOCK_ROWS = 512       # lane-axis tile (multiple of 128)
VMEM_LIMIT_BYTES = 32 * 1024 * 1024   # explicit bound; blocks use ~1 MiB (v7x-safe)


def _round_up(x, m):
    return (x + m - 1) // m * m


def _pad2d(a, rows_to, cols_to):
    return jnp.pad(a, ((0, rows_to - a.shape[0]), (0, cols_to - a.shape[1])))


def _grid_geometry(K, rows, block_rows):
    Kp = _round_up(max(K, 8), 8)
    rows_p = _round_up(max(rows, 128), 128)
    br = min(block_rows, rows_p)
    rows_p = _round_up(rows_p, br)
    return Kp, rows_p, br, rows_p // br


# ----------------------------- Pallas kernels ------------------------------

def _make_conv_bn_lrelu_kernel(n_rows_true):
    """grid = (phase, row_block).  Phase 0: accumulate per-channel sum/sumsq.
    Phase 1: recompute the skinny matmul, apply folded BN scale/shift + LeakyReLU."""
    inv_n = 1.0 / float(n_rows_true)

    def kernel(xcol_ref, w_ref, gamma_ref, beta_ref, out_ref,
               sum_sc, ssq_sc, scale_sc, shift_sc):
        p = pl.program_id(0)
        r = pl.program_id(1)
        # (Cout, K) @ (K, block_rows): rows (the big dim) on the MXU lane axis.
        y = jnp.dot(w_ref[...], xcol_ref[...], preferred_element_type=jnp.float32)

        @pl.when(jnp.logical_and(p == 0, r == 0))
        def _init():
            sum_sc[...] = jnp.zeros_like(sum_sc)
            ssq_sc[...] = jnp.zeros_like(ssq_sc)

        @pl.when(p == 0)
        def _accumulate():
            # Zero-padded rows contribute 0 to both sums (no conv bias), so the
            # statistics over the true N*OH*OW rows stay exact.
            sum_sc[...] += jnp.sum(y, axis=1, keepdims=True)
            ssq_sc[...] += jnp.sum(y * y, axis=1, keepdims=True)

        @pl.when(jnp.logical_and(p == 1, r == 0))
        def _finalize_stats():
            mean = sum_sc[...] * inv_n
            var = ssq_sc[...] * inv_n - mean * mean   # biased var = torch train mode
            scale = gamma_ref[...] * jax.lax.rsqrt(var + BN_EPS)
            scale_sc[...] = scale
            shift_sc[...] = beta_ref[...] - mean * scale

        @pl.when(p == 1)
        def _normalize():
            z = y * scale_sc[...] + shift_sc[...]
            out_ref[...] = jnp.where(z > 0, z, LRELU_SLOPE * z).astype(out_ref.dtype)

    return kernel


def _make_c4_heads_kernel(n_rows_true):
    """c4 conv + BN + LeakyReLU with the mean/log_var 1x1-conv heads fused into
    the phase-1 epilogue; h4 never leaves VMEM."""
    inv_n = 1.0 / float(n_rows_true)

    def kernel(xcol_ref, w_ref, gamma_ref, beta_ref, hw_ref, hb_ref, out_ref,
               sum_sc, ssq_sc, scale_sc, shift_sc):
        p = pl.program_id(0)
        r = pl.program_id(1)
        y = jnp.dot(w_ref[...], xcol_ref[...], preferred_element_type=jnp.float32)

        @pl.when(jnp.logical_and(p == 0, r == 0))
        def _init():
            sum_sc[...] = jnp.zeros_like(sum_sc)
            ssq_sc[...] = jnp.zeros_like(ssq_sc)

        @pl.when(p == 0)
        def _accumulate():
            sum_sc[...] += jnp.sum(y, axis=1, keepdims=True)
            ssq_sc[...] += jnp.sum(y * y, axis=1, keepdims=True)

        @pl.when(jnp.logical_and(p == 1, r == 0))
        def _finalize_stats():
            mean = sum_sc[...] * inv_n
            var = ssq_sc[...] * inv_n - mean * mean
            scale = gamma_ref[...] * jax.lax.rsqrt(var + BN_EPS)
            scale_sc[...] = scale
            shift_sc[...] = beta_ref[...] - mean * scale

        @pl.when(p == 1)
        def _normalize_and_project():
            z = y * scale_sc[...] + shift_sc[...]
            h4 = jnp.where(z > 0, z, LRELU_SLOPE * z)          # (inter, blk) f32
            out_ref[...] = (jnp.dot(hw_ref[...], h4,
                                    preferred_element_type=jnp.float32)
                            + hb_ref[...]).astype(out_ref.dtype)

    return kernel


# ----------------------------- kernel wrappers ------------------------------

def fused_conv_bn_lrelu(xcol, w2d, gamma, beta, *, n_rows_true,
                        block_rows=DEFAULT_BLOCK_ROWS, out_dtype=ACT_DTYPE):
    K, rows = xcol.shape
    cout = w2d.shape[0]
    Kp, rows_p, br, n_blocks = _grid_geometry(K, rows, block_rows)

    xcol_p = _pad2d(xcol, Kp, rows_p).astype(MXU_DTYPE)
    w_p = _pad2d(w2d, cout, Kp).astype(MXU_DTYPE)
    gamma2 = gamma.reshape(cout, 1).astype(jnp.float32)
    beta2 = beta.reshape(cout, 1).astype(jnp.float32)

    out = pl.pallas_call(
        _make_conv_bn_lrelu_kernel(n_rows_true),
        out_shape=jax.ShapeDtypeStruct((cout, rows_p), out_dtype),
        grid_spec=pltpu.PrefetchScalarGridSpec(
            num_scalar_prefetch=0,
            grid=(2, n_blocks),                       # (phase, row block)
            in_specs=[
                pl.BlockSpec((Kp, br), lambda p, r: (0, r)),
                pl.BlockSpec((cout, Kp), lambda p, r: (0, 0)),
                pl.BlockSpec((cout, 1), lambda p, r: (0, 0)),
                pl.BlockSpec((cout, 1), lambda p, r: (0, 0)),
            ],
            out_specs=pl.BlockSpec((cout, br), lambda p, r: (0, r)),
            scratch_shapes=[pltpu.VMEM((cout, 1), jnp.float32)] * 4,
        ),
        compiler_params=pltpu.CompilerParams(
            dimension_semantics=("arbitrary", "arbitrary"),   # stats carry across both axes
            vmem_limit_bytes=VMEM_LIMIT_BYTES,
        ),
    )(xcol_p, w_p, gamma2, beta2)
    return out[:, :rows]                               # strip lane padding


def fused_c4_heads(x4col, w4, gamma, beta, head_w, head_b, *, n_rows_true,
                   block_rows=DEFAULT_BLOCK_ROWS):
    K, rows = x4col.shape
    inter = w4.shape[0]
    dz2 = head_w.shape[0]
    Kp, rows_p, br, n_blocks = _grid_geometry(K, rows, block_rows)

    x_p = _pad2d(x4col, Kp, rows_p).astype(MXU_DTYPE)
    w_p = _pad2d(w4, inter, Kp).astype(MXU_DTYPE)
    gamma2 = gamma.reshape(inter, 1).astype(jnp.float32)
    beta2 = beta.reshape(inter, 1).astype(jnp.float32)
    head_w = head_w.astype(jnp.float32)                # tiny head matmul stays f32
    head_b = head_b.reshape(dz2, 1).astype(jnp.float32)

    out = pl.pallas_call(
        _make_c4_heads_kernel(n_rows_true),
        out_shape=jax.ShapeDtypeStruct((dz2, rows_p), jnp.float32),
        grid_spec=pltpu.PrefetchScalarGridSpec(
            num_scalar_prefetch=0,
            grid=(2, n_blocks),
            in_specs=[
                pl.BlockSpec((Kp, br), lambda p, r: (0, r)),
                pl.BlockSpec((inter, Kp), lambda p, r: (0, 0)),
                pl.BlockSpec((inter, 1), lambda p, r: (0, 0)),
                pl.BlockSpec((inter, 1), lambda p, r: (0, 0)),
                pl.BlockSpec((dz2, inter), lambda p, r: (0, 0)),
                pl.BlockSpec((dz2, 1), lambda p, r: (0, 0)),
            ],
            out_specs=pl.BlockSpec((dz2, br), lambda p, r: (0, r)),
            scratch_shapes=[pltpu.VMEM((inter, 1), jnp.float32)] * 4,
        ),
        compiler_params=pltpu.CompilerParams(
            dimension_semantics=("arbitrary", "arbitrary"),
            vmem_limit_bytes=VMEM_LIMIT_BYTES,
        ),
    )(x_p, w_p, gamma2, beta2, head_w, head_b)
    return out[:, :rows]


# ------------------------------- JAX glue -----------------------------------

def _im2col_cnhw(x, k, stride, pad):
    """x: (C, N, H, W) -> (C*k*k, N*OH*OW); row order (c, ki, kj) matches
    torch weight.reshape(Cout, Cin*k*k).  Channel-leading layout keeps this a
    pad + strided-slice + stack with no big transposes."""
    C, N, H, W = x.shape
    if pad:
        x = jnp.pad(x, ((0, 0), (0, 0), (pad, pad), (pad, pad)))
    OH = (H + 2 * pad - k) // stride + 1
    OW = (W + 2 * pad - k) // stride + 1
    patches = [x[:, :, i:i + stride * OH:stride, j:j + stride * OW:stride]
               for i in range(k) for j in range(k)]
    col = jnp.stack(patches, axis=1)                   # (C, k*k, N, OH, OW)
    return col.reshape(C * k * k, N * OH * OW), OH, OW
    # TODO(synk): for c2/c3 the k*k patch extraction could be folded into the
    # kernel (halo BlockSpecs / in-kernel strided loads) to remove the k^2
    # im2col HBM inflation entirely.


def conv_bn_lrelu_layer(x_cnhw, p, k, stride, pad):
    """Conv2d (bias cancelled by train-mode BN) + BatchNorm2d + LeakyReLU(0.2)."""
    C, N, H, W = x_cnhw.shape
    cout = p["w"].shape[0]
    xcol, OH, OW = _im2col_cnhw(x_cnhw, k, stride, pad)
    w2d = p["w"].reshape(cout, C * k * k)
    out = fused_conv_bn_lrelu(xcol, w2d, p["gamma"], p["beta"],
                              n_rows_true=N * OH * OW)
    return out.reshape(cout, N, OH, OW)                # stay channel-leading


def encoder_forward(params, x):
    """Mirrors Encoder.forward(x, return_mean_and_log_var=True); x is NCHW."""
    N = x.shape[0]
    dim_z = params["mean"]["w"].shape[0]
    # Single layout change at the public interface: NCHW -> (C, N, H, W).
    xc = jnp.transpose(x, (1, 0, 2, 3)).astype(MXU_DTYPE)

    h1 = conv_bn_lrelu_layer(xc, params["c1"], k=3, stride=1, pad=1)   # (nf,  N, 28, 28)
    h2 = conv_bn_lrelu_layer(h1, params["c2"], k=4, stride=2, pad=1)   # (2nf, N, 14, 14)
    h3 = conv_bn_lrelu_layer(h2, params["c3"], k=4, stride=2, pad=1)   # (4nf, N, 7, 7)

    # c4: 7x7 valid conv on a 7x7 map == full-patch matmul; its "im2col" is a
    # tiny transpose/reshape, and the mean/log_var heads run in the same kernel.
    C3 = h3.shape[0]
    x4col = jnp.transpose(h3, (0, 2, 3, 1)).reshape(C3 * 49, N)
    w4 = params["c4"]["w"].reshape(params["c4"]["w"].shape[0], C3 * 49)
    wm = params["mean"]["w"].reshape(dim_z, -1)
    wl = params["logvar"]["w"].reshape(dim_z, -1)
    head_w = jnp.concatenate([wm, wl], axis=0)                         # (2*dim_z, inter)
    head_b = jnp.concatenate([params["mean"]["b"], params["logvar"]["b"]])

    out = fused_c4_heads(x4col, w4, params["c4"]["gamma"], params["c4"]["beta"],
                         head_w, head_b, n_rows_true=N)                # (2*dim_z, N)
    out = out.T                                                        # (N, 2*dim_z)
    return out[:, :dim_z], out[:, dim_z:]
    # TODO(synk): reparameterize() (torch .normal_() noise path) is not on the
    # default forward path and is not implemented here.
    # TODO(synk): BatchNorm running_mean/running_var buffers are not tracked
    # (train-mode batch statistics only, matching the torch forward).
    # TODO(synk): on v7x the row grid could additionally be sharded across the
    # two TensorCores with a CMEM/core_barrier combine of the BN partial sums.


def init_params(key, nc=1, nf=8, intermediate_nodes=32, dim_z=8):
    ks = jax.random.split(key, 16)

    def conv_block(kw, kb, kg, kbt, cout, cin, kk):
        fan_in = cin * kk * kk
        return {
            "w": jax.random.normal(kw, (cout, cin, kk, kk), jnp.float32) / jnp.sqrt(fan_in),
            # Conv bias kept for interface parity; it is mathematically
            # cancelled by the train-mode BN mean subtraction, so the fused
            # kernels never load it (dead compute removed per review).
            "b": 0.1 * jax.random.normal(kb, (cout,), jnp.float32),
            "gamma": 1.0 + 0.1 * jax.random.normal(kg, (cout,), jnp.float32),
            "beta": 0.1 * jax.random.normal(kbt, (cout,), jnp.float32),
        }

    params = {
        "c1": conv_block(ks[0], ks[1], ks[2], ks[3], nf, nc, 3),
        "c2": conv_block(ks[4], ks[5], ks[6], ks[7], 2 * nf, nf, 4),
        "c3": conv_block(ks[8], ks[9], ks[10], ks[11], 4 * nf, 2 * nf, 4),
        "c4": conv_block(ks[12], ks[13], ks[14], ks[15], intermediate_nodes, 4 * nf, 7),
    }
    kz = jax.random.split(jax.random.fold_in(key, 123), 4)
    params["mean"] = {
        "w": jax.random.normal(kz[0], (dim_z, intermediate_nodes, 1, 1), jnp.float32)
        / jnp.sqrt(intermediate_nodes),
        "b": 0.1 * jax.random.normal(kz[1], (dim_z,), jnp.float32),
    }
    params["logvar"] = {
        "w": jax.random.normal(kz[2], (dim_z, intermediate_nodes, 1, 1), jnp.float32)
        / jnp.sqrt(intermediate_nodes),
        "b": 0.1 * jax.random.normal(kz[3], (dim_z,), jnp.float32),
    }
    return params


if __name__ == "__main__":
    key = jax.random.PRNGKey(0)
    # Small config consistent with the module: input spatial fixed at 28x28 by
    # the architecture (c4 kernel = 28 // 4 = 7); small nf / dim_z.
    N, nc, nf, inter, dim_z = 2, 1, 8, 32, 8
    kx, kp = jax.random.split(key)
    x = jax.random.normal(kx, (N, nc, 28, 28), jnp.float32)
    params = init_params(kp, nc=nc, nf=nf, intermediate_nodes=inter, dim_z=dim_z)

    fwd = jax.jit(encoder_forward)
    mean, log_var = fwd(params, x)
    jax.block_until_ready((mean, log_var))
    assert mean.shape == (N, dim_z) and log_var.shape == (N, dim_z)
    assert bool(jnp.isfinite(mean).all()) and bool(jnp.isfinite(log_var).all())
    print("KERNEL_OK")
</pallas_src>

<mosaic_0001>
module attributes {stable_mosaic.version = 11 : i64} {
  func.func @kernel(%arg0: i32, %arg1: i32, %arg2: memref<16x512xbf16, #tpu.memory_space<vmem>>, %arg3: memref<8x16xbf16, #tpu.memory_space<vmem>>, %arg4: memref<8x1xf32, #tpu.memory_space<vmem>>, %arg5: memref<8x1xf32, #tpu.memory_space<vmem>>, %arg6: memref<8x512xbf16, #tpu.memory_space<vmem>>, %arg7: memref<8x1xf32, #tpu.memory_space<vmem>>, %arg8: memref<8x1xf32, #tpu.memory_space<vmem>>, %arg9: memref<8x1xf32, #tpu.memory_space<vmem>>, %arg10: memref<8x1xf32, #tpu.memory_space<vmem>>) attributes {dimension_semantics = [#tpu.dimension_semantics<arbitrary>, #tpu.dimension_semantics<arbitrary>], iteration_bounds = array<i64: 2, 4>, scalar_prefetch = 0 : i64, scratch_operands = 4 : i64, tpu.core_type = #tpu.core_type<tc>, window_params = [{transform_indices = @transform_0, window_bounds = array<i64: 16, 512>}, {pipeline_mode = #tpu.pipeline_mode<synchronous>, transform_indices = @transform_1, window_bounds = array<i64: 8, 16>}, {pipeline_mode = #tpu.pipeline_mode<synchronous>, transform_indices = @transform_2, window_bounds = array<i64: 8, 1>}, {pipeline_mode = #tpu.pipeline_mode<synchronous>, transform_indices = @transform_3, window_bounds = array<i64: 8, 1>}, {transform_indices = @transform_4, window_bounds = array<i64: 8, 512>}]} {
    %c0 = arith.constant 0 : index
    %c0_0 = arith.constant 0 : index
    %0 = vector.load %arg3[%c0, %c0_0] : memref<8x16xbf16, #tpu.memory_space<vmem>>, vector<8x16xbf16>
    %c0_1 = arith.constant 0 : index
    %c0_2 = arith.constant 0 : index
    %1 = vector.load %arg2[%c0_1, %c0_2] : memref<16x512xbf16, #tpu.memory_space<vmem>>, vector<16x512xbf16>
    %cst = arith.constant dense<0.000000e+00> : vector<8x512xf32>
    %2 = tpu.matmul %0, %1, %cst {dimension_numbers = #tpu.dot_dimension_numbers<[1], [0], [0], [1], [0, 0, 1, 1], [], []>} : vector<8x16xbf16>, vector<16x512xbf16>, vector<8x512xf32> -> vector<8x512xf32>
    %c0_i32 = arith.constant 0 : i32
    %3 = arith.cmpi eq, %arg0, %c0_i32 : i32
    %c0_i32_3 = arith.constant 0 : i32
    %4 = arith.cmpi eq, %arg1, %c0_i32_3 : i32
    %5 = arith.andi %3, %4 : i1
    %6 = arith.extui %5 : i1 to i32
    %c0_i32_4 = arith.constant 0 : i32
    %7 = arith.cmpi ne, %6, %c0_i32_4 : i32
    scf.if %7 {
      %cst_11 = arith.constant 0.000000e+00 : f32
      %19 = vector.broadcast %cst_11 : f32 to vector<8x1xf32>
      %c0_12 = arith.constant 0 : index
      %c0_13 = arith.constant 0 : index
      %20 = vector.load %arg7[%c0_12, %c0_13] : memref<8x1xf32, #tpu.memory_space<vmem>>, vector<8x1xf32>
      tpu.vector_store %arg7[%c0_12, %c0_13], %19 {strides = array<i32>} : memref<8x1xf32, #tpu.memory_space<vmem>>, vector<8x1xf32>,
      %cst_14 = arith.constant 0.000000e+00 : f32
      %21 = vector.broadcast %cst_14 : f32 to vector<8x1xf32>
      %c0_15 = arith.constant 0 : index
      %c0_16 = arith.constant 0 : index
      %22 = vector.load %arg8[%c0_15, %c0_16] : memref<8x1xf32, #tpu.memory_space<vmem>>, vector<8x1xf32>
      tpu.vector_store %arg8[%c0_15, %c0_16], %21 {strides = array<i32>} : memref<8x1xf32, #tpu.memory_space<vmem>>, vector<8x1xf32>,
    } else {
    }
    %c0_i32_5 = arith.constant 0 : i32
    %8 = arith.cmpi eq, %arg0, %c0_i32_5 : i32
    %9 = arith.extui %8 : i1 to i32
    %c0_i32_6 = arith.constant 0 : i32
    %10 = arith.cmpi ne, %9, %c0_i32_6 : i32
    scf.if %10 {
      %c0_11 = arith.constant 0 : index
      %c0_12 = arith.constant 0 : index
      %19 = vector.load %arg7[%c0_11, %c0_12] : memref<8x1xf32, #tpu.memory_space<vmem>>, vector<8x1xf32>
      %cst_13 = arith.constant dense<0.000000e+00> : vector<8xf32>
      %20 = vector.multi_reduction <add>, %2, %cst_13 [1] : vector<8x512xf32> to vector<8xf32>
      %21 = vector.shape_cast %20 : vector<8xf32> to vector<8x1xf32>
      %22 = arith.addf %19, %21 : vector<8x1xf32>
      %c0_14 = arith.constant 0 : index
      %c0_15 = arith.constant 0 : index
      %23 = vector.load %arg7[%c0_14, %c0_15] : memref<8x1xf32, #tpu.memory_space<vmem>>, vector<8x1xf32>
      tpu.vector_store %arg7[%c0_14, %c0_15], %22 {strides = array<i32>} : memref<8x1xf32, #tpu.memory_space<vmem>>, vector<8x1xf32>,
      %c0_16 = arith.constant 0 : index
      %c0_17 = arith.constant 0 : index
      %24 = vector.load %arg8[%c0_16, %c0_17] : memref<8x1xf32, #tpu.memory_space<vmem>>, vector<8x1xf32>
      %25 = arith.mulf %2, %2 : vector<8x512xf32>
      %cst_18 = arith.constant dense<0.000000e+00> : vector<8xf32>
      %26 = vector.multi_reduction <add>, %25, %cst_18 [1] : vector<8x512xf32> to vector<8xf32>
      %27 = vector.shape_cast %26 : vector<8xf32> to vector<8x1xf32>
      %28 = arith.addf %24, %27 : vector<8x1xf32>
      %c0_19 = arith.constant 0 : index
      %c0_20 = arith.constant 0 : index
      %29 = vector.load %arg8[%c0_19, %c0_20] : memref<8x1xf32, #tpu.memory_space<vmem>>, vector<8x1xf32>
      tpu.vector_store %arg8[%c0_19, %c0_20], %28 {strides = array<i32>} : memref<8x1xf32, #tpu.memory_space<vmem>>, vector<8x1xf32>,
    } else {
    }
    %c1_i32 = arith.constant 1 : i32
    %11 = arith.cmpi eq, %arg0, %c1_i32 : i32
    %c0_i32_7 = arith.constant 0 : i32
    %12 = arith.cmpi eq, %arg1, %c0_i32_7 : i32
    %13 = arith.andi %11, %12 : i1
    %14 = arith.extui %13 : i1 to i32
    %c0_i32_8 = arith.constant 0 : i32
    %15 = arith.cmpi ne, %14, %c0_i32_8 : i32
    scf.if %15 {
      %c0_11 = arith.constant 0 : index
      %c0_12 = arith.constant 0 : index
      %19 = vector.load %arg7[%c0_11, %c0_12] : memref<8x1xf32, #tpu.memory_space<vmem>>, vector<8x1xf32>
      %cst_13 = arith.constant 6.37755089E-4 : f32
      %20 = vector.broadcast %cst_13 : f32 to vector<8x1xf32>
      %21 = arith.mulf %19, %20 : vector<8x1xf32>
      %c0_14 = arith.constant 0 : index
      %c0_15 = arith.constant 0 : index
      %22 = vector.load %arg8[%c0_14, %c0_15] : memref<8x1xf32, #tpu.memory_space<vmem>>, vector<8x1xf32>
      %cst_16 = arith.constant 6.37755089E-4 : f32
      %23 = vector.broadcast %cst_16 : f32 to vector<8x1xf32>
      %24 = arith.mulf %22, %23 : vector<8x1xf32>
      %25 = arith.mulf %21, %21 : vector<8x1xf32>
      %26 = arith.subf %24, %25 : vector<8x1xf32>
      %c0_17 = arith.constant 0 : index
      %c0_18 = arith.constant 0 : index
      %27 = vector.load %arg4[%c0_17, %c0_18] : memref<8x1xf32, #tpu.memory_space<vmem>>, vector<8x1xf32>
      %cst_19 = arith.constant 9.99999974E-6 : f32
      %28 = vector.broadcast %cst_19 : f32 to vector<8x1xf32>
      %29 = arith.addf %26, %28 : vector<8x1xf32>
      %30 = math.rsqrt %29 : vector<8x1xf32>
      %31 = arith.mulf %27, %30 : vector<8x1xf32>
      %c0_20 = arith.constant 0 : index
      %c0_21 = arith.constant 0 : index
      %32 = vector.load %arg9[%c0_20, %c0_21] : memref<8x1xf32, #tpu.memory_space<vmem>>, vector<8x1xf32>
      tpu.vector_store %arg9[%c0_20, %c0_21], %31 {strides = array<i32>} : memref<8x1xf32, #tpu.memory_space<vmem>>, vector<8x1xf32>,
      %c0_22 = arith.constant 0 : index
      %c0_23 = arith.constant 0 : index
      %33 = vector.load %arg5[%c0_22, %c0_23] : memref<8x1xf32, #tpu.memory_space<vmem>>, vector<8x1xf32>
      %34 = arith.mulf %21, %31 : vector<8x1xf32>
      %35 = arith.subf %33, %34 : vector<8x1xf32>
      %c0_24 = arith.constant 0 : index
      %c0_25 = arith.constant 0 : index
      %36 = vector.load %arg10[%c0_24, %c0_25] : memref<8x1xf32, #tpu.memory_space<vmem>>, vector<8x1xf32>
      tpu.vector_store %arg10[%c0_24, %c0_25], %35 {strides = array<i32>} : memref<8x1xf32, #tpu.memory_space<vmem>>, vector<8x1xf32>,
    } else {
    }
    %c1_i32_9 = arith.constant 1 : i32
    %16 = arith.cmpi eq, %arg0, %c1_i32_9 : i32
    %17 = arith.extui %16 : i1 to i32
    %c0_i32_10 = arith.constant 0 : i32
    %18 = arith.cmpi ne, %17, %c0_i32_10 : i32
    scf.if %18 {
      %c0_11 = arith.constant 0 : index
      %c0_12 = arith.constant 0 : index
      %19 = vector.load %arg9[%c0_11, %c0_12] : memref<8x1xf32, #tpu.memory_space<vmem>>, vector<8x1xf32>
      %20 = vector.broadcast %19 : vector<8x1xf32> to vector<8x512xf32>
      %21 = arith.mulf %2, %20 : vector<8x512xf32>
      %c0_13 = arith.constant 0 : index
      %c0_14 = arith.constant 0 : index
      %22 = vector.load %arg10[%c0_13, %c0_14] : memref<8x1xf32, #tpu.memory_space<vmem>>, vector<8x1xf32>
      %23 = vector.broadcast %22 : vector<8x1xf32> to vector<8x512xf32>
      %24 = arith.addf %21, %23 : vector<8x512xf32>
      %cst_15 = arith.constant 0.000000e+00 : f32
      %25 = vector.broadcast %cst_15 : f32 to vector<8x512xf32>
      %26 = arith.cmpf ogt, %24, %25 : vector<8x512xf32>
      %cst_16 = arith.constant 2.000000e-01 : f32
      %27 = vector.broadcast %cst_16 : f32 to vector<8x512xf32>
      %28 = arith.mulf %27, %24 : vector<8x512xf32>
      %29 = arith.select %26, %24, %28 : vector<8x512xi1>, vector<8x512xf32>
      %30 = arith.truncf %29 : vector<8x512xf32> to vector<8x512xbf16>
      %c0_17 = arith.constant 0 : index
      %c0_18 = arith.constant 0 : index
      %31 = vector.load %arg6[%c0_17, %c0_18] : memref<8x512xbf16, #tpu.memory_space<vmem>>, vector<8x512xbf16>
      tpu.vector_store %arg6[%c0_17, %c0_18], %30 {strides = array<i32>} : memref<8x512xbf16, #tpu.memory_space<vmem>>, vector<8x512xbf16>,
    } else {
    }
    return
  }
  func.func @transform_0(%arg0: i32, %arg1: i32) -> (i32, i32) {
    %c0_i32 = arith.constant 0 : i32
    %c0_i32_0 = arith.constant 0 : i32
    return %c0_i32, %arg1 : i32, i32
  }
  func.func @transform_1(%arg0: i32, %arg1: i32) -> (i32, i32) {
    %c0_i32 = arith.constant 0 : i32
    %c0_i32_0 = arith.constant 0 : i32
    %c0_i32_1 = arith.constant 0 : i32
    return %c0_i32, %c0_i32_0 : i32, i32
  }
  func.func @transform_2(%arg0: i32, %arg1: i32) -> (i32, i32) {
    %c0_i32 = arith.constant 0 : i32
    %c0_i32_0 = arith.constant 0 : i32
    %c0_i32_1 = arith.constant 0 : i32
    return %c0_i32, %c0_i32_0 : i32, i32
  }
  func.func @transform_3(%arg0: i32, %arg1: i32) -> (i32, i32) {
    %c0_i32 = arith.constant 0 : i32
    %c0_i32_0 = arith.constant 0 : i32
    %c0_i32_1 = arith.constant 0 : i32
    return %c0_i32, %c0_i32_0 : i32, i32
  }
  func.func @transform_4(%arg0: i32, %arg1: i32) -> (i32, i32) {
    %c0_i32 = arith.constant 0 : i32
    %c0_i32_0 = arith.constant 0 : i32
    return %c0_i32, %arg1 : i32, i32
  }
}

module attributes {stable_mosaic.version = 11 : i64} {
  func.func @kernel(%arg0: i32, %arg1: i32, %arg2: memref<128x512xbf16, #tpu.memory_space<vmem>>, %arg3: memref<16x128xbf16, #tpu.memory_space<vmem>>, %arg4: memref<16x1xf32, #tpu.memory_space<vmem>>, %arg5: memref<16x1xf32, #tpu.memory_space<vmem>>, %arg6: memref<16x512xbf16, #tpu.memory_space<vmem>>, %arg7: memref<16x1xf32, #tpu.memory_space<vmem>>, %arg8: memref<16x1xf32, #tpu.memory_space<vmem>>, %arg9: memref<16x1xf32, #tpu.memory_space<vmem>>, %arg10: memref<16x1xf32, #tpu.memory_space<vmem>>) attributes {dimension_semantics = [#tpu.dimension_semantics<arbitrary>, #tpu.dimension_semantics<arbitrary>], iteration_bounds = array<i64: 2, 1>, scalar_prefetch = 0 : i64, scratch_operands = 4 : i64, tpu.core_type = #tpu.core_type<tc>, window_params = [{transform_indices = @transform_0, window_bounds = array<i64: 128, 512>}, {pipeline_mode = #tpu.pipeline_mode<synchronous>, transform_indices = @transform_1, window_bounds = array<i64: 16, 128>}, {pipeline_mode = #tpu.pipeline_mode<synchronous>, transform_indices = @transform_2, window_bounds = array<i64: 16, 1>}, {pipeline_mode = #tpu.pipeline_mode<synchronous>, transform_indices = @transform_3, window_bounds = array<i64: 16, 1>}, {transform_indices = @transform_4, window_bounds = array<i64: 16, 512>}]} {
    %c0 = arith.constant 0 : index
    %c0_0 = arith.constant 0 : index
    %0 = vector.load %arg3[%c0, %c0_0] : memref<16x128xbf16, #tpu.memory_space<vmem>>, vector<16x128xbf16>
    %c0_1 = arith.constant 0 : index
    %c0_2 = arith.constant 0 : index
    %1 = vector.load %arg2[%c0_1, %c0_2] : memref<128x512xbf16, #tpu.memory_space<vmem>>, vector<128x512xbf16>
    %cst = arith.constant dense<0.000000e+00> : vector<16x512xf32>
    %2 = tpu.matmul %0, %1, %cst {dimension_numbers = #tpu.dot_dimension_numbers<[1], [0], [0], [1], [0, 0, 1, 1], [], []>} : vector<16x128xbf16>, vector<128x512xbf16>, vector<16x512xf32> -> vector<16x512xf32>
    %c0_i32 = arith.constant 0 : i32
    %3 = arith.cmpi eq, %arg0, %c0_i32 : i32
    %c0_i32_3 = arith.constant 0 : i32
    %4 = arith.cmpi eq, %arg1, %c0_i32_3 : i32
    %5 = arith.andi %3, %4 : i1
    %6 = arith.extui %5 : i1 to i32
    %c0_i32_4 = arith.constant 0 : i32
    %7 = arith.cmpi ne, %6, %c0_i32_4 : i32
    scf.if %7 {
      %cst_11 = arith.constant 0.000000e+00 : f32
      %19 = vector.broadcast %cst_11 : f32 to vector<16x1xf32>
      %c0_12 = arith.constant 0 : index
      %c0_13 = arith.constant 0 : index
      %20 = vector.load %arg7[%c0_12, %c0_13] : memref<16x1xf32, #tpu.memory_space<vmem>>, vector<16x1xf32>
      tpu.vector_store %arg7[%c0_12, %c0_13], %19 {strides = array<i32>} : memref<16x1xf32, #tpu.memory_space<vmem>>, vector<16x1xf32>,
      %cst_14 = arith.constant 0.000000e+00 : f32
      %21 = vector.broadcast %cst_14 : f32 to vector<16x1xf32>
      %c0_15 = arith.constant 0 : index
      %c0_16 = arith.constant 0 : index
      %22 = vector.load %arg8[%c0_15, %c0_16] : memref<16x1xf32, #tpu.memory_space<vmem>>, vector<16x1xf32>
      tpu.vector_store %arg8[%c0_15, %c0_16], %21 {strides = array<i32>} : memref<16x1xf32, #tpu.memory_space<vmem>>, vector<16x1xf32>,
    } else {
    }
    %c0_i32_5 = arith.constant 0 : i32
    %8 = arith.cmpi eq, %arg0, %c0_i32_5 : i32
    %9 = arith.extui %8 : i1 to i32
    %c0_i32_6 = arith.constant 0 : i32
    %10 = arith.cmpi ne, %9, %c0_i32_6 : i32
    scf.if %10 {
      %c0_11 = arith.constant 0 : index
      %c0_12 = arith.constant 0 : index
      %19 = vector.load %arg7[%c0_11, %c0_12] : memref<16x1xf32, #tpu.memory_space<vmem>>, vector<16x1xf32>
      %cst_13 = arith.constant dense<0.000000e+00> : vector<16xf32>
      %20 = vector.multi_reduction <add>, %2, %cst_13 [1] : vector<16x512xf32> to vector<16xf32>
      %21 = vector.shape_cast %20 : vector<16xf32> to vector<16x1xf32>
      %22 = arith.addf %19, %21 : vector<16x1xf32>
      %c0_14 = arith.constant 0 : index
      %c0_15 = arith.constant 0 : index
      %23 = vector.load %arg7[%c0_14, %c0_15] : memref<16x1xf32, #tpu.memory_space<vmem>>, vector<16x1xf32>
      tpu.vector_store %arg7[%c0_14, %c0_15], %22 {strides = array<i32>} : memref<16x1xf32, #tpu.memory_space<vmem>>, vector<16x1xf32>,
      %c0_16 = arith.constant 0 : index
      %c0_17 = arith.constant 0 : index
      %24 = vector.load %arg8[%c0_16, %c0_17] : memref<16x1xf32, #tpu.memory_space<vmem>>, vector<16x1xf32>
      %25 = arith.mulf %2, %2 : vector<16x512xf32>
      %cst_18 = arith.constant dense<0.000000e+00> : vector<16xf32>
      %26 = vector.multi_reduction <add>, %25, %cst_18 [1] : vector<16x512xf32> to vector<16xf32>
      %27 = vector.shape_cast %26 : vector<16xf32> to vector<16x1xf32>
      %28 = arith.addf %24, %27 : vector<16x1xf32>
      %c0_19 = arith.constant 0 : index
      %c0_20 = arith.constant 0 : index
      %29 = vector.load %arg8[%c0_19, %c0_20] : memref<16x1xf32, #tpu.memory_space<vmem>>, vector<16x1xf32>
      tpu.vector_store %arg8[%c0_19, %c0_20], %28 {strides = array<i32>} : memref<16x1xf32, #tpu.memory_space<vmem>>, vector<16x1xf32>,
    } else {
    }
    %c1_i32 = arith.constant 1 : i32
    %11 = arith.cmpi eq, %arg0, %c1_i32 : i32
    %c0_i32_7 = arith.constant 0 : i32
    %12 = arith.cmpi eq, %arg1, %c0_i32_7 : i32
    %13 = arith.andi %11, %12 : i1
    %14 = arith.extui %13 : i1 to i32
    %c0_i32_8 = arith.constant 0 : i32
    %15 = arith.cmpi ne, %14, %c0_i32_8 : i32
    scf.if %15 {
      %c0_11 = arith.constant 0 : index
      %c0_12 = arith.constant 0 : index
      %19 = vector.load %arg7[%c0_11, %c0_12] : memref<16x1xf32, #tpu.memory_space<vmem>>, vector<16x1xf32>
      %cst_13 = arith.constant 0.00255102036 : f32
      %20 = vector.broadcast %cst_13 : f32 to vector<16x1xf32>
      %21 = arith.mulf %19, %20 : vector<16x1xf32>
      %c0_14 = arith.constant 0 : index
      %c0_15 = arith.constant 0 : index
      %22 = vector.load %arg8[%c0_14, %c0_15] : memref<16x1xf32, #tpu.memory_space<vmem>>, vector<16x1xf32>
      %cst_16 = arith.constant 0.00255102036 : f32
      %23 = vector.broadcast %cst_16 : f32 to vector<16x1xf32>
      %24 = arith.mulf %22, %23 : vector<16x1xf32>
      %25 = arith.mulf %21, %21 : vector<16x1xf32>
      %26 = arith.subf %24, %25 : vector<16x1xf32>
      %c0_17 = arith.constant 0 : index
      %c0_18 = arith.constant 0 : index
      %27 = vector.load %arg4[%c0_17, %c0_18] : memref<16x1xf32, #tpu.memory_space<vmem>>, vector<16x1xf32>
      %cst_19 = arith.constant 9.99999974E-6 : f32
      %28 = vector.broadcast %cst_19 : f32 to vector<16x1xf32>
      %29 = arith.addf %26, %28 : vector<16x1xf32>
      %30 = math.rsqrt %29 : vector<16x1xf32>
      %31 = arith.mulf %27, %30 : vector<16x1xf32>
      %c0_20 = arith.constant 0 : index
      %c0_21 = arith.constant 0 : index
      %32 = vector.load %arg9[%c0_20, %c0_21] : memref<16x1xf32, #tpu.memory_space<vmem>>, vector<16x1xf32>
      tpu.vector_store %arg9[%c0_20, %c0_21], %31 {strides = array<i32>} : memref<16x1xf32, #tpu.memory_space<vmem>>, vector<16x1xf32>,
      %c0_22 = arith.constant 0 : index
      %c0_23 = arith.constant 0 : index
      %33 = vector.load %arg5[%c0_22, %c0_23] : memref<16x1xf32, #tpu.memory_space<vmem>>, vector<16x1xf32>
      %34 = arith.mulf %21, %31 : vector<16x1xf32>
      %35 = arith.subf %33, %34 : vector<16x1xf32>
      %c0_24 = arith.constant 0 : index
      %c0_25 = arith.constant 0 : index
      %36 = vector.load %arg10[%c0_24, %c0_25] : memref<16x1xf32, #tpu.memory_space<vmem>>, vector<16x1xf32>
      tpu.vector_store %arg10[%c0_24, %c0_25], %35 {strides = array<i32>} : memref<16x1xf32, #tpu.memory_space<vmem>>, vector<16x1xf32>,
    } else {
    }
    %c1_i32_9 = arith.constant 1 : i32
    %16 = arith.cmpi eq, %arg0, %c1_i32_9 : i32
    %17 = arith.extui %16 : i1 to i32
    %c0_i32_10 = arith.constant 0 : i32
    %18 = arith.cmpi ne, %17, %c0_i32_10 : i32
    scf.if %18 {
      %c0_11 = arith.constant 0 : index
      %c0_12 = arith.constant 0 : index
      %19 = vector.load %arg9[%c0_11, %c0_12] : memref<16x1xf32, #tpu.memory_space<vmem>>, vector<16x1xf32>
      %20 = vector.broadcast %19 : vector<16x1xf32> to vector<16x512xf32>
      %21 = arith.mulf %2, %20 : vector<16x512xf32>
      %c0_13 = arith.constant 0 : index
      %c0_14 = arith.constant 0 : index
      %22 = vector.load %arg10[%c0_13, %c0_14] : memref<16x1xf32, #tpu.memory_space<vmem>>, vector<16x1xf32>
      %23 = vector.broadcast %22 : vector<16x1xf32> to vector<16x512xf32>
      %24 = arith.addf %21, %23 : vector<16x512xf32>
      %cst_15 = arith.constant 0.000000e+00 : f32
      %25 = vector.broadcast %cst_15 : f32 to vector<16x512xf32>
      %26 = arith.cmpf ogt, %24, %25 : vector<16x512xf32>
      %cst_16 = arith.constant 2.000000e-01 : f32
      %27 = vector.broadcast %cst_16 : f32 to vector<16x512xf32>
      %28 = arith.mulf %27, %24 : vector<16x512xf32>
      %29 = arith.select %26, %24, %28 : vector<16x512xi1>, vector<16x512xf32>
      %30 = arith.truncf %29 : vector<16x512xf32> to vector<16x512xbf16>
      %c0_17 = arith.constant 0 : index
      %c0_18 = arith.constant 0 : index
      %31 = vector.load %arg6[%c0_17, %c0_18] : memref<16x512xbf16, #tpu.memory_space<vmem>>, vector<16x512xbf16>
      tpu.vector_store %arg6[%c0_17, %c0_18], %30 {strides = array<i32>} : memref<16x512xbf16, #tpu.memory_space<vmem>>, vector<16x512xbf16>,
    } else {
    }
    return
  }
  func.func @transform_0(%arg0: i32, %arg1: i32) -> (i32, i32) {
    %c0_i32 = arith.constant 0 : i32
    %c0_i32_0 = arith.constant 0 : i32
    return %c0_i32, %arg1 : i32, i32
  }
  func.func @transform_1(%arg0: i32, %arg1: i32) -> (i32, i32) {
    %c0_i32 = arith.constant 0 : i32
    %c0_i32_0 = arith.constant 0 : i32
    %c0_i32_1 = arith.constant 0 : i32
    return %c0_i32, %c0_i32_0 : i32, i32
  }
  func.func @transform_2(%arg0: i32, %arg1: i32) -> (i32, i32) {
    %c0_i32 = arith.constant 0 : i32
    %c0_i32_0 = arith.constant 0 : i32
    %c0_i32_1 = arith.constant 0 : i32
    return %c0_i32, %c0_i32_0 : i32, i32
  }
  func.func @transform_3(%arg0: i32, %arg1: i32) -> (i32, i32) {
    %c0_i32 = arith.constant 0 : i32
    %c0_i32_0 = arith.constant 0 : i32
    %c0_i32_1 = arith.constant 0 : i32
    return %c0_i32, %c0_i32_0 : i32, i32
  }
  func.func @transform_4(%arg0: i32, %arg1: i32) -> (i32, i32) {
    %c0_i32 = arith.constant 0 : i32
    %c0_i32_0 = arith.constant 0 : i32
    return %c0_i32, %arg1 : i32, i32
  }
}

module attributes {stable_mosaic.version = 11 : i64} {
  func.func @kernel(%arg0: i32, %arg1: i32, %arg2: memref<256x128xbf16, #tpu.memory_space<vmem>>, %arg3: memref<32x256xbf16, #tpu.memory_space<vmem>>, %arg4: memref<32x1xf32, #tpu.memory_space<vmem>>, %arg5: memref<32x1xf32, #tpu.memory_space<vmem>>, %arg6: memref<32x128xbf16, #tpu.memory_space<vmem>>, %arg7: memref<32x1xf32, #tpu.memory_space<vmem>>, %arg8: memref<32x1xf32, #tpu.memory_space<vmem>>, %arg9: memref<32x1xf32, #tpu.memory_space<vmem>>, %arg10: memref<32x1xf32, #tpu.memory_space<vmem>>) attributes {dimension_semantics = [#tpu.dimension_semantics<arbitrary>, #tpu.dimension_semantics<arbitrary>], iteration_bounds = array<i64: 2, 1>, scalar_prefetch = 0 : i64, scratch_operands = 4 : i64, tpu.core_type = #tpu.core_type<tc>, window_params = [{transform_indices = @transform_0, window_bounds = array<i64: 256, 128>}, {pipeline_mode = #tpu.pipeline_mode<synchronous>, transform_indices = @transform_1, window_bounds = array<i64: 32, 256>}, {pipeline_mode = #tpu.pipeline_mode<synchronous>, transform_indices = @transform_2, window_bounds = array<i64: 32, 1>}, {pipeline_mode = #tpu.pipeline_mode<synchronous>, transform_indices = @transform_3, window_bounds = array<i64: 32, 1>}, {transform_indices = @transform_4, window_bounds = array<i64: 32, 128>}]} {
    %c0 = arith.constant 0 : index
    %c0_0 = arith.constant 0 : index
    %0 = vector.load %arg3[%c0, %c0_0] : memref<32x256xbf16, #tpu.memory_space<vmem>>, vector<32x256xbf16>
    %c0_1 = arith.constant 0 : index
    %c0_2 = arith.constant 0 : index
    %1 = vector.load %arg2[%c0_1, %c0_2] : memref<256x128xbf16, #tpu.memory_space<vmem>>, vector<256x128xbf16>
    %cst = arith.constant dense<0.000000e+00> : vector<32x128xf32>
    %2 = tpu.matmul %0, %1, %cst {dimension_numbers = #tpu.dot_dimension_numbers<[1], [0], [0], [1], [0, 0, 1, 1], [], []>} : vector<32x256xbf16>, vector<256x128xbf16>, vector<32x128xf32> -> vector<32x128xf32>
    %c0_i32 = arith.constant 0 : i32
    %3 = arith.cmpi eq, %arg0, %c0_i32 : i32
    %c0_i32_3 = arith.constant 0 : i32
    %4 = arith.cmpi eq, %arg1, %c0_i32_3 : i32
    %5 = arith.andi %3, %4 : i1
    %6 = arith.extui %5 : i1 to i32
    %c0_i32_4 = arith.constant 0 : i32
    %7 = arith.cmpi ne, %6, %c0_i32_4 : i32
    scf.if %7 {
      %cst_11 = arith.constant 0.000000e+00 : f32
      %19 = vector.broadcast %cst_11 : f32 to vector<32x1xf32>
      %c0_12 = arith.constant 0 : index
      %c0_13 = arith.constant 0 : index
      %20 = vector.load %arg7[%c0_12, %c0_13] : memref<32x1xf32, #tpu.memory_space<vmem>>, vector<32x1xf32>
      tpu.vector_store %arg7[%c0_12, %c0_13], %19 {strides = array<i32>} : memref<32x1xf32, #tpu.memory_space<vmem>>, vector<32x1xf32>,
      %cst_14 = arith.constant 0.000000e+00 : f32
      %21 = vector.broadcast %cst_14 : f32 to vector<32x1xf32>
      %c0_15 = arith.constant 0 : index
      %c0_16 = arith.constant 0 : index
      %22 = vector.load %arg8[%c0_15, %c0_16] : memref<32x1xf32, #tpu.memory_space<vmem>>, vector<32x1xf32>
      tpu.vector_store %arg8[%c0_15, %c0_16], %21 {strides = array<i32>} : memref<32x1xf32, #tpu.memory_space<vmem>>, vector<32x1xf32>,
    } else {
    }
    %c0_i32_5 = arith.constant 0 : i32
    %8 = arith.cmpi eq, %arg0, %c0_i32_5 : i32
    %9 = arith.extui %8 : i1 to i32
    %c0_i32_6 = arith.constant 0 : i32
    %10 = arith.cmpi ne, %9, %c0_i32_6 : i32
    scf.if %10 {
      %c0_11 = arith.constant 0 : index
      %c0_12 = arith.constant 0 : index
      %19 = vector.load %arg7[%c0_11, %c0_12] : memref<32x1xf32, #tpu.memory_space<vmem>>, vector<32x1xf32>
      %cst_13 = arith.constant dense<0.000000e+00> : vector<32xf32>
      %20 = vector.multi_reduction <add>, %2, %cst_13 [1] : vector<32x128xf32> to vector<32xf32>
      %21 = vector.shape_cast %20 : vector<32xf32> to vector<32x1xf32>
      %22 = arith.addf %19, %21 : vector<32x1xf32>
      %c0_14 = arith.constant 0 : index
      %c0_15 = arith.constant 0 : index
      %23 = vector.load %arg7[%c0_14, %c0_15] : memref<32x1xf32, #tpu.memory_space<vmem>>, vector<32x1xf32>
      tpu.vector_store %arg7[%c0_14, %c0_15], %22 {strides = array<i32>} : memref<32x1xf32, #tpu.memory_space<vmem>>, vector<32x1xf32>,
      %c0_16 = arith.constant 0 : index
      %c0_17 = arith.constant 0 : index
      %24 = vector.load %arg8[%c0_16, %c0_17] : memref<32x1xf32, #tpu.memory_space<vmem>>, vector<32x1xf32>
      %25 = arith.mulf %2, %2 : vector<32x128xf32>
      %cst_18 = arith.constant dense<0.000000e+00> : vector<32xf32>
      %26 = vector.multi_reduction <add>, %25, %cst_18 [1] : vector<32x128xf32> to vector<32xf32>
      %27 = vector.shape_cast %26 : vector<32xf32> to vector<32x1xf32>
      %28 = arith.addf %24, %27 : vector<32x1xf32>
      %c0_19 = arith.constant 0 : index
      %c0_20 = arith.constant 0 : index
      %29 = vector.load %arg8[%c0_19, %c0_20] : memref<32x1xf32, #tpu.memory_space<vmem>>, vector<32x1xf32>
      tpu.vector_store %arg8[%c0_19, %c0_20], %28 {strides = array<i32>} : memref<32x1xf32, #tpu.memory_space<vmem>>, vector<32x1xf32>,
    } else {
    }
    %c1_i32 = arith.constant 1 : i32
    %11 = arith.cmpi eq, %arg0, %c1_i32 : i32
    %c0_i32_7 = arith.constant 0 : i32
    %12 = arith.cmpi eq, %arg1, %c0_i32_7 : i32
    %13 = arith.andi %11, %12 : i1
    %14 = arith.extui %13 : i1 to i32
    %c0_i32_8 = arith.constant 0 : i32
    %15 = arith.cmpi ne, %14, %c0_i32_8 : i32
    scf.if %15 {
      %c0_11 = arith.constant 0 : index
      %c0_12 = arith.constant 0 : index
      %19 = vector.load %arg7[%c0_11, %c0_12] : memref<32x1xf32, #tpu.memory_space<vmem>>, vector<32x1xf32>
      %cst_13 = arith.constant 0.0102040814 : f32
      %20 = vector.broadcast %cst_13 : f32 to vector<32x1xf32>
      %21 = arith.mulf %19, %20 : vector<32x1xf32>
      %c0_14 = arith.constant 0 : index
      %c0_15 = arith.constant 0 : index
      %22 = vector.load %arg8[%c0_14, %c0_15] : memref<32x1xf32, #tpu.memory_space<vmem>>, vector<32x1xf32>
      %cst_16 = arith.constant 0.0102040814 : f32
      %23 = vector.broadcast %cst_16 : f32 to vector<32x1xf32>
      %24 = arith.mulf %22, %23 : vector<32x1xf32>
      %25 = arith.mulf %21, %21 : vector<32x1xf32>
      %26 = arith.subf %24, %25 : vector<32x1xf32>
      %c0_17 = arith.constant 0 : index
      %c0_18 = arith.constant 0 : index
      %27 = vector.load %arg4[%c0_17, %c0_18] : memref<32x1xf32, #tpu.memory_space<vmem>>, vector<32x1xf32>
      %cst_19 = arith.constant 9.99999974E-6 : f32
      %28 = vector.broadcast %cst_19 : f32 to vector<32x1xf32>
      %29 = arith.addf %26, %28 : vector<32x1xf32>
      %30 = math.rsqrt %29 : vector<32x1xf32>
      %31 = arith.mulf %27, %30 : vector<32x1xf32>
      %c0_20 = arith.constant 0 : index
      %c0_21 = arith.constant 0 : index
      %32 = vector.load %arg9[%c0_20, %c0_21] : memref<32x1xf32, #tpu.memory_space<vmem>>, vector<32x1xf32>
      tpu.vector_store %arg9[%c0_20, %c0_21], %31 {strides = array<i32>} : memref<32x1xf32, #tpu.memory_space<vmem>>, vector<32x1xf32>,
      %c0_22 = arith.constant 0 : index
      %c0_23 = arith.constant 0 : index
      %33 = vector.load %arg5[%c0_22, %c0_23] : memref<32x1xf32, #tpu.memory_space<vmem>>, vector<32x1xf32>
      %34 = arith.mulf %21, %31 : vector<32x1xf32>
      %35 = arith.subf %33, %34 : vector<32x1xf32>
      %c0_24 = arith.constant 0 : index
      %c0_25 = arith.constant 0 : index
      %36 = vector.load %arg10[%c0_24, %c0_25] : memref<32x1xf32, #tpu.memory_space<vmem>>, vector<32x1xf32>
      tpu.vector_store %arg10[%c0_24, %c0_25], %35 {strides = array<i32>} : memref<32x1xf32, #tpu.memory_space<vmem>>, vector<32x1xf32>,
    } else {
    }
    %c1_i32_9 = arith.constant 1 : i32
    %16 = arith.cmpi eq, %arg0, %c1_i32_9 : i32
    %17 = arith.extui %16 : i1 to i32
    %c0_i32_10 = arith.constant 0 : i32
    %18 = arith.cmpi ne, %17, %c0_i32_10 : i32
    scf.if %18 {
      %c0_11 = arith.constant 0 : index
      %c0_12 = arith.constant 0 : index
      %19 = vector.load %arg9[%c0_11, %c0_12] : memref<32x1xf32, #tpu.memory_space<vmem>>, vector<32x1xf32>
      %20 = vector.broadcast %19 : vector<32x1xf32> to vector<32x128xf32>
      %21 = arith.mulf %2, %20 : vector<32x128xf32>
      %c0_13 = arith.constant 0 : index
      %c0_14 = arith.constant 0 : index
      %22 = vector.load %arg10[%c0_13, %c0_14] : memref<32x1xf32, #tpu.memory_space<vmem>>, vector<32x1xf32>
      %23 = vector.broadcast %22 : vector<32x1xf32> to vector<32x128xf32>
      %24 = arith.addf %21, %23 : vector<32x128xf32>
      %cst_15 = arith.constant 0.000000e+00 : f32
      %25 = vector.broadcast %cst_15 : f32 to vector<32x128xf32>
      %26 = arith.cmpf ogt, %24, %25 : vector<32x128xf32>
      %cst_16 = arith.constant 2.000000e-01 : f32
      %27 = vector.broadcast %cst_16 : f32 to vector<32x128xf32>
      %28 = arith.mulf %27, %24 : vector<32x128xf32>
      %29 = arith.select %26, %24, %28 : vector<32x128xi1>, vector<32x128xf32>
      %30 = arith.truncf %29 : vector<32x128xf32> to vector<32x128xbf16>
      %c0_17 = arith.constant 0 : index
      %c0_18 = arith.constant 0 : index
      %31 = vector.load %arg6[%c0_17, %c0_18] : memref<32x128xbf16, #tpu.memory_space<vmem>>, vector<32x128xbf16>
      tpu.vector_store %arg6[%c0_17, %c0_18], %30 {strides = array<i32>} : memref<32x128xbf16, #tpu.memory_space<vmem>>, vector<32x128xbf16>,
    } else {
    }
    return
  }
  func.func @transform_0(%arg0: i32, %arg1: i32) -> (i32, i32) {
    %c0_i32 = arith.constant 0 : i32
    %c0_i32_0 = arith.constant 0 : i32
    return %c0_i32, %arg1 : i32, i32
  }
  func.func @transform_1(%arg0: i32, %arg1: i32) -> (i32, i32) {
    %c0_i32 = arith.constant 0 : i32
    %c0_i32_0 = arith.constant 0 : i32
    %c0_i32_1 = arith.constant 0 : i32
    return %c0_i32, %c0_i32_0 : i32, i32
  }
  func.func @transform_2(%arg0: i32, %arg1: i32) -> (i32, i32) {
    %c0_i32 = arith.constant 0 : i32
    %c0_i32_0 = arith.constant 0 : i32
    %c0_i32_1 = arith.constant 0 : i32
    return %c0_i32, %c0_i32_0 : i32, i32
  }
  func.func @transform_3(%arg0: i32, %arg1: i32) -> (i32, i32) {
    %c0_i32 = arith.constant 0 : i32
    %c0_i32_0 = arith.constant 0 : i32
    %c0_i32_1 = arith.constant 0 : i32
    return %c0_i32, %c0_i32_0 : i32, i32
  }
  func.func @transform_4(%arg0: i32, %arg1: i32) -> (i32, i32) {
    %c0_i32 = arith.constant 0 : i32
    %c0_i32_0 = arith.constant 0 : i32
    return %c0_i32, %arg1 : i32, i32
  }
}

module attributes {stable_mosaic.version = 11 : i64} {
  func.func @kernel(%arg0: i32, %arg1: i32, %arg2: memref<1568x128xbf16, #tpu.memory_space<vmem>>, %arg3: memref<32x1568xbf16, #tpu.memory_space<vmem>>, %arg4: memref<32x1xf32, #tpu.memory_space<vmem>>, %arg5: memref<32x1xf32, #tpu.memory_space<vmem>>, %arg6: memref<16x32xf32, #tpu.memory_space<vmem>>, %arg7: memref<16x1xf32, #tpu.memory_space<vmem>>, %arg8: memref<16x128xf32, #tpu.memory_space<vmem>>, %arg9: memref<32x1xf32, #tpu.memory_space<vmem>>, %arg10: memref<32x1xf32, #tpu.memory_space<vmem>>, %arg11: memref<32x1xf32, #tpu.memory_space<vmem>>, %arg12: memref<32x1xf32, #tpu.memory_space<vmem>>) attributes {dimension_semantics = [#tpu.dimension_semantics<arbitrary>, #tpu.dimension_semantics<arbitrary>], iteration_bounds = array<i64: 2, 1>, scalar_prefetch = 0 : i64, scratch_operands = 4 : i64, tpu.core_type = #tpu.core_type<tc>, window_params = [{transform_indices = @transform_0, window_bounds = array<i64: 1568, 128>}, {pipeline_mode = #tpu.pipeline_mode<synchronous>, transform_indices = @transform_1, window_bounds = array<i64: 32, 1568>}, {pipeline_mode = #tpu.pipeline_mode<synchronous>, transform_indices = @transform_2, window_bounds = array<i64: 32, 1>}, {pipeline_mode = #tpu.pipeline_mode<synchronous>, transform_indices = @transform_3, window_bounds = array<i64: 32, 1>}, {pipeline_mode = #tpu.pipeline_mode<synchronous>, transform_indices = @transform_4, window_bounds = array<i64: 16, 32>}, {pipeline_mode = #tpu.pipeline_mode<synchronous>, transform_indices = @transform_5, window_bounds = array<i64: 16, 1>}, {transform_indices = @transform_6, window_bounds = array<i64: 16, 128>}]} {
    %c0 = arith.constant 0 : index
    %c0_0 = arith.constant 0 : index
    %0 = vector.load %arg3[%c0, %c0_0] : memref<32x1568xbf16, #tpu.memory_space<vmem>>, vector<32x1568xbf16>
    %c0_1 = arith.constant 0 : index
    %c0_2 = arith.constant 0 : index
    %1 = vector.load %arg2[%c0_1, %c0_2] : memref<1568x128xbf16, #tpu.memory_space<vmem>>, vector<1568x128xbf16>
    %cst = arith.constant dense<0.000000e+00> : vector<32x128xf32>
    %2 = tpu.matmul %0, %1, %cst {dimension_numbers = #tpu.dot_dimension_numbers<[1], [0], [0], [1], [0, 0, 1, 1], [], []>} : vector<32x1568xbf16>, vector<1568x128xbf16>, vector<32x128xf32> -> vector<32x128xf32>
    %c0_i32 = arith.constant 0 : i32
    %3 = arith.cmpi eq, %arg0, %c0_i32 : i32
    %c0_i32_3 = arith.constant 0 : i32
    %4 = arith.cmpi eq, %arg1, %c0_i32_3 : i32
    %5 = arith.andi %3, %4 : i1
    %6 = arith.extui %5 : i1 to i32
    %c0_i32_4 = arith.constant 0 : i32
    %7 = arith.cmpi ne, %6, %c0_i32_4 : i32
    scf.if %7 {
      %cst_11 = arith.constant 0.000000e+00 : f32
      %19 = vector.broadcast %cst_11 : f32 to vector<32x1xf32>
      %c0_12 = arith.constant 0 : index
      %c0_13 = arith.constant 0 : index
      %20 = vector.load %arg9[%c0_12, %c0_13] : memref<32x1xf32, #tpu.memory_space<vmem>>, vector<32x1xf32>
      tpu.vector_store %arg9[%c0_12, %c0_13], %19 {strides = array<i32>} : memref<32x1xf32, #tpu.memory_space<vmem>>, vector<32x1xf32>,
      %cst_14 = arith.constant 0.000000e+00 : f32
      %21 = vector.broadcast %cst_14 : f32 to vector<32x1xf32>
      %c0_15 = arith.constant 0 : index
      %c0_16 = arith.constant 0 : index
      %22 = vector.load %arg10[%c0_15, %c0_16] : memref<32x1xf32, #tpu.memory_space<vmem>>, vector<32x1xf32>
      tpu.vector_store %arg10[%c0_15, %c0_16], %21 {strides = array<i32>} : memref<32x1xf32, #tpu.memory_space<vmem>>, vector<32x1xf32>,
    } else {
    }
    %c0_i32_5 = arith.constant 0 : i32
    %8 = arith.cmpi eq, %arg0, %c0_i32_5 : i32
    %9 = arith.extui %8 : i1 to i32
    %c0_i32_6 = arith.constant 0 : i32
    %10 = arith.cmpi ne, %9, %c0_i32_6 : i32
    scf.if %10 {
      %c0_11 = arith.constant 0 : index
      %c0_12 = arith.constant 0 : index
      %19 = vector.load %arg9[%c0_11, %c0_12] : memref<32x1xf32, #tpu.memory_space<vmem>>, vector<32x1xf32>
      %cst_13 = arith.constant dense<0.000000e+00> : vector<32xf32>
      %20 = vector.multi_reduction <add>, %2, %cst_13 [1] : vector<32x128xf32> to vector<32xf32>
      %21 = vector.shape_cast %20 : vector<32xf32> to vector<32x1xf32>
      %22 = arith.addf %19, %21 : vector<32x1xf32>
      %c0_14 = arith.constant 0 : index
      %c0_15 = arith.constant 0 : index
      %23 = vector.load %arg9[%c0_14, %c0_15] : memref<32x1xf32, #tpu.memory_space<vmem>>, vector<32x1xf32>
      tpu.vector_store %arg9[%c0_14, %c0_15], %22 {strides = array<i32>} : memref<32x1xf32, #tpu.memory_space<vmem>>, vector<32x1xf32>,
      %c0_16 = arith.constant 0 : index
      %c0_17 = arith.constant 0 : index
      %24 = vector.load %arg10[%c0_16, %c0_17] : memref<32x1xf32, #tpu.memory_space<vmem>>, vector<32x1xf32>
      %25 = arith.mulf %2, %2 : vector<32x128xf32>
      %cst_18 = arith.constant dense<0.000000e+00> : vector<32xf32>
      %26 = vector.multi_reduction <add>, %25, %cst_18 [1] : vector<32x128xf32> to vector<32xf32>
      %27 = vector.shape_cast %26 : vector<32xf32> to vector<32x1xf32>
      %28 = arith.addf %24, %27 : vector<32x1xf32>
      %c0_19 = arith.constant 0 : index
      %c0_20 = arith.constant 0 : index
      %29 = vector.load %arg10[%c0_19, %c0_20] : memref<32x1xf32, #tpu.memory_space<vmem>>, vector<32x1xf32>
      tpu.vector_store %arg10[%c0_19, %c0_20], %28 {strides = array<i32>} : memref<32x1xf32, #tpu.memory_space<vmem>>, vector<32x1xf32>,
    } else {
    }
    %c1_i32 = arith.constant 1 : i32
    %11 = arith.cmpi eq, %arg0, %c1_i32 : i32
    %c0_i32_7 = arith.constant 0 : i32
    %12 = arith.cmpi eq, %arg1, %c0_i32_7 : i32
    %13 = arith.andi %11, %12 : i1
    %14 = arith.extui %13 : i1 to i32
    %c0_i32_8 = arith.constant 0 : i32
    %15 = arith.cmpi ne, %14, %c0_i32_8 : i32
    scf.if %15 {
      %c0_11 = arith.constant 0 : index
      %c0_12 = arith.constant 0 : index
      %19 = vector.load %arg9[%c0_11, %c0_12] : memref<32x1xf32, #tpu.memory_space<vmem>>, vector<32x1xf32>
      %cst_13 = arith.constant 5.000000e-01 : f32
      %20 = vector.broadcast %cst_13 : f32 to vector<32x1xf32>
      %21 = arith.mulf %19, %20 : vector<32x1xf32>
      %c0_14 = arith.constant 0 : index
      %c0_15 = arith.constant 0 : index
      %22 = vector.load %arg10[%c0_14, %c0_15] : memref<32x1xf32, #tpu.memory_space<vmem>>, vector<32x1xf32>
      %cst_16 = arith.constant 5.000000e-01 : f32
      %23 = vector.broadcast %cst_16 : f32 to vector<32x1xf32>
      %24 = arith.mulf %22, %23 : vector<32x1xf32>
      %25 = arith.mulf %21, %21 : vector<32x1xf32>
      %26 = arith.subf %24, %25 : vector<32x1xf32>
      %c0_17 = arith.constant 0 : index
      %c0_18 = arith.constant 0 : index
      %27 = vector.load %arg4[%c0_17, %c0_18] : memref<32x1xf32, #tpu.memory_space<vmem>>, vector<32x1xf32>
      %cst_19 = arith.constant 9.99999974E-6 : f32
      %28 = vector.broadcast %cst_19 : f32 to vector<32x1xf32>
      %29 = arith.addf %26, %28 : vector<32x1xf32>
      %30 = math.rsqrt %29 : vector<32x1xf32>
      %31 = arith.mulf %27, %30 : vector<32x1xf32>
      %c0_20 = arith.constant 0 : index
      %c0_21 = arith.constant 0 : index
      %32 = vector.load %arg11[%c0_20, %c0_21] : memref<32x1xf32, #tpu.memory_space<vmem>>, vector<32x1xf32>
      tpu.vector_store %arg11[%c0_20, %c0_21], %31 {strides = array<i32>} : memref<32x1xf32, #tpu.memory_space<vmem>>, vector<32x1xf32>,
      %c0_22 = arith.constant 0 : index
      %c0_23 = arith.constant 0 : index
      %33 = vector.load %arg5[%c0_22, %c0_23] : memref<32x1xf32, #tpu.memory_space<vmem>>, vector<32x1xf32>
      %34 = arith.mulf %21, %31 : vector<32x1xf32>
      %35 = arith.subf %33, %34 : vector<32x1xf32>
      %c0_24 = arith.constant 0 : index
      %c0_25 = arith.constant 0 : index
      %36 = vector.load %arg12[%c0_24, %c0_25] : memref<32x1xf32, #tpu.memory_space<vmem>>, vector<32x1xf32>
      tpu.vector_store %arg12[%c0_24, %c0_25], %35 {strides = array<i32>} : memref<32x1xf32, #tpu.memory_space<vmem>>, vector<32x1xf32>,
    } else {
    }
    %c1_i32_9 = arith.constant 1 : i32
    %16 = arith.cmpi eq, %arg0, %c1_i32_9 : i32
    %17 = arith.extui %16 : i1 to i32
    %c0_i32_10 = arith.constant 0 : i32
    %18 = arith.cmpi ne, %17, %c0_i32_10 : i32
    scf.if %18 {
      %c0_11 = arith.constant 0 : index
      %c0_12 = arith.constant 0 : index
      %19 = vector.load %arg11[%c0_11, %c0_12] : memref<32x1xf32, #tpu.memory_space<vmem>>, vector<32x1xf32>
      %20 = vector.broadcast %19 : vector<32x1xf32> to vector<32x128xf32>
      %21 = arith.mulf %2, %20 : vector<32x128xf32>
      %c0_13 = arith.constant 0 : index
      %c0_14 = arith.constant 0 : index
      %22 = vector.load %arg12[%c0_13, %c0_14] : memref<32x1xf32, #tpu.memory_space<vmem>>, vector<32x1xf32>
      %23 = vector.broadcast %22 : vector<32x1xf32> to vector<32x128xf32>
      %24 = arith.addf %21, %23 : vector<32x128xf32>
      %cst_15 = arith.constant 0.000000e+00 : f32
      %25 = vector.broadcast %cst_15 : f32 to vector<32x128xf32>
      %26 = arith.cmpf ogt, %24, %25 : vector<32x128xf32>
      %cst_16 = arith.constant 2.000000e-01 : f32
      %27 = vector.broadcast %cst_16 : f32 to vector<32x128xf32>
      %28 = arith.mulf %27, %24 : vector<32x128xf32>
      %29 = arith.select %26, %24, %28 : vector<32x128xi1>, vector<32x128xf32>
      %c0_17 = arith.constant 0 : index
      %c0_18 = arith.constant 0 : index
      %30 = vector.load %arg6[%c0_17, %c0_18] : memref<16x32xf32, #tpu.memory_space<vmem>>, vector<16x32xf32>
      %cst_19 = arith.constant dense<0.000000e+00> : vector<16x128xf32>
      %31 = tpu.matmul %30, %29, %cst_19 {dimension_numbers = #tpu.dot_dimension_numbers<[1], [0], [0], [1], [0, 0, 1, 1], [], []>} : vector<16x32xf32>, vector<32x128xf32>, vector<16x128xf32> -> vector<16x128xf32>
      %c0_20 = arith.constant 0 : index
      %c0_21 = arith.constant 0 : index
      %32 = vector.load %arg7[%c0_20, %c0_21] : memref<16x1xf32, #tpu.memory_space<vmem>>, vector<16x1xf32>
      %33 = vector.broadcast %32 : vector<16x1xf32> to vector<16x128xf32>
      %34 = arith.addf %31, %33 : vector<16x128xf32>
      %c0_22 = arith.constant 0 : index
      %c0_23 = arith.constant 0 : index
      %35 = vector.load %arg8[%c0_22, %c0_23] : memref<16x128xf32, #tpu.memory_space<vmem>>, vector<16x128xf32>
      tpu.vector_store %arg8[%c0_22, %c0_23], %34 {strides = array<i32>} : memref<16x128xf32, #tpu.memory_space<vmem>>, vector<16x128xf32>,
    } else {
    }
    return
  }
  func.func @transform_0(%arg0: i32, %arg1: i32) -> (i32, i32) {
    %c0_i32 = arith.constant 0 : i32
    %c0_i32_0 = arith.constant 0 : i32
    return %c0_i32, %arg1 : i32, i32
  }
  func.func @transform_1(%arg0: i32, %arg1: i32) -> (i32, i32) {
    %c0_i32 = arith.constant 0 : i32
    %c0_i32_0 = arith.constant 0 : i32
    %c0_i32_1 = arith.constant 0 : i32
    return %c0_i32, %c0_i32_0 : i32, i32
  }
  func.func @transform_2(%arg0: i32, %arg1: i32) -> (i32, i32) {
    %c0_i32 = arith.constant 0 : i32
    %c0_i32_0 = arith.constant 0 : i32
    %c0_i32_1 = arith.constant 0 : i32
    return %c0_i32, %c0_i32_0 : i32, i32
  }
  func.func @transform_3(%arg0: i32, %arg1: i32) -> (i32, i32) {
    %c0_i32 = arith.constant 0 : i32
    %c0_i32_0 = arith.constant 0 : i32
    %c0_i32_1 = arith.constant 0 : i32
    return %c0_i32, %c0_i32_0 : i32, i32
  }
  func.func @transform_4(%arg0: i32, %arg1: i32) -> (i32, i32) {
    %c0_i32 = arith.constant 0 : i32
    %c0_i32_0 = arith.constant 0 : i32
    %c0_i32_1 = arith.constant 0 : i32
    return %c0_i32, %c0_i32_0 : i32, i32
  }
  func.func @transform_5(%arg0: i32, %arg1: i32) -> (i32, i32) {
    %c0_i32 = arith.constant 0 : i32
    %c0_i32_0 = arith.constant 0 : i32
    %c0_i32_1 = arith.constant 0 : i32
    return %c0_i32, %c0_i32_0 : i32, i32
  }
  func.func @transform_6(%arg0: i32, %arg1: i32) -> (i32, i32) {
    %c0_i32 = arith.constant 0 : i32
    %c0_i32_0 = arith.constant 0 : i32
    return %c0_i32, %arg1 : i32, i32
  }
}

</mosaic_0001>

<bundles_post_ra>
// kernel: encoder_forward.4
= control target key start
LH: loop header
LB: loop body
LE: loop exit
PB: predicated region body
PF: predicated region fallthrough
CT: control target
= control target key end

     0   :  { %s709_s15 = smov 0   ;;  %s711_s16 = smov 0   ;;  %s840_s0 = inlined_call_operand.vmem [shape: bf16[16,2048], index: 0, kind: input, shape index: {}]   ;;  %s841_s1 = inlined_call_operand.vmem [shape: bf16[8,16], index: 1, kind: input, shape index: {}]   ;;  %s842_s2 = inlined_call_operand.vmem [shape: f32[8,1], index: 2, kind: input, shape index: {}]   ;;  %s843_s3 = inlined_call_operand.vmem [shape: f32[8,1], index: 3, kind: input, shape index: {}]   ;;  %s844_s4 = inlined_call_operand.vmem [shape: bf16[8,2048], index: 4, kind: output, shape index: {}]  }
   0x1   :  { %s713_s17 = smov 0   ;;  %s715_s18 = smov 0  }
   0x2   :  { %s717_s19 = smov 0   ;;  %s719_s20 = smov 0  }
   0x3   :  { %s721_s21 = smov 0  }
   0x4 LB: > { %s23_s22 = sadd.s32 1, %s671_s19  ;;  %s26_s23 = sadd.s32 1, %s675_s20  ;;  %s679_s21 = sphi %s721_s21, %s14_s21   ;;  %s675_s20 = sphi %s719_s20, %s850_s20   ;;  %s671_s19 = sphi %s717_s19, %s849_s19   ;;  %s667_s18 = sphi %s715_s18, %s848_s18   ;;  %s663_s17 = sphi %s713_s17, %s847_s17   ;;  %s659_s16 = sphi %s711_s16, %s846_s16   ;;  %s655_s15 = sphi %s709_s15, %s845_s15  }
   0x5   : > { %p24_p0 = scmp.ge.s32.totalorder %s23_s22, 4  ;;  %s33_s24 = sadd.s32 1, %s659_s16 }
   0x6   : > { %p40_p1 = scmp.ne.s32.totalorder %s659_s16, %s655_s15  ;;  %p41_p2 = scmp.eq.s32.totalorder %s679_s21, 0 }
   0x7   : > { %s852_s22 = smov (%p24_p0, %s23_s22), 0  ;;  %s854_s23 = smov (!%p24_p0, %s26_s23), %s675_s20 }
   0x8   : > { %s30_s25 = ssub.s32 %s671_s19, %s852_s22  ;;  %p42_p3 = por %p41_p2, %p40_p1 }
   0x9   : > { %p28_p4 = scmp.ge.s32.totalorder %s854_s23, 2  ;;  %p31_p5 = scmp.eq.s32.totalorder %s30_s25, 0 }
   0xa   : > { %p534_p6 = scmp.ge.s32.totalorder %s679_s21, 8 }
   0xb   : > { %s856_s23 = smov (%p28_p4, %s854_s23), 0 }
   0xc   : > { %s758_s26 = scalar_select %p31_p5, %s659_s16, %s33_s24  }
   0xd   : > { %164 = sbr.rel (%p534_p6) target bundleno = 27 (0x1b), region = 28 }
  0x14   : > { %167 = sbr.rel (!%p42_p3) target bundleno = 27 (0x1b), region = 32  ;;  %s169_s27 = sand.u32 (%p42_p3), 1, %s659_s16  }
  0x15   : > { %s554_s28 = sshll.u32 (%p42_p3), %s671_s19, 4  ;;  %s535_s29 = sshll.u32 (%p42_p3), %s169_s27, 5 }
  0x16   : > { %s174_s6 = scalar_lea.vmem (%p42_p3), %s840_s0, %s554_s28  ;;  %s171_s7 = scalar_lea.vmem (%p42_p3), [#allocation6], %s535_s29 }
  0x17   : > { %v187_v0 = vld [vmem:[%s174_s6] sm:$0xff] (%p42_p3)  ;;  %v189_v1 = vld [vmem:[%s174_s6 + $0x8] sm:$0xff] (%p42_p3) }
  0x18   : > { %v191_v2 = vld [vmem:[%s174_s6 + $0x40] sm:$0xff] (%p42_p3)  ;;  %188 = vst [vmem:[%s171_s7] sm:$0xff] (%p42_p3), %v187_v0  ;;  %190 = vst [vmem:[%s171_s7 + $0x8] sm:$0xff] (%p42_p3), %v189_v1  ;;  %v193_v3 = vld [vmem:[%s174_s6 + $0x48] sm:$0xff] (%p42_p3) }
  0x19   : > { %192 = vst [vmem:[%s171_s7 + $0x10] sm:$0xff] (%p42_p3), %v191_v2  ;;  %194 = vst [vmem:[%s171_s7 + $0x18] sm:$0xff] (%p42_p3), %v193_v3 }
  0x1b PF: > { %p538_p7 = scmp.ge.s32.totalorder %s679_s21, 1  ;;  %p199_p8 = scmp.lt.s32.totalorder %s679_s21, 9 }
  0x1d   : > { %p200_p9 = pnand %p538_p7, %p199_p8 }
  0x1e   : > { %s206_s8 = sand.u32 (!%p200_p9), 1, %s655_s15   ;;  %s540_s9 = sshll.u32 (!%p200_p9), %s663_s17, 2  ;;  %v681_v4 = vmov (!%p200_p9), 0   ;;  %v239_v9 = vld [vmem:[%s841_s1] sm:$0xf] (!%p200_p9)  ;;  %vm264_vm0 = vcmask (!%p200_p9), 130048  }
  0x1f   : > { %203 = sbr.rel (%p200_p9) target bundleno = 585 (0x249), region = 55  ;;  %s539_s10 = sshll.u32 (!%p200_p9), %s206_s8, 5  ;;  %300 = vmatprep.mubr.bf16.mxu0 (!%p200_p9), %v681_v4  ;;  %341 = vmatprep.mubr.bf16.mxu1 (!%p200_p9), %v681_v4 }
  0x20   : > { %p233_p10 = scmp.lt.s32.totalorder (!%p200_p9), %s540_s9, 15  ;;  %s208_s11 = scalar_lea.vmem (!%p200_p9), [#allocation6], %s539_s10 }
  0x21   : > { %v616_v5 = vld [vmem:[%s208_s11 + $0x4] ss:$16 sps:$4 sm:$0xff] (!%p200_p9)   ;;  %v618_v6 = vld [vmem:[%s208_s11 + $0xc] ss:$16 sps:$4 sm:$0xff] (!%p200_p9)   ;;  %v620_v7 = vld [vmem:[%s208_s11] ss:$16 sps:$4 sm:$0xff] (!%p200_p9)  }
  0x22   : > { %268 = vmatprep.subr.bf16.mxu0 (!%p200_p9), %v616_v5  ;;  %v621_v8 = vld [vmem:[%s208_s11 + $0x8] ss:$16 sps:$4 sm:$0xff] (!%p200_p9)   ;;  %309 = vmatprep.subr.bf16.mxu1 (!%p200_p9), %v618_v6  ;;  %p350_p11 = scmp.eq.s32.totalorder (!%p200_p9), %s667_s18, 0  ;;  %p351_p12 = scmp.eq.s32.totalorder (!%p200_p9), %s663_s17, 0 }
  0x23   : > { %269 = vmatpush1.bf16.msra.mxu0 (!%p200_p9), %v620_v7  ;;  %310 = vmatpush1.bf16.msra.mxu1 (!%p200_p9), %v621_v8 }
  0x24   : > { %p352_p13 = pnand (!%p200_p9), %p351_p12, %p350_p11 }
  0x26   : > { %s858_s9 = smov (!%p233_p10, %s540_s9), 15  ;;  %546 = vmatmul.mubr.msk.bf16.vlgmr.msra.gmra.mrb[0].mxu0 %vm264_vm0, %v239_v9  ;;  %547 = vmatmul.mubr.msk.bf16.vlgmr.msra.gmra.mrb[0].mxu1 %vm264_vm0, %v239_v9  ;;  %vm356_vm1 = vcmask (!%p352_p13), 7168   ;;  %v682_v18 = vmov (!%p352_p13), 0.0  }
  0x27   : > { %s541_s12 = sshll.u32 %s858_s9, 2  ;;  %357 = vst.msk [vmem:[#allocation2] sm:$0xff] (!%p352_p13), %vm356_vm1, %v682_v18  ;;  %358 = vst.msk [vmem:[#allocation3] sm:$0xff] (!%p352_p13), %vm356_vm1, %v682_v18 }
  0x28   : > { %s773_s15 = scalar_lea.vmem %s844_s4, %s541_s12 }
  0xf6   : > { %355 = sbr.rel (%p352_p13) target bundleno = 253 (0xfd), region = 63 }
  0xf9   : > { %v782_v10 = vpop.f32.mrb[0].mxu0  ;;  %v784_v11 = vpop.f32.mrb[0].mxu1 }
  0xfa   : > { %v786_v12 = vpop.f32.mrb[1].mxu0  ;;  %v788_v13 = vpop.f32.mrb[1].mxu1 }
  0xfb   : > { %v306_v14 = vpop.f32.mrb[2].mxu0  ;;  %v347_v15 = vpop.f32.mrb[2].mxu1 }
  0xfc   : > { %v307_v16 = vpop.f32.mrb[3].mxu0  ;;  %v348_v17 = vpop.f32.mrb[3].mxu1 }
  0xfd PF: > { %p548_p0 = scmp.ne.s32.totalorder %s667_s18, 0 }
  0xfe   : > { %v363_v19 = vadd.f32 (!%p548_p0), %v786_v12, %v782_v10  ;;  %v372_v20 = vmul.f32 (!%p548_p0), %v782_v10, %v782_v10  ;;  %v373_v21 = vmul.f32 (!%p548_p0), %v786_v12, %v786_v12  ;;  %v374_v22 = vmul.f32 (!%p548_p0), %v784_v11, %v784_v11  ;;  %v362_v29 = vld [vmem:[#allocation2] sm:$0xff] (!%p548_p0)  ;;  %v371_v32 = vld [vmem:[#allocation3] sm:$0xff] (!%p548_p0) }
  0xff   : > { %361 = sbr.rel (%p548_p0) target bundleno = 409 (0x199), region = 67  ;;  %v375_v24 = vmul.f32 (!%p548_p0), %v788_v13, %v788_v13  ;;  %vm369_vm2 = vcmask (!%p548_p0), 7168  }
 0x100   : > { %v364_v23 = vadd.f32 (!%p548_p0), %v363_v19, %v784_v11  ;;  %v376_v25 = vadd.f32 (!%p548_p0), %v373_v21, %v372_v20 }
 0x102   : > { %v365_v26 = vadd.f32 (!%p548_p0), %v364_v23, %v788_v13  ;;  %v377_v27 = vadd.f32 (!%p548_p0), %v376_v25, %v374_v22 }
 0x104   : > { %366 = vadd.xlane.f32.xlu0 (!%p548_p0), %v365_v26  ;;  %v378_v28 = vadd.f32 (!%p548_p0), %v377_v27, %v375_v24 }
 0x108   : > { %379 = vadd.xlane.f32.xlu0 %v378_v28 }
 0x191   : > { %v367_v30 = vpop.xlane.xlu0 %366 }
 0x192   : > { %v368_v31 = vadd.f32 %v367_v30, %v362_v29 }
 0x194   : > { %370 = vst.msk [vmem:[#allocation2] sm:$0xff] %vm369_vm2, %v368_v31 }
 0x195   : > { %v380_v33 = vpop.xlane.xlu0 %379 }
 0x196   : > { %v381_v34 = vadd.f32 %v380_v33, %v371_v32 }
 0x198   : > { %382 = vst.msk [vmem:[#allocation3] sm:$0xff] %vm369_vm2, %v381_v34 }
 0x199 PF: > { %p383_p1 = scmp.eq.s32.totalorder %s667_s18, 1 }
 0x19b   : > { %p384_p2 = pnand %p383_p1, %p351_p12 }
 0x19c   : > { %v388_v35 = vld [vmem:[#allocation2] sm:$0xff] (!%p384_p2)  ;;  %vm398_vm3 = vcmask (!%p384_p2), 7168  }
 0x19d   : > { %387 = sbr.rel (%p384_p2) target bundleno = 440 (0x1b8), region = 71  ;;  %v389_v37 = vmul.f32 (!%p384_p2), 0.0006377551, %v388_v35  ;;  %v394_v42 = vld [vmem:[%s842_s2] sm:$0xff] (!%p384_p2) }
 0x19e   : > { %v400_v45 = vld [vmem:[%s843_s3] sm:$0xff] (!%p384_p2) }
 0x19f   : > { %v390_v36 = vld [vmem:[#allocation3] sm:$0xff] (!%p384_p2)  ;;  %v392_v39 = vmul.f32 (!%p384_p2), %v389_v37, %v389_v37 }
 0x1a0   : > { %v391_v38 = vmul.f32 (!%p384_p2), 0.0006377551, %v390_v36 }
 0x1a2   : > { %v393_v40 = vsub.f32 (!%p384_p2), %v391_v38, %v392_v39 }
 0x1a4   : > { %v395_v41 = vadd.f32 1e-05, %v393_v40 }
 0x1a6   : > { %622 = vrsqrt.f32 %v395_v41 }
 0x1b0   : > { %v623_v43 = vpop.eup %622 }
 0x1b1   : > { %v397_v44 = vmul.f32 %v623_v43, %v394_v42 }
 0x1b3   : > { %399 = vst.msk [vmem:[#allocation4] sm:$0xff] %vm398_vm3, %v397_v44  ;;  %v401_v46 = vmul.f32 %v397_v44, %v389_v37 }
 0x1b5   : > { %v402_v47 = vsub.f32 %v400_v45, %v401_v46 }
 0x1b7   : > { %403 = vst.msk [vmem:[#allocation5] sm:$0xff] %vm398_vm3, %v402_v47 }
 0x1b8 PF: > { %p549_p3 = scmp.ne.s32.totalorder %s667_s18, 1 }
 0x1b9   : > { %v683_v49 = vmov (!%p549_p3), 0  }
 0x1ba   : > { %406 = sbr.rel (%p549_p3) target bundleno = 585 (0x249), region = 75  ;;  %v407_v48 = vld [vmem:[#allocation4] sm:$0xff] (!%p549_p3)  ;;  %624 = vset.pattern.permute.xlu0 (!%p549_p3), %v683_v49 }
 0x1bb   : > { %410 = vperm.xlu0 (!%p549_p3), %624, %v407_v48  }
 0x1be   : > { %v417_v50 = vld [vmem:[#allocation5] sm:$0xff] (!%p549_p3) }
 0x1bf   : > { %420 = vperm.xlu0 (!%p549_p3), %624, %v417_v50  }
 0x23a   : > { %v411_v51 = vpop.permute.xlu0 %410 }
 0x23b   : > { %v413_v52 = vmul.f32 %v411_v51, %v782_v10  ;;  %v414_v53 = vmul.f32 %v411_v51, %v786_v12  ;;  %v415_v54 = vmul.f32 %v411_v51, %v784_v11  ;;  %v416_v55 = vmul.f32 %v411_v51, %v788_v13 }
 0x23e   : > { %v421_v56 = vpop.permute.xlu0 %420 }
 0x23f   : > { %v423_v57 = vadd.f32 %v421_v56, %v413_v52  ;;  %v424_v58 = vadd.f32 %v421_v56, %v414_v53  ;;  %v425_v59 = vadd.f32 %v421_v56, %v415_v54  ;;  %v426_v60 = vadd.f32 %v421_v56, %v416_v55 }
 0x241   : > { %vm427_vm4 = vcmp.gt.f32.partialorder %v423_v57, 0.0  ;;  %vm428_vm5 = vcmp.gt.f32.partialorder %v424_v58, 0.0  ;;  %vm429_vm6 = vcmp.gt.f32.partialorder %v425_v59, 0.0  ;;  %vm430_vm7 = vcmp.gt.f32.partialorder %v426_v60, 0.0 }
 0x242   : > { %v431_v61 = vmul.f32 0.2, %v423_v57  ;;  %v432_v62 = vmul.f32 0.2, %v424_v58  ;;  %v433_v63 = vmul.f32 0.2, %v425_v59 }
 0x243   : > { %v434_v0 = vmul.f32 0.2, %v426_v60 }
 0x244   : > { %v435_v1 = vsel %vm427_vm4, %v423_v57, %v431_v61  ;;  %v436_v2 = vsel %vm428_vm5, %v424_v58, %v432_v62  ;;  %v437_v3 = vsel %vm429_vm6, %v425_v59, %v433_v63 }
 0x245   : > { %v438_v4 = vsel %vm430_vm7, %v426_v60, %v434_v0  ;;  %v555_v5 = vpack.c.bf16 %v436_v2, %v435_v1 }
 0x246   : > { %v556_v6 = vpack.c.bf16 %v438_v4, %v437_v3 }
 0x247   : > { %455 = vst [vmem:[%s773_s15] sm:$0xff] %v555_v5 }
 0x248   : > { %456 = vst [vmem:[%s773_s15 + $0x8] sm:$0xff] %v556_v6 }
 0x249 PF: > { %s14_s21 = sadd.s32 1, %s679_s21   ;;  %s845_s15 = smov %s659_s16 }
 0x24a   : > { %p11_p4 = scmp.ge.s32.totalorder %s14_s21, 10   ;;  %s846_s16 = smov %s758_s26 }
 0x24b   : > { %s847_s17 = smov %s671_s19  ;;  %s848_s18 = smov %s675_s20 }
 0x24c   : > { %s849_s19 = smov %s852_s22  ;;  %s850_s20 = smov %s856_s23 }
 0x24d   :  { %13 = sbr.rel (!%p11_p4) target bundleno = 4 (0x4), region = 110 }

// kernel: encoder_forward.5
= control target key start
LH: loop header
LB: loop body
LE: loop exit
PB: predicated region body
PF: predicated region fallthrough
CT: control target
= control target key end

     0   :  { %s940_s15 = smov 0   ;;  %s942_s16 = smov 0   ;;  %s1144_s0 = inlined_call_operand.vmem [shape: bf16[128,512], index: 0, kind: input, shape index: {}]   ;;  %s1145_s1 = inlined_call_operand.vmem [shape: bf16[16,128], index: 1, kind: input, shape index: {}]   ;;  %s1146_s2 = inlined_call_operand.vmem [shape: f32[16,1], index: 2, kind: input, shape index: {}]   ;;  %s1147_s3 = inlined_call_operand.vmem [shape: f32[16,1], index: 3, kind: input, shape index: {}]   ;;  %s1148_s4 = inlined_call_operand.vmem [shape: bf16[16,512], index: 4, kind: output, shape index: {}]  }
   0x1   :  { %s944_s17 = smov 0  }
   0x2 LB: > { %s26_s18 = sadd.s32 1, %s906_s16  ;;  %p754_p0 = scmp.ge.s32.totalorder %s910_s17, 1  ;;  %s910_s17 = sphi %s944_s17, %s14_s17   ;;  %s906_s16 = sphi %s942_s16, %s1150_s16   ;;  %s902_s15 = sphi %s940_s15, %s1149_s15  }
   0x3   : > { %p28_p1 = scmp.ge.s32.totalorder %s26_s18, 2  ;;  %p175_p2 = scmp.lt.s32.totalorder %s910_s17, 3 }
   0x5   : > { %s1152_s18 = smov (%p28_p1, %s26_s18), 0  ;;  %p176_p3 = pnand %p754_p0, %p175_p2 }
   0x6   : > { %v833_v0 = vld [vmem:[%s1144_s0 + $0x4] ss:$16 sps:$4 sm:$0xff] (!%p176_p3)   ;;  %v835_v1 = vld [vmem:[%s1144_s0 + $0xc] ss:$16 sps:$4 sm:$0xff] (!%p176_p3)   ;;  %v912_v2 = vmov (!%p176_p3), 0   ;;  %p500_p4 = scmp.eq.s32.totalorder (!%p176_p3), %s902_s15, 0 }
   0x7   : > { %179 = sbr.rel (%p176_p3) target bundleno = 592 (0x250), region = 36  ;;  %446 = vmatprep.mubr.bf16.mxu0 (!%p176_p3), %v912_v2  ;;  %489 = vmatprep.mubr.bf16.mxu1 (!%p176_p3), %v912_v2  ;;  %v837_v3 = vld [vmem:[%s1144_s0] ss:$16 sps:$4 sm:$0xff] (!%p176_p3)   ;;  %v838_v4 = vld [vmem:[%s1144_s0 + $0x8] ss:$16 sps:$4 sm:$0xff] (!%p176_p3)  }
   0x8   : > { %414 = vmatprep.subr.bf16.mxu0 (!%p176_p3), %v833_v0  ;;  %457 = vmatprep.subr.bf16.mxu1 (!%p176_p3), %v835_v1  ;;  %v839_v5 = vld [vmem:[%s1144_s0 + $0x24] ss:$16 sps:$4 sm:$0xff] (!%p176_p3)   ;;  %v841_v6 = vld [vmem:[%s1144_s0 + $0x2c] ss:$16 sps:$4 sm:$0xff] (!%p176_p3)   ;;  %v843_v7 = vld [vmem:[%s1144_s0 + $0x20] ss:$16 sps:$4 sm:$0xff] (!%p176_p3)  }
   0x9   : > { %415 = vmatpush1.bf16.msra.mxu0 (!%p176_p3), %v837_v3  ;;  %458 = vmatpush1.bf16.msra.mxu1 (!%p176_p3), %v838_v4  ;;  %v844_v8 = vld [vmem:[%s1144_s0 + $0x28] ss:$16 sps:$4 sm:$0xff] (!%p176_p3)   ;;  %v845_v9 = vld [vmem:[%s1144_s0 + $0x44] ss:$16 sps:$4 sm:$0xff] (!%p176_p3)   ;;  %v847_v10 = vld [vmem:[%s1144_s0 + $0x4c] ss:$16 sps:$4 sm:$0xff] (!%p176_p3)  }
   0xa   : > { %416 = vmatprep.subr.bf16.mxu0 (!%p176_p3), %v839_v5  ;;  %459 = vmatprep.subr.bf16.mxu1 (!%p176_p3), %v841_v6  ;;  %v849_v11 = vld [vmem:[%s1144_s0 + $0x40] ss:$16 sps:$4 sm:$0xff] (!%p176_p3)   ;;  %v850_v12 = vld [vmem:[%s1144_s0 + $0x48] ss:$16 sps:$4 sm:$0xff] (!%p176_p3)   ;;  %v851_v13 = vld [vmem:[%s1144_s0 + $0x64] ss:$16 sps:$4 sm:$0xff] (!%p176_p3)  }
   0xb   : > { %v853_v14 = vld [vmem:[%s1144_s0 + $0x6c] ss:$16 sps:$4 sm:$0xff] (!%p176_p3)   ;;  %v855_v15 = vld [vmem:[%s1144_s0 + $0x60] ss:$16 sps:$4 sm:$0xff] (!%p176_p3)   ;;  %v856_v16 = vld [vmem:[%s1144_s0 + $0x68] ss:$16 sps:$4 sm:$0xff] (!%p176_p3)  }
   0xc   : > { %v857_v17 = vld [vmem:[%s1144_s0 + $0x84] ss:$16 sps:$4 sm:$0xff] (!%p176_p3)   ;;  %v859_v18 = vld [vmem:[%s1144_s0 + $0x8c] ss:$16 sps:$4 sm:$0xff] (!%p176_p3)   ;;  %v861_v19 = vld [vmem:[%s1144_s0 + $0x80] ss:$16 sps:$4 sm:$0xff] (!%p176_p3)  }
   0xd   : > { %417 = vmatpush1.bf16.msra.mxu0 (!%p176_p3), %v843_v7  ;;  %460 = vmatpush1.bf16.msra.mxu1 (!%p176_p3), %v844_v8  ;;  %v862_v20 = vld [vmem:[%s1144_s0 + $0x88] ss:$16 sps:$4 sm:$0xff] (!%p176_p3)   ;;  %v863_v21 = vld [vmem:[%s1144_s0 + $0xa4] ss:$16 sps:$4 sm:$0xff] (!%p176_p3)   ;;  %v865_v22 = vld [vmem:[%s1144_s0 + $0xac] ss:$16 sps:$4 sm:$0xff] (!%p176_p3)  }
   0xe   : > { %418 = vmatprep.subr.bf16.mxu0 %v845_v9  ;;  %461 = vmatprep.subr.bf16.mxu1 %v847_v10  ;;  %v867_v23 = vld [vmem:[%s1144_s0 + $0xa0] ss:$16 sps:$4 sm:$0xff]   ;;  %v868_v24 = vld [vmem:[%s1144_s0 + $0xa8] ss:$16 sps:$4 sm:$0xff]   ;;  %v869_v25 = vld [vmem:[%s1144_s0 + $0xc4] ss:$16 sps:$4 sm:$0xff]  }
   0xf   : > { %v871_v26 = vld [vmem:[%s1144_s0 + $0xcc] ss:$16 sps:$4 sm:$0xff]   ;;  %v873_v27 = vld [vmem:[%s1144_s0 + $0xc0] ss:$16 sps:$4 sm:$0xff]   ;;  %v874_v28 = vld [vmem:[%s1144_s0 + $0xc8] ss:$16 sps:$4 sm:$0xff]  }
  0x10   : > { %v875_v29 = vld [vmem:[%s1144_s0 + $0xe4] ss:$16 sps:$4 sm:$0xff]   ;;  %v877_v30 = vld [vmem:[%s1144_s0 + $0xec] ss:$16 sps:$4 sm:$0xff]   ;;  %v879_v31 = vld [vmem:[%s1144_s0 + $0xe0] ss:$16 sps:$4 sm:$0xff]  }
  0x11   : > { %419 = vmatpush1.bf16.msra.mxu0 %v849_v11  ;;  %462 = vmatpush1.bf16.msra.mxu1 %v850_v12  ;;  %v880_v32 = vld [vmem:[%s1144_s0 + $0xe8] ss:$16 sps:$4 sm:$0xff]   ;;  %v881_v33 = vld [vmem:[%s1145_s1] sm:$0xff]   ;;  %vm506_vm0 = vcmask (%p500_p4), 7168   ;;  %v913_v42 = vmov (%p500_p4), 0.0  }
  0x12   : > { %420 = vmatprep.subr.bf16.mxu0 %v851_v13  ;;  %463 = vmatprep.subr.bf16.mxu1 %v853_v14  ;;  %507 = vst.msk [vmem:[#allocation2] sm:$0xff] (%p500_p4), %vm506_vm0, %v913_v42  ;;  %508 = vst.msk [vmem:[#allocation2 + $0x8] sm:$0xff] (%p500_p4), %vm506_vm0, %v913_v42 }
  0x13   : > { %509 = vst.msk [vmem:[#allocation3] sm:$0xff] (%p500_p4), %vm506_vm0, %v913_v42  ;;  %510 = vst.msk [vmem:[#allocation3 + $0x8] sm:$0xff] (%p500_p4), %vm506_vm0, %v913_v42 }
  0x15   : > { %421 = vmatpush1.bf16.msra.mxu0 %v855_v15  ;;  %464 = vmatpush1.bf16.msra.mxu1 %v856_v16 }
  0x16   : > { %422 = vmatprep.subr.bf16.mxu0 %v857_v17  ;;  %465 = vmatprep.subr.bf16.mxu1 %v859_v18 }
  0x19   : > { %423 = vmatpush1.bf16.msra.mxu0 %v861_v19  ;;  %466 = vmatpush1.bf16.msra.mxu1 %v862_v20 }
  0x1a   : > { %424 = vmatprep.subr.bf16.mxu0 %v863_v21  ;;  %467 = vmatprep.subr.bf16.mxu1 %v865_v22 }
  0x1d   : > { %425 = vmatpush1.bf16.msra.mxu0 %v867_v23  ;;  %468 = vmatpush1.bf16.msra.mxu1 %v868_v24 }
  0x1e   : > { %426 = vmatprep.subr.bf16.mxu0 %v869_v25  ;;  %469 = vmatprep.subr.bf16.mxu1 %v871_v26 }
  0x21   : > { %427 = vmatpush1.bf16.msra.mxu0 %v873_v27  ;;  %470 = vmatpush1.bf16.msra.mxu1 %v874_v28 }
  0x22   : > { %428 = vmatprep.subr.bf16.mxu0 %v875_v29  ;;  %471 = vmatprep.subr.bf16.mxu1 %v877_v30 }
  0x25   : > { %429 = vmatpush1.bf16.msra.mxu0 %v879_v31  ;;  %472 = vmatpush1.bf16.msra.mxu1 %v880_v32 }
  0x28   : > { %447 = vmatmul.mubr.bf16.vlgmr.msra.gmra.mrb[0].mxu0 %v881_v33  ;;  %490 = vmatmul.mubr.bf16.vlgmr.msra.gmra.mrb[0].mxu1 %v881_v33 }
  0xf8   : > { %505 = sbr.rel (!%p500_p4) target bundleno = 255 (0xff), region = 40 }
  0xfb   : > { %v1060_v34 = vpop.f32.mrb[0].mxu0  ;;  %v1062_v35 = vpop.f32.mrb[0].mxu1 }
  0xfc   : > { %v1064_v36 = vpop.f32.mrb[1].mxu0  ;;  %v1066_v37 = vpop.f32.mrb[1].mxu1 }
  0xfd   : > { %v1068_v38 = vpop.f32.mrb[2].mxu0  ;;  %v1070_v39 = vpop.f32.mrb[2].mxu1 }
  0xfe   : > { %v1072_v40 = vpop.f32.mrb[3].mxu0  ;;  %v1074_v41 = vpop.f32.mrb[3].mxu1 }
  0xff PF: > { %p789_p5 = scmp.ne.s32.totalorder %s902_s15, 0 }
 0x100   : > { %v533_v43 = vmul.f32 (!%p789_p5), %v1060_v34, %v1060_v34  ;;  %v534_v44 = vmul.f32 (!%p789_p5), %v1064_v36, %v1064_v36  ;;  %v535_v45 = vmul.f32 (!%p789_p5), %v1062_v35, %v1062_v35  ;;  %v516_v46 = vadd.f32 (!%p789_p5), %v1064_v36, %v1060_v34  ;;  %v514_v63 = vld [vmem:[#allocation2] sm:$0xff] (!%p789_p5)  ;;  %v531_v0 = vld [vmem:[#allocation3] sm:$0xff] (!%p789_p5)  ;;  %v515_v5 = vld [vmem:[#allocation2 + $0x8] sm:$0xff] (!%p789_p5) }
 0x101   : > { %513 = sbr.rel (%p789_p5) target bundleno = 413 (0x19d), region = 44  ;;  %v537_v47 = vmul.f32 (!%p789_p5), %v1068_v38, %v1068_v38  ;;  %v538_v48 = vmul.f32 (!%p789_p5), %v1072_v40, %v1072_v40  ;;  %v539_v49 = vmul.f32 (!%p789_p5), %v1070_v39, %v1070_v39  ;;  %v536_v50 = vmul.f32 (!%p789_p5), %v1066_v37, %v1066_v37  ;;  %v532_v6 = vld [vmem:[#allocation3 + $0x8] sm:$0xff] (!%p789_p5) }
 0x102   : > { %v541_v51 = vadd.f32 (!%p789_p5), %v534_v44, %v533_v43  ;;  %v521_v52 = vadd.f32 (!%p789_p5), %v1072_v40, %v1068_v38  ;;  %v517_v53 = vadd.f32 (!%p789_p5), %v516_v46, %v1062_v35  ;;  %v540_v56 = vmul.f32 (!%p789_p5), %v1074_v41, %v1074_v41 }
 0x103   : > { %v546_v54 = vadd.f32 (!%p789_p5), %v538_v48, %v537_v47  ;;  %vm528_vm1 = vcmask (!%p789_p5), 7168  }
 0x104   : > { %v542_v55 = vadd.f32 (!%p789_p5), %v541_v51, %v535_v45  ;;  %v522_v57 = vadd.f32 (!%p789_p5), %v521_v52, %v1070_v39  ;;  %v518_v58 = vadd.f32 (!%p789_p5), %v517_v53, %v1066_v37 }
 0x105   : > { %v547_v59 = vadd.f32 (!%p789_p5), %v546_v54, %v539_v49 }
 0x106   : > { %v543_v60 = vadd.f32 (!%p789_p5), %v542_v55, %v536_v50  ;;  %519 = vadd.xlane.f32.xlu0 (!%p789_p5), %v518_v58  ;;  %v523_v61 = vadd.f32 (!%p789_p5), %v522_v57, %v1074_v41 }
 0x107   : > { %v548_v62 = vadd.f32 (!%p789_p5), %v547_v59, %v540_v56 }
 0x108   : > { %544 = vadd.xlane.f32.xlu1 %v543_v60 }
 0x10a   : > { %524 = vadd.xlane.f32.xlu0 %v523_v61 }
 0x10c   : > { %549 = vadd.xlane.f32.xlu1 %v548_v62 }
 0x193   : > { %v520_v1 = vpop.xlane.xlu0 %519 }
 0x194   : > { %v526_v3 = vadd.f32 %v520_v1, %v514_v63 }
 0x195   : > { %v545_v2 = vpop.xlane.xlu1 %544 }
 0x196   : > { %v551_v4 = vadd.f32 %v545_v2, %v531_v0  ;;  %529 = vst.msk [vmem:[#allocation2] sm:$0xff] %vm528_vm1, %v526_v3 }
 0x197   : > { %v525_v7 = vpop.xlane.xlu0 %524 }
 0x198   : > { %553 = vst.msk [vmem:[#allocation3] sm:$0xff] %vm528_vm1, %v551_v4  ;;  %v527_v9 = vadd.f32 %v525_v7, %v515_v5 }
 0x199   : > { %v550_v8 = vpop.xlane.xlu1 %549 }
 0x19a   : > { %v552_v10 = vadd.f32 %v550_v8, %v532_v6  ;;  %530 = vst.msk [vmem:[#allocation2 + $0x8] sm:$0xff] %vm528_vm1, %v527_v9 }
 0x19c   : > { %554 = vst.msk [vmem:[#allocation3 + $0x8] sm:$0xff] %vm528_vm1, %v552_v10 }
 0x19d PF: > { %p555_p6 = scmp.eq.s32.totalorder %s902_s15, 1 }
 0x19e   : > { %v560_v11 = vld [vmem:[#allocation2] sm:$0xff] (%p555_p6)  ;;  %v573_v26 = vld [vmem:[%s1146_s2 + $0x8] sm:$0xff] (%p555_p6)  ;;  %vm580_vm2 = vcmask (%p555_p6), 7168  }
 0x19f   : > { %559 = sbr.rel (!%p555_p6) target bundleno = 444 (0x1bc), region = 48  ;;  %v564_v12 = vld [vmem:[#allocation3] sm:$0xff] (%p555_p6)  ;;  %v562_v13 = vmul.f32 (%p555_p6), 0.0025510204, %v560_v11  ;;  %v572_v25 = vld [vmem:[%s1146_s2] sm:$0xff] (%p555_p6)  ;;  %v584_v33 = vld [vmem:[%s1147_s3 + $0x8] sm:$0xff] (%p555_p6) }
 0x1a0   : > { %v566_v14 = vmul.f32 (%p555_p6), 0.0025510204, %v564_v12  ;;  %v583_v31 = vld [vmem:[%s1147_s3] sm:$0xff] (%p555_p6) }
 0x1a1   : > { %v561_v15 = vld [vmem:[#allocation2 + $0x8] sm:$0xff] (%p555_p6)  ;;  %v568_v19 = vmul.f32 (%p555_p6), %v562_v13, %v562_v13 }
 0x1a2   : > { %v563_v17 = vmul.f32 (%p555_p6), 0.0025510204, %v561_v15 }
 0x1a3   : > { %v565_v16 = vld [vmem:[#allocation3 + $0x8] sm:$0xff] (%p555_p6)  ;;  %v570_v21 = vsub.f32 (%p555_p6), %v566_v14, %v568_v19 }
 0x1a4   : > { %v567_v18 = vmul.f32 (%p555_p6), 0.0025510204, %v565_v16  ;;  %v569_v20 = vmul.f32 (%p555_p6), %v563_v17, %v563_v17 }
 0x1a5   : > { %v574_v23 = vadd.f32 (%p555_p6), 1e-05, %v570_v21 }
 0x1a6   : > { %v571_v22 = vsub.f32 %v567_v18, %v569_v20 }
 0x1a7   : > { %882 = vrsqrt.f32 %v574_v23 }
 0x1a8   : > { %v575_v24 = vadd.f32 1e-05, %v571_v22 }
 0x1aa   : > { %884 = vrsqrt.f32 %v575_v24 }
 0x1b1   : > { %v883_v27 = vpop.eup %882 }
 0x1b2   : > { %v578_v29 = vmul.f32 %v883_v27, %v572_v25 }
 0x1b4   : > { %v885_v28 = vpop.eup %884  ;;  %581 = vst.msk [vmem:[#allocation4] sm:$0xff] %vm580_vm2, %v578_v29  ;;  %v585_v32 = vmul.f32 %v578_v29, %v562_v13 }
 0x1b5   : > { %v579_v30 = vmul.f32 %v885_v28, %v573_v26 }
 0x1b6   : > { %v587_v43 = vsub.f32 %v583_v31, %v585_v32 }
 0x1b7   : > { %582 = vst.msk [vmem:[#allocation4 + $0x8] sm:$0xff] %vm580_vm2, %v579_v30  ;;  %v586_v42 = vmul.f32 %v579_v30, %v563_v17 }
 0x1b8   : > { %589 = vst.msk [vmem:[#allocation5] sm:$0xff] %vm580_vm2, %v587_v43 }
 0x1b9   : > { %v588_v44 = vsub.f32 %v584_v33, %v586_v42 }
 0x1bb   : > { %590 = vst.msk [vmem:[#allocation5 + $0x8] sm:$0xff] %vm580_vm2, %v588_v44 }
 0x1bc PF: > { %p791_p7 = scmp.ne.s32.totalorder %s902_s15, 1 }
 0x1bd   : > { %v594_v46 = vld [vmem:[#allocation4] sm:$0xff] (!%p791_p7)  ;;  %v914_v47 = vmov (!%p791_p7), 0  }
 0x1be   : > { %593 = sbr.rel (%p791_p7) target bundleno = 592 (0x250), region = 52  ;;  %887 = vset.pattern.permute.xlu1 (!%p791_p7), %v914_v47  ;;  %886 = vset.pattern.permute.xlu0 (!%p791_p7), %v914_v47  ;;  %v595_v49 = vld [vmem:[#allocation4 + $0x8] sm:$0xff] (!%p791_p7) }
 0x1bf   : > { %v614_v45 = vld [vmem:[#allocation5] sm:$0xff] (!%p791_p7)  ;;  %598 = vperm.xlu0 (!%p791_p7), %886, %v594_v46  }
 0x1c0   : > { %618 = vperm.xlu1 (!%p791_p7), %887, %v614_v45  }
 0x1c2   : > { %v615_v48 = vld [vmem:[#allocation5 + $0x8] sm:$0xff] (!%p791_p7) }
 0x1c3   : > { %603 = vperm.xlu0 (!%p791_p7), %886, %v595_v49  }
 0x1c4   : > { %623 = vperm.xlu1 (!%p791_p7), %887, %v615_v48  }
 0x23e   : > { %v599_v50 = vpop.permute.xlu0 %598 }
 0x23f   : > { %v619_v51 = vpop.permute.xlu1 %618  ;;  %v606_v52 = vmul.f32 %v599_v50, %v1060_v34  ;;  %v607_v53 = vmul.f32 %v599_v50, %v1064_v36  ;;  %v608_v54 = vmul.f32 %v599_v50, %v1062_v35  ;;  %v609_v55 = vmul.f32 %v599_v50, %v1066_v37 }
 0x241   : > { %v626_v56 = vadd.f32 %v619_v51, %v606_v52  ;;  %v627_v57 = vadd.f32 %v619_v51, %v607_v53  ;;  %v628_v58 = vadd.f32 %v619_v51, %v608_v54  ;;  %v629_v59 = vadd.f32 %v619_v51, %v609_v55 }
 0x242   : > { %v604_v60 = vpop.permute.xlu0 %603 }
 0x243   : > { %vm634_vm3 = vcmp.gt.f32.partialorder %v626_v56, 0.0  ;;  %vm635_vm4 = vcmp.gt.f32.partialorder %v627_v57, 0.0  ;;  %vm636_vm5 = vcmp.gt.f32.partialorder %v628_v58, 0.0  ;;  %vm637_vm6 = vcmp.gt.f32.partialorder %v629_v59, 0.0  ;;  %v624_v36 = vpop.permute.xlu1 %623 }
 0x244   : > { %v642_v61 = vmul.f32 0.2, %v626_v56  ;;  %v643_v62 = vmul.f32 0.2, %v627_v57  ;;  %v644_v63 = vmul.f32 0.2, %v628_v58  ;;  %v610_v34 = vmul.f32 %v604_v60, %v1068_v38 }
 0x245   : > { %v645_v0 = vmul.f32 0.2, %v629_v59  ;;  %v611_v35 = vmul.f32 %v604_v60, %v1072_v40  ;;  %v612_v37 = vmul.f32 %v604_v60, %v1070_v39  ;;  %v613_v1 = vmul.f32 %v604_v60, %v1074_v41 }
 0x246   : > { %v650_v2 = vsel %vm634_vm3, %v626_v56, %v642_v61  ;;  %v651_v3 = vsel %vm635_vm4, %v627_v57, %v643_v62  ;;  %v652_v4 = vsel %vm636_vm5, %v628_v58, %v644_v63  ;;  %v630_v5 = vadd.f32 %v624_v36, %v610_v34 }
 0x247   : > { %v653_v6 = vsel %vm637_vm6, %v629_v59, %v645_v0  ;;  %v802_v7 = vpack.c.bf16 %v651_v3, %v650_v2  ;;  %v631_v8 = vadd.f32 %v624_v36, %v611_v35  ;;  %v632_v9 = vadd.f32 %v624_v36, %v612_v37 }
 0x248   : > { %v803_v10 = vpack.c.bf16 %v653_v6, %v652_v4  ;;  %v633_v11 = vadd.f32 %v624_v36, %v613_v1  ;;  %vm638_vm7 = vcmp.gt.f32.partialorder %v630_v5, 0.0  ;;  %v646_v38 = vmul.f32 0.2, %v630_v5 }
 0x249   : > { %682 = vst [vmem:[%s1148_s4] sm:$0xff] %v802_v7  ;;  %vm639_vm8 = vcmp.gt.f32.partialorder %v631_v8, 0.0  ;;  %vm640_vm9 = vcmp.gt.f32.partialorder %v632_v9, 0.0  ;;  %v647_v39 = vmul.f32 0.2, %v631_v8  ;;  %v648_v40 = vmul.f32 0.2, %v632_v9 }
 0x24a   : > { %683 = vst [vmem:[%s1148_s4 + $0x8] sm:$0xff] %v803_v10  ;;  %vm641_vm10 = vcmp.gt.f32.partialorder %v633_v11, 0.0  ;;  %v649_v41 = vmul.f32 0.2, %v633_v11  ;;  %v654_v12 = vsel %vm638_vm7, %v630_v5, %v646_v38 }
 0x24b   : > { %v655_v13 = vsel %vm639_vm8, %v631_v8, %v647_v39  ;;  %v656_v14 = vsel %vm640_vm9, %v632_v9, %v648_v40 }
 0x24c   : > { %v657_v15 = vsel %vm641_vm10, %v633_v11, %v649_v41  ;;  %v804_v16 = vpack.c.bf16 %v655_v13, %v654_v12 }
 0x24d   : > { %v805_v17 = vpack.c.bf16 %v657_v15, %v656_v14 }
 0x24e   : > { %684 = vst [vmem:[%s1148_s4 + $0x10] sm:$0xff] %v804_v16 }
 0x24f   : > { %685 = vst [vmem:[%s1148_s4 + $0x18] sm:$0xff] %v805_v17 }
 0x250 PF: > { %s14_s17 = sadd.s32 1, %s910_s17   ;;  %s1149_s15 = smov %s906_s16 }
 0x251   : > { %p11_p8 = scmp.ge.s32.totalorder %s14_s17, 4   ;;  %s1150_s16 = smov %s1152_s18 }
 0x253   :  { %13 = sbr.rel (!%p11_p8) target bundleno = 2 (0x2), region = 82 }

// kernel: encoder_forward.6
= control target key start
LH: loop header
LB: loop body
LE: loop exit
PB: predicated region body
PF: predicated region fallthrough
CT: control target
= control target key end

     0   :  { %s894_s15 = smov 0   ;;  %s896_s16 = smov 0   ;;  %s1057_s0 = inlined_call_operand.vmem [shape: bf16[256,128], index: 0, kind: input, shape index: {}]   ;;  %s1058_s1 = inlined_call_operand.vmem [shape: bf16[32,256], index: 1, kind: input, shape index: {}]   ;;  %s1059_s2 = inlined_call_operand.vmem [shape: f32[32,1], index: 2, kind: input, shape index: {}]   ;;  %s1060_s3 = inlined_call_operand.vmem [shape: f32[32,1], index: 3, kind: input, shape index: {}]   ;;  %s1061_s4 = inlined_call_operand.vmem [shape: bf16[32,128], index: 4, kind: output, shape index: {}]  }
   0x1   :  { %s898_s17 = smov 0  }
   0x2 LB: > { %s26_s18 = sadd.s32 1, %s861_s16  ;;  %p692_p0 = scmp.ge.s32.totalorder %s865_s17, 1  ;;  %s865_s17 = sphi %s898_s17, %s14_s17   ;;  %s861_s16 = sphi %s896_s16, %s1063_s16   ;;  %s857_s15 = sphi %s894_s15, %s1062_s15  }
   0x3   : > { %p28_p1 = scmp.ge.s32.totalorder %s26_s18, 2  ;;  %p173_p2 = scmp.lt.s32.totalorder %s865_s17, 3 }
   0x5   : > { %s1065_s18 = smov (%p28_p1, %s26_s18), 0  ;;  %p174_p3 = pnand %p692_p0, %p173_p2 }
   0x6   : > { %v811_v0 = vld [vmem:[%s1057_s0 + $0x40] sm:$0xff] (!%p174_p3)   ;;  %v813_v2 = vld [vmem:[%s1057_s0 + $0x48] sm:$0xff] (!%p174_p3)   ;;  %v815_v4 = vld [vmem:[%s1057_s0 + $0x50] sm:$0xff] (!%p174_p3)   ;;  %p407_p4 = scmp.eq.s32.totalorder (!%p174_p3), %s857_s15, 0 }
   0x7   : > { %177 = sbr.rel (%p174_p3) target bundleno = 596 (0x254), region = 36  ;;  %v812_v1 = vld [vmem:[%s1057_s0] sm:$0xff] (!%p174_p3)   ;;  %741 = vmatprep.subr.bf16.mxu0 (!%p174_p3), %v811_v0  ;;  %769 = vmatprep.subr.bf16.mxu1 (!%p174_p3), %v811_v0  ;;  %v814_v3 = vld [vmem:[%s1057_s0 + $0x8] sm:$0xff] (!%p174_p3)   ;;  %v816_v5 = vld [vmem:[%s1057_s0 + $0x10] sm:$0xff] (!%p174_p3)  }
   0x8   : > { %742 = vmatpush3.bf16.msra.mxu0 (!%p174_p3), %v812_v1  ;;  %777 = vmatpush3.bf16.msra.mxu1 (!%p174_p3), %v812_v1  ;;  %v817_v6 = vld [vmem:[%s1057_s0 + $0x58] sm:$0xff] (!%p174_p3)   ;;  %v819_v8 = vld [vmem:[%s1057_s0 + $0x60] sm:$0xff] (!%p174_p3)   ;;  %v821_v10 = vld [vmem:[%s1057_s0 + $0x68] sm:$0xff] (!%p174_p3)  }
   0x9   : > { %743 = vmatprep.subr.bf16.mxu0 (!%p174_p3), %v813_v2  ;;  %770 = vmatprep.subr.bf16.mxu1 (!%p174_p3), %v813_v2  ;;  %v818_v7 = vld [vmem:[%s1057_s0 + $0x18] sm:$0xff] (!%p174_p3)   ;;  %v820_v9 = vld [vmem:[%s1057_s0 + $0x20] sm:$0xff] (!%p174_p3)   ;;  %v822_v13 = vld [vmem:[%s1057_s0 + $0x28] sm:$0xff] (!%p174_p3)  }
   0xa   : > { %v829_v11 = vld [vmem:[%s1058_s1 + $0x4] ss:$8 sps:$4 sm:$0xff] (!%p174_p3)   ;;  %v832_v12 = vld [vmem:[%s1058_s1 + $0x14] ss:$8 sps:$4 sm:$0xff] (!%p174_p3)   ;;  %v827_v18 = vld [vmem:[%s1058_s1] ss:$8 sps:$4 sm:$0xff] (!%p174_p3)  }
   0xb   : > { %v823_v14 = vld [vmem:[%s1057_s0 + $0x70] sm:$0xff] (!%p174_p3)   ;;  %390 = vmatprep.mubr.bf16.mxu0 (!%p174_p3), %v829_v11  ;;  %398 = vmatprep.mubr.bf16.mxu1 (!%p174_p3), %v832_v12  ;;  %v825_v16 = vld [vmem:[%s1057_s0 + $0x78] sm:$0xff] (!%p174_p3)  }
   0xc   : > { %744 = vmatpush3.bf16.msra.mxu0 (!%p174_p3), %v814_v3  ;;  %778 = vmatpush3.bf16.msra.mxu1 (!%p174_p3), %v814_v3  ;;  %v824_v15 = vld [vmem:[%s1057_s0 + $0x30] sm:$0xff] (!%p174_p3)   ;;  %v826_v17 = vld [vmem:[%s1057_s0 + $0x38] sm:$0xff] (!%p174_p3)  }
   0xd   : > { %745 = vmatprep.subr.bf16.mxu0 (!%p174_p3), %v815_v4  ;;  %771 = vmatprep.subr.bf16.mxu1 (!%p174_p3), %v815_v4  ;;  %v830_v19 = vld [vmem:[%s1058_s1 + $0x10] ss:$8 sps:$4 sm:$0xff] (!%p174_p3)  }
   0xe   : > { %vm413_vm0 = vcmask (%p407_p4), 7168   ;;  %v867_v32 = vmov (%p407_p4), 0.0  }
   0xf   : > { %414 = vst.msk [vmem:[#allocation2] sm:$0xff] (%p407_p4), %vm413_vm0, %v867_v32  ;;  %415 = vst.msk [vmem:[#allocation2 + $0x8] sm:$0xff] (%p407_p4), %vm413_vm0, %v867_v32 }
  0x10   : > { %746 = vmatpush3.bf16.msra.mxu0 %v816_v5  ;;  %779 = vmatpush3.bf16.msra.mxu1 %v816_v5  ;;  %416 = vst.msk [vmem:[#allocation2 + $0x10] sm:$0xff] (%p407_p4), %vm413_vm0, %v867_v32  ;;  %417 = vst.msk [vmem:[#allocation2 + $0x18] sm:$0xff] (%p407_p4), %vm413_vm0, %v867_v32 }
  0x11   : > { %747 = vmatprep.subr.bf16.mxu0 %v817_v6  ;;  %772 = vmatprep.subr.bf16.mxu1 %v817_v6  ;;  %418 = vst.msk [vmem:[#allocation3] sm:$0xff] (%p407_p4), %vm413_vm0, %v867_v32  ;;  %419 = vst.msk [vmem:[#allocation3 + $0x8] sm:$0xff] (%p407_p4), %vm413_vm0, %v867_v32 }
  0x12   : > { %420 = vst.msk [vmem:[#allocation3 + $0x10] sm:$0xff] (%p407_p4), %vm413_vm0, %v867_v32  ;;  %421 = vst.msk [vmem:[#allocation3 + $0x18] sm:$0xff] (%p407_p4), %vm413_vm0, %v867_v32 }
  0x14   : > { %748 = vmatpush3.bf16.msra.mxu0 %v818_v7  ;;  %780 = vmatpush3.bf16.msra.mxu1 %v818_v7 }
  0x15   : > { %749 = vmatprep.subr.bf16.mxu0 %v819_v8  ;;  %773 = vmatprep.subr.bf16.mxu1 %v819_v8 }
  0x18   : > { %750 = vmatpush3.bf16.msra.mxu0 %v820_v9  ;;  %781 = vmatpush3.bf16.msra.mxu1 %v820_v9 }
  0x19   : > { %751 = vmatprep.subr.bf16.mxu0 %v821_v10  ;;  %774 = vmatprep.subr.bf16.mxu1 %v821_v10 }
  0x1c   : > { %752 = vmatpush3.bf16.msra.mxu0 %v822_v13  ;;  %782 = vmatpush3.bf16.msra.mxu1 %v822_v13 }
  0x1d   : > { %753 = vmatprep.subr.bf16.mxu0 %v823_v14  ;;  %775 = vmatprep.subr.bf16.mxu1 %v823_v14 }
  0x20   : > { %754 = vmatpush3.bf16.msra.mxu0 %v824_v15  ;;  %783 = vmatpush3.bf16.msra.mxu1 %v824_v15 }
  0x21   : > { %755 = vmatprep.subr.bf16.mxu0 %v825_v16  ;;  %776 = vmatprep.subr.bf16.mxu1 %v825_v16 }
  0x24   : > { %756 = vmatpush3.bf16.msra.mxu0 %v826_v17  ;;  %784 = vmatpush3.bf16.msra.mxu1 %v826_v17 }
  0x27   : > { %391 = vmatmul.mubr.bf16.vlgmr.msra.gmra.mrb[0].mxu0 %v827_v18  ;;  %399 = vmatmul.mubr.bf16.vlgmr.msra.gmra.mrb[0].mxu1 %v830_v19 }
  0xf8   : > { %412 = sbr.rel (!%p407_p4) target bundleno = 255 (0xff), region = 40 }
  0xfa   : > { %v757_v20 = vpop.f32.mrb[0].mxu0  ;;  %v763_v21 = vpop.f32.mrb[0].mxu1 }
  0xfb   : > { %v758_v22 = vpop.f32.mrb[1].mxu0  ;;  %v764_v23 = vpop.f32.mrb[1].mxu1 }
  0xfc   : > { %v975_v24 = vadd.f32 %v758_v22, %v757_v20  ;;  %v977_v25 = vadd.f32 %v764_v23, %v763_v21  ;;  %v760_v26 = vpop.f32.mrb[2].mxu0  ;;  %v766_v27 = vpop.f32.mrb[2].mxu1 }
  0xfd   : > { %v761_v28 = vpop.f32.mrb[3].mxu0  ;;  %v767_v29 = vpop.f32.mrb[3].mxu1 }
  0xfe   : > { %v979_v30 = vadd.f32 %v761_v28, %v760_v26  ;;  %v981_v31 = vadd.f32 %v767_v29, %v766_v27 }
  0xff PF: > { %p714_p5 = scmp.ne.s32.totalorder %s857_s15, 0 }
 0x100   : > { %433 = vadd.xlane.f32.xlu1 (!%p714_p5), %v977_v25  ;;  %429 = vadd.xlane.f32.xlu0 (!%p714_p5), %v975_v24  ;;  %v451_v33 = vmul.f32 (!%p714_p5), %v979_v30, %v979_v30  ;;  %v450_v34 = vmul.f32 (!%p714_p5), %v975_v24, %v975_v24  ;;  %v453_v35 = vmul.f32 (!%p714_p5), %v981_v31, %v981_v31  ;;  %v427_v37 = vld [vmem:[#allocation2 + $0x10] sm:$0xff] (!%p714_p5)  ;;  %v425_v38 = vld [vmem:[#allocation2] sm:$0xff] (!%p714_p5)  ;;  %vm441_vm1 = vcmask (!%p714_p5), 7168   ;;  %v428_v43 = vld [vmem:[#allocation2 + $0x18] sm:$0xff] (!%p714_p5) }
 0x101   : > { %424 = sbr.rel (%p714_p5) target bundleno = 413 (0x19d), region = 44  ;;  %v452_v36 = vmul.f32 (!%p714_p5), %v977_v25, %v977_v25  ;;  %v426_v44 = vld [vmem:[#allocation2 + $0x8] sm:$0xff] (!%p714_p5)  ;;  %v446_v50 = vld [vmem:[#allocation3] sm:$0xff] (!%p714_p5)  ;;  %v449_v55 = vld [vmem:[#allocation3 + $0x18] sm:$0xff] (!%p714_p5) }
 0x102   : > { %v447_v49 = vld [vmem:[#allocation3 + $0x8] sm:$0xff] (!%p714_p5)  ;;  %v448_v56 = vld [vmem:[#allocation3 + $0x10] sm:$0xff] (!%p714_p5) }
 0x104   : > { %435 = vadd.xlane.f32.xlu1 (!%p714_p5), %v981_v31  ;;  %431 = vadd.xlane.f32.xlu0 (!%p714_p5), %v979_v30 }
 0x108   : > { %456 = vadd.xlane.f32.xlu1 %v451_v33  ;;  %454 = vadd.xlane.f32.xlu0 %v450_v34 }
 0x10c   : > { %460 = vadd.xlane.f32.xlu1 %v453_v35  ;;  %458 = vadd.xlane.f32.xlu0 %v452_v36 }
 0x18d   : > { %v434_v39 = vpop.xlane.xlu1 %433  ;;  %v430_v40 = vpop.xlane.xlu0 %429 }
 0x18e   : > { %v439_v41 = vadd.f32 %v434_v39, %v427_v37  ;;  %v437_v42 = vadd.f32 %v430_v40, %v425_v38 }
 0x190   : > { %444 = vst.msk [vmem:[#allocation2 + $0x10] sm:$0xff] %vm441_vm1, %v439_v41  ;;  %442 = vst.msk [vmem:[#allocation2] sm:$0xff] %vm441_vm1, %v437_v42 }
 0x191   : > { %v436_v45 = vpop.xlane.xlu1 %435  ;;  %v432_v46 = vpop.xlane.xlu0 %431 }
 0x192   : > { %v440_v47 = vadd.f32 %v436_v45, %v428_v43  ;;  %v438_v48 = vadd.f32 %v432_v46, %v426_v44 }
 0x194   : > { %445 = vst.msk [vmem:[#allocation2 + $0x18] sm:$0xff] %vm441_vm1, %v440_v47  ;;  %443 = vst.msk [vmem:[#allocation2 + $0x8] sm:$0xff] %vm441_vm1, %v438_v48 }
 0x195   : > { %v457_v51 = vpop.xlane.xlu1 %456  ;;  %v455_v52 = vpop.xlane.xlu0 %454 }
 0x196   : > { %v463_v53 = vadd.f32 %v457_v51, %v447_v49  ;;  %v462_v54 = vadd.f32 %v455_v52, %v446_v50 }
 0x198   : > { %467 = vst.msk [vmem:[#allocation3 + $0x8] sm:$0xff] %vm441_vm1, %v463_v53  ;;  %466 = vst.msk [vmem:[#allocation3] sm:$0xff] %vm441_vm1, %v462_v54 }
 0x199   : > { %v461_v57 = vpop.xlane.xlu1 %460  ;;  %v459_v58 = vpop.xlane.xlu0 %458 }
 0x19a   : > { %v465_v59 = vadd.f32 %v461_v57, %v449_v55  ;;  %v464_v60 = vadd.f32 %v459_v58, %v448_v56 }
 0x19c   : > { %469 = vst.msk [vmem:[#allocation3 + $0x18] sm:$0xff] %vm441_vm1, %v465_v59  ;;  %468 = vst.msk [vmem:[#allocation3 + $0x10] sm:$0xff] %vm441_vm1, %v464_v60 }
 0x19d PF: > { %p470_p6 = scmp.eq.s32.totalorder %s857_s15, 1 }
 0x19e   : > { %v475_v61 = vld [vmem:[#allocation2] sm:$0xff] (%p470_p6)  ;;  %v476_v1 = vld [vmem:[#allocation2 + $0x8] sm:$0xff] (%p470_p6)  ;;  %v477_v5 = vld [vmem:[#allocation2 + $0x10] sm:$0xff] (%p470_p6)  ;;  %vm515_vm2 = vcmask (%p470_p6), 7168  }
 0x19f   : > { %474 = sbr.rel (!%p470_p6) target bundleno = 445 (0x1bd), region = 48  ;;  %v483_v62 = vld [vmem:[#allocation3] sm:$0xff] (%p470_p6)  ;;  %v479_v63 = vmul.f32 (%p470_p6), 0.010204081, %v475_v61  ;;  %v484_v2 = vld [vmem:[#allocation3 + $0x8] sm:$0xff] (%p470_p6)  ;;  %v478_v9 = vld [vmem:[#allocation2 + $0x18] sm:$0xff] (%p470_p6) }
 0x1a0   : > { %v487_v0 = vmul.f32 (%p470_p6), 0.010204081, %v483_v62  ;;  %v480_v3 = vmul.f32 (%p470_p6), 0.010204081, %v476_v1  ;;  %v488_v4 = vmul.f32 (%p470_p6), 0.010204081, %v484_v2 }
 0x1a1   : > { %v491_v6 = vmul.f32 (%p470_p6), %v479_v63, %v479_v63  ;;  %v481_v7 = vmul.f32 (%p470_p6), 0.010204081, %v477_v5  ;;  %v482_v12 = vmul.f32 (%p470_p6), 0.010204081, %v478_v9  ;;  %v499_v27 = vld [vmem:[%s1059_s2] sm:$0xff] (%p470_p6)  ;;  %v500_v28 = vld [vmem:[%s1059_s2 + $0x8] sm:$0xff] (%p470_p6) }
 0x1a2   : > { %v492_v10 = vmul.f32 (%p470_p6), %v480_v3, %v480_v3  ;;  %v501_v32 = vld [vmem:[%s1059_s2 + $0x10] sm:$0xff] (%p470_p6)  ;;  %v502_v35 = vld [vmem:[%s1059_s2 + $0x18] sm:$0xff] (%p470_p6)  ;;  %v520_v38 = vld [vmem:[%s1060_s3] sm:$0xff] (%p470_p6) }
 0x1a3   : > { %v485_v8 = vld [vmem:[#allocation3 + $0x10] sm:$0xff] (%p470_p6)  ;;  %v486_v13 = vld [vmem:[#allocation3 + $0x18] sm:$0xff] (%p470_p6)  ;;  %v495_v14 = vsub.f32 (%p470_p6), %v487_v0, %v491_v6  ;;  %v493_v15 = vmul.f32 (%p470_p6), %v481_v7, %v481_v7  ;;  %v494_v18 = vmul.f32 (%p470_p6), %v482_v12, %v482_v12  ;;  %v521_v42 = vld [vmem:[%s1060_s3 + $0x8] sm:$0xff] (%p470_p6) }
 0x1a4   : > { %v489_v11 = vmul.f32 (%p470_p6), 0.010204081, %v485_v8  ;;  %v490_v16 = vmul.f32 (%p470_p6), 0.010204081, %v486_v13  ;;  %v496_v17 = vsub.f32 (%p470_p6), %v488_v4, %v492_v10  ;;  %v522_v45 = vld [vmem:[%s1060_s3 + $0x10] sm:$0xff] (%p470_p6)  ;;  %v523_v48 = vld [vmem:[%s1060_s3 + $0x18] sm:$0xff] (%p470_p6) }
 0x1a5   : > { %v503_v19 = vadd.f32 (%p470_p6), 1e-05, %v495_v14 }
 0x1a6   : > { %v497_v20 = vsub.f32 %v489_v11, %v493_v15  ;;  %v504_v21 = vadd.f32 1e-05, %v496_v17  ;;  %v498_v22 = vsub.f32 %v490_v16, %v494_v18 }
 0x1a7   : > { %833 = vrsqrt.f32 %v503_v19 }
 0x1a8   : > { %v505_v23 = vadd.f32 1e-05, %v497_v20  ;;  %835 = vrsqrt.f32 %v504_v21  ;;  %v506_v26 = vadd.f32 1e-05, %v498_v22 }
 0x1aa   : > { %837 = vrsqrt.f32 %v505_v23 }
 0x1ab   : > { %839 = vrsqrt.f32 %v506_v26 }
 0x1b1   : > { %v834_v29 = vpop.eup %833 }
 0x1b2   : > { %v836_v33 = vpop.eup %835  ;;  %v511_v34 = vmul.f32 %v834_v29, %v499_v27 }
 0x1b3   : > { %v512_v37 = vmul.f32 %v836_v33, %v500_v28 }
 0x1b4   : > { %v838_v36 = vpop.eup %837  ;;  %516 = vst.msk [vmem:[#allocation4] sm:$0xff] %vm515_vm2, %v511_v34  ;;  %v524_v41 = vmul.f32 %v511_v34, %v479_v63 }
 0x1b5   : > { %v840_v39 = vpop.eup %839  ;;  %v513_v40 = vmul.f32 %v838_v36, %v501_v32  ;;  %517 = vst.msk [vmem:[#allocation4 + $0x8] sm:$0xff] %vm515_vm2, %v512_v37  ;;  %v525_v44 = vmul.f32 %v512_v37, %v480_v3 }
 0x1b6   : > { %v514_v43 = vmul.f32 %v840_v39, %v502_v35  ;;  %v528_v46 = vsub.f32 %v520_v38, %v524_v41 }
 0x1b7   : > { %518 = vst.msk [vmem:[#allocation4 + $0x10] sm:$0xff] %vm515_vm2, %v513_v40  ;;  %v526_v47 = vmul.f32 %v513_v40, %v481_v7  ;;  %v529_v49 = vsub.f32 %v521_v42, %v525_v44 }
 0x1b8   : > { %519 = vst.msk [vmem:[#allocation4 + $0x18] sm:$0xff] %vm515_vm2, %v514_v43  ;;  %v527_v50 = vmul.f32 %v514_v43, %v482_v12  ;;  %532 = vst.msk [vmem:[#allocation5] sm:$0xff] %vm515_vm2, %v528_v46 }
 0x1b9   : > { %v530_v51 = vsub.f32 %v522_v45, %v526_v47  ;;  %533 = vst.msk [vmem:[#allocation5 + $0x8] sm:$0xff] %vm515_vm2, %v529_v49 }
 0x1ba   : > { %v531_v52 = vsub.f32 %v523_v48, %v527_v50 }
 0x1bb   : > { %534 = vst.msk [vmem:[#allocation5 + $0x10] sm:$0xff] %vm515_vm2, %v530_v51 }
 0x1bc   : > { %535 = vst.msk [vmem:[#allocation5 + $0x18] sm:$0xff] %vm515_vm2, %v531_v52 }
 0x1bd PF: > { %p716_p7 = scmp.ne.s32.totalorder %s857_s15, 1 }
 0x1be   : > { %v541_v53 = vld [vmem:[#allocation4 + $0x10] sm:$0xff] (!%p716_p7)  ;;  %v539_v54 = vld [vmem:[#allocation4] sm:$0xff] (!%p716_p7)  ;;  %v868_v55 = vmov (!%p716_p7), 0   ;;  %v540_v57 = vld [vmem:[#allocation4 + $0x8] sm:$0xff] (!%p716_p7) }
 0x1bf   : > { %538 = sbr.rel (%p716_p7) target bundleno = 596 (0x254), region = 52  ;;  %842 = vset.pattern.permute.xlu1 (!%p716_p7), %v868_v55  ;;  %841 = vset.pattern.permute.xlu0 (!%p716_p7), %v868_v55  ;;  %v542_v56 = vld [vmem:[#allocation4 + $0x18] sm:$0xff] (!%p716_p7)  ;;  %v567_v59 = vld [vmem:[#allocation5] sm:$0xff] (!%p716_p7) }
 0x1c0   : > { %555 = vperm.xlu1 (!%p716_p7), %842, %v541_v53   ;;  %545 = vperm.xlu0 (!%p716_p7), %841, %v539_v54   ;;  %v568_v58 = vld [vmem:[#allocation5 + $0x8] sm:$0xff] (!%p716_p7) }
 0x1c2   : > { %v569_v61 = vld [vmem:[#allocation5 + $0x10] sm:$0xff] (!%p716_p7) }
 0x1c3   : > { %v570_v60 = vld [vmem:[#allocation5 + $0x18] sm:$0xff] (!%p716_p7) }
 0x1c4   : > { %560 = vperm.xlu1 (!%p716_p7), %842, %v542_v56   ;;  %550 = vperm.xlu0 (!%p716_p7), %841, %v540_v57  }
 0x1c8   : > { %578 = vperm.xlu1 %842, %v568_v58   ;;  %573 = vperm.xlu0 %841, %v567_v59  }
 0x1cc   : > { %588 = vperm.xlu1 %842, %v570_v60   ;;  %583 = vperm.xlu0 %841, %v569_v61  }
 0x23f   : > { %v556_v62 = vpop.permute.xlu1 %555  ;;  %v546_v63 = vpop.permute.xlu0 %545 }
 0x240   : > { %v563_v2 = vmul.f32 %v975_v24, %v546_v63  ;;  %v565_v8 = vmul.f32 %v977_v25, %v556_v62 }
 0x243   : > { %v561_v0 = vpop.permute.xlu1 %560  ;;  %v551_v1 = vpop.permute.xlu0 %550 }
 0x244   : > { %v564_v3 = vmul.f32 %v979_v30, %v551_v1  ;;  %v566_v9 = vmul.f32 %v981_v31, %v561_v0 }
 0x247   : > { %v579_v4 = vpop.permute.xlu1 %578  ;;  %v574_v5 = vpop.permute.xlu0 %573 }
 0x248   : > { %v592_v6 = vadd.f32 %v579_v4, %v564_v3  ;;  %v591_v7 = vadd.f32 %v574_v5, %v563_v2 }
 0x24a   : > { %vm596_vm3 = vcmp.gt.f32.partialorder %v592_v6, 0.0  ;;  %v600_v10 = vmul.f32 0.2, %v592_v6  ;;  %vm595_vm4 = vcmp.gt.f32.partialorder %v591_v7, 0.0  ;;  %v599_v11 = vmul.f32 0.2, %v591_v7 }
 0x24b   : > { %v589_v12 = vpop.permute.xlu1 %588  ;;  %v584_v13 = vpop.permute.xlu0 %583 }
 0x24c   : > { %v604_v14 = vsel %vm596_vm3, %v592_v6, %v600_v10  ;;  %v603_v15 = vsel %vm595_vm4, %v591_v7, %v599_v11  ;;  %v594_v16 = vadd.f32 %v589_v12, %v566_v9  ;;  %v593_v24 = vadd.f32 %v584_v13, %v565_v8 }
 0x24d   : > { %v733_v17 = vpack.c.bf16 %v604_v14, %v603_v15 }
 0x24e   : > { %vm598_vm5 = vcmp.gt.f32.partialorder %v594_v16, 0.0  ;;  %v602_v30 = vmul.f32 0.2, %v594_v16  ;;  %vm597_vm6 = vcmp.gt.f32.partialorder %v593_v24, 0.0  ;;  %v601_v18 = vmul.f32 0.2, %v593_v24 }
 0x24f   : > { %734 = vst [vmem:[%s1061_s4] sm:$0xff] %v733_v17  }
 0x250   : > { %v606_v25 = vsel %vm598_vm5, %v594_v16, %v602_v30  ;;  %v605_v31 = vsel %vm597_vm6, %v593_v24, %v601_v18 }
 0x251   : > { %v738_v19 = vpack.c.bf16 %v606_v25, %v605_v31 }
 0x253   : > { %740 = vst [vmem:[%s1061_s4 + $0x8] sm:$0xff] %v738_v19  }
 0x254 PF: > { %s14_s17 = sadd.s32 1, %s865_s17   ;;  %s1062_s15 = smov %s861_s16 }
 0x255   : > { %p11_p8 = scmp.ge.s32.totalorder %s14_s17, 4   ;;  %s1063_s16 = smov %s1065_s18 }
 0x257   :  { %13 = sbr.rel (!%p11_p8) target bundleno = 2 (0x2), region = 82 }

// kernel: encoder_forward.7
= control target key start
LH: loop header
LB: loop body
LE: loop exit
PB: predicated region body
PF: predicated region fallthrough
CT: control target
= control target key end

     0   :  { %s2490_s21 = smov 0   ;;  %s2492_s22 = smov 0   ;;  %s2983_s0 = inlined_call_operand.vmem [shape: bf16[1568,128], index: 0, kind: input, shape index: {}]   ;;  %s2984_s1 = inlined_call_operand.vmem [shape: bf16[32,1568], index: 1, kind: input, shape index: {}]   ;;  %s2985_s2 = inlined_call_operand.vmem [shape: f32[32,1], index: 2, kind: input, shape index: {}]   ;;  %s2986_s3 = inlined_call_operand.vmem [shape: f32[32,1], index: 3, kind: input, shape index: {}]   ;;  %s2987_s4 = inlined_call_operand.vmem [shape: f32[16,32], index: 4, kind: input, shape index: {}]   ;;  %s2988_s5 = inlined_call_operand.vmem [shape: f32[16,1], index: 5, kind: input, shape index: {}]   ;;  %s2989_s6 = inlined_call_operand.vmem [shape: f32[16,128], index: 6, kind: output, shape index: {}]  }
   0x1   :  { %s2494_s23 = smov 0  }
   0x2 LB: > { %s28_s24 = sadd.s32 1, %s2447_s22  ;;  %p1914_p0 = scmp.ge.s32.totalorder %s2451_s23, 1  ;;  %s2451_s23 = sphi %s2494_s23, %s16_s23   ;;  %s2447_s22 = sphi %s2492_s22, %s2991_s22   ;;  %s2443_s21 = sphi %s2490_s21, %s2990_s21  }
   0x3   : > { %p30_p1 = scmp.ge.s32.totalorder %s28_s24, 2  ;;  %p223_p2 = scmp.lt.s32.totalorder %s2451_s23, 3 }
   0x5   : > { %s2993_s24 = smov (%p30_p1, %s28_s24), 0  ;;  %p224_p3 = pnand %p1914_p0, %p223_p2 }
   0x6   : > { %v2283_v0 = vld [vmem:[%s2983_s0 + $0x40] sm:$0xff] (!%p224_p3)   ;;  %v2287_v4 = vld [vmem:[%s2983_s0 + $0x48] sm:$0xff] (!%p224_p3)   ;;  %v2291_v8 = vld [vmem:[%s2983_s0 + $0x50] sm:$0xff] (!%p224_p3)   ;;  %vm1202_vm0 = vcmask (!%p224_p3), 261120   ;;  %p1552_p4 = scmp.eq.s32.totalorder (!%p224_p3), %s2443_s21, 0 }
   0x7   : > { %227 = sbr.rel (%p224_p3) target bundleno = 896 (0x380), region = 44  ;;  %v2284_v1 = vld [vmem:[%s2983_s0 + $0xc0] sm:$0xff] (!%p224_p3)   ;;  %2052 = vmatprep.subr.bf16.mxu0 (!%p224_p3), %v2283_v0  ;;  %v2288_v5 = vld [vmem:[%s2983_s0 + $0xc8] sm:$0xff] (!%p224_p3)   ;;  %v2292_v9 = vld [vmem:[%s2983_s0 + $0xd0] sm:$0xff] (!%p224_p3)  }
   0x8   : > { %v2285_v2 = vld [vmem:[%s2983_s0] sm:$0xff] (!%p224_p3)   ;;  %2080 = vmatprep.subr.bf16.mxu1 (!%p224_p3), %v2284_v1  ;;  %v2289_v6 = vld [vmem:[%s2983_s0 + $0x8] sm:$0xff] (!%p224_p3)   ;;  %v2293_v10 = vld [vmem:[%s2983_s0 + $0x10] sm:$0xff] (!%p224_p3)  }
   0x9   : > { %v2286_v3 = vld [vmem:[%s2983_s0 + $0x80] sm:$0xff] (!%p224_p3)   ;;  %2053 = vmatpush3.bf16.msra.mxu0 (!%p224_p3), %v2285_v2  ;;  %v2290_v7 = vld [vmem:[%s2983_s0 + $0x88] sm:$0xff] (!%p224_p3)   ;;  %v2294_v11 = vld [vmem:[%s2983_s0 + $0x90] sm:$0xff] (!%p224_p3)  }
   0xa   : > { %2081 = vmatpush3.bf16.msra.mxu1 (!%p224_p3), %v2286_v3  ;;  %2054 = vmatprep.subr.bf16.mxu0 (!%p224_p3), %v2287_v4  ;;  %v2295_v12 = vld [vmem:[%s2983_s0 + $0x58] sm:$0xff] (!%p224_p3)   ;;  %v2299_v16 = vld [vmem:[%s2983_s0 + $0x60] sm:$0xff] (!%p224_p3)   ;;  %v2303_v20 = vld [vmem:[%s2983_s0 + $0x68] sm:$0xff] (!%p224_p3)  }
   0xb   : > { %2082 = vmatprep.subr.bf16.mxu1 (!%p224_p3), %v2288_v5  ;;  %v2296_v13 = vld [vmem:[%s2983_s0 + $0xd8] sm:$0xff] (!%p224_p3)   ;;  %v2300_v17 = vld [vmem:[%s2983_s0 + $0xe0] sm:$0xff] (!%p224_p3)   ;;  %v2304_v21 = vld [vmem:[%s2983_s0 + $0xe8] sm:$0xff] (!%p224_p3)  }
   0xc   : > { %v2297_v14 = vld [vmem:[%s2983_s0 + $0x18] sm:$0xff] (!%p224_p3)   ;;  %v2301_v18 = vld [vmem:[%s2983_s0 + $0x20] sm:$0xff] (!%p224_p3)   ;;  %v2305_v22 = vld [vmem:[%s2983_s0 + $0x28] sm:$0xff] (!%p224_p3)  }
   0xd   : > { %2055 = vmatpush3.bf16.msra.mxu0 (!%p224_p3), %v2289_v6  ;;  %v2298_v15 = vld [vmem:[%s2983_s0 + $0x98] sm:$0xff] (!%p224_p3)   ;;  %v2302_v19 = vld [vmem:[%s2983_s0 + $0xa0] sm:$0xff] (!%p224_p3)   ;;  %v2306_v23 = vld [vmem:[%s2983_s0 + $0xa8] sm:$0xff] (!%p224_p3)  }
   0xe   : > { %2083 = vmatpush3.bf16.msra.mxu1 %v2290_v7  ;;  %2056 = vmatprep.subr.bf16.mxu0 %v2291_v8  ;;  %v2307_v24 = vld [vmem:[%s2983_s0 + $0x70] sm:$0xff]   ;;  %v2311_v28 = vld [vmem:[%s2983_s0 + $0x78] sm:$0xff]   ;;  %v2320_v35 = vld [vmem:[%s2984_s1 + $0xc] ss:$52 sps:$4 sm:$0xff]   ;;  %vm1558_vm1 = vcmask (%p1552_p4), 7168  }
   0xf   : > { %2084 = vmatprep.subr.bf16.mxu1 %v2292_v9  ;;  %v2308_v25 = vld [vmem:[%s2983_s0 + $0xf0] sm:$0xff]   ;;  %v2312_v29 = vld [vmem:[%s2983_s0 + $0xf8] sm:$0xff]   ;;  %v2321_v36 = vld [vmem:[%s2983_s0 + $0x140] sm:$0xff]   ;;  %1290 = vmatprep.mubr.bf16.mxu1 %v2320_v35 }
  0x10   : > { %v2309_v26 = vld [vmem:[%s2983_s0 + $0x30] sm:$0xff]   ;;  %v2313_v30 = vld [vmem:[%s2983_s0 + $0x38] sm:$0xff]   ;;  %v2322_v37 = vld [vmem:[%s2983_s0 + $0x100] sm:$0xff]  }
  0x11   : > { %2057 = vmatpush3.bf16.msra.mxu0 %v2293_v10  ;;  %v2310_v27 = vld [vmem:[%s2983_s0 + $0xb0] sm:$0xff]   ;;  %v2314_v31 = vld [vmem:[%s2983_s0 + $0xb8] sm:$0xff]   ;;  %v2323_v38 = vld [vmem:[%s2983_s0 + $0x1c0] sm:$0xff]  }
  0x12   : > { %2085 = vmatpush3.bf16.msra.mxu1 %v2294_v11  ;;  %2058 = vmatprep.subr.bf16.mxu0 %v2295_v12  ;;  %v2315_v32 = vld [vmem:[%s2984_s1] ss:$52 sps:$4 sm:$0xff]   ;;  %v2317_v33 = vld [vmem:[%s2984_s1 + $0x4] ss:$52 sps:$4 sm:$0xff]   ;;  %v2318_v34 = vld [vmem:[%s2984_s1 + $0x8] ss:$52 sps:$4 sm:$0xff]  }
  0x13   : > { %2086 = vmatprep.subr.bf16.mxu1 %v2296_v13  ;;  %1241 = vmatprep.mubr.bf16.mxu0 %v2317_v33  ;;  %v2324_v39 = vld [vmem:[%s2983_s0 + $0x180] sm:$0xff]   ;;  %v2325_v40 = vld [vmem:[%s2983_s0 + $0x148] sm:$0xff]   ;;  %v2329_v44 = vld [vmem:[%s2983_s0 + $0x150] sm:$0xff]  }
  0x14   : > { %v2326_v41 = vld [vmem:[%s2983_s0 + $0x108] sm:$0xff]   ;;  %v2330_v45 = vld [vmem:[%s2983_s0 + $0x110] sm:$0xff]   ;;  %v2333_v48 = vld [vmem:[%s2983_s0 + $0x158] sm:$0xff]  }
  0x15   : > { %2059 = vmatpush3.bf16.msra.mxu0 %v2297_v14  ;;  %v2327_v42 = vld [vmem:[%s2983_s0 + $0x1c8] sm:$0xff]   ;;  %v2331_v46 = vld [vmem:[%s2983_s0 + $0x1d0] sm:$0xff]   ;;  %v2334_v49 = vld [vmem:[%s2983_s0 + $0x118] sm:$0xff]  }
  0x16   : > { %2087 = vmatpush3.bf16.msra.mxu1 %v2298_v15  ;;  %2060 = vmatprep.subr.bf16.mxu0 %v2299_v16  ;;  %v2328_v43 = vld [vmem:[%s2983_s0 + $0x188] sm:$0xff]   ;;  %v2332_v47 = vld [vmem:[%s2983_s0 + $0x190] sm:$0xff]   ;;  %v2335_v50 = vld [vmem:[%s2983_s0 + $0x1d8] sm:$0xff]  }
  0x17   : > { %2088 = vmatprep.subr.bf16.mxu1 %v2300_v17  ;;  %v2336_v51 = vld [vmem:[%s2983_s0 + $0x198] sm:$0xff]   ;;  %v2337_v52 = vld [vmem:[%s2983_s0 + $0x160] sm:$0xff]   ;;  %v2341_v56 = vld [vmem:[%s2983_s0 + $0x168] sm:$0xff]  }
  0x18   : > { %v2338_v53 = vld [vmem:[%s2983_s0 + $0x120] sm:$0xff]   ;;  %v2344_v58 = vld [vmem:[%s2984_s1 + $0x74] ss:$52 sps:$4 sm:$0xff]   ;;  %v2355_v4 = vld [vmem:[%s2983_s0 + $0x178] sm:$0xff]  }
  0x19   : > { %2061 = vmatpush3.bf16.msra.mxu0 %v2301_v18  ;;  %v2339_v54 = vld [vmem:[%s2983_s0 + $0x1e0] sm:$0xff]   ;;  %v2346_v59 = vld [vmem:[%s2983_s0 + $0x128] sm:$0xff]   ;;  %v2351_v0 = vld [vmem:[%s2983_s0 + $0x170] sm:$0xff]  }
  0x1a   : > { %2089 = vmatpush3.bf16.msra.mxu1 %v2302_v19  ;;  %2062 = vmatprep.subr.bf16.mxu0 %v2303_v20  ;;  %v2340_v55 = vld [vmem:[%s2983_s0 + $0x1a0] sm:$0xff]   ;;  %v2347_v60 = vld [vmem:[%s2984_s1 + $0x68] ss:$52 sps:$4 sm:$0xff]   ;;  %v2352_v1 = vld [vmem:[%s2983_s0 + $0x130] sm:$0xff]  }
  0x1b   : > { %2090 = vmatprep.subr.bf16.mxu1 %v2304_v21  ;;  %v2342_v57 = vld [vmem:[%s2984_s1 + $0x6c] ss:$52 sps:$4 sm:$0xff]   ;;  %v2348_v61 = vld [vmem:[%s2984_s1 + $0x70] ss:$52 sps:$4 sm:$0xff]   ;;  %v2356_v5 = vld [vmem:[%s2983_s0 + $0x138] sm:$0xff]  }
  0x1c   : > { %v2349_v62 = vld [vmem:[%s2983_s0 + $0x1e8] sm:$0xff]   ;;  %v2353_v2 = vld [vmem:[%s2983_s0 + $0x1f0] sm:$0xff]   ;;  %v2357_v6 = vld [vmem:[%s2983_s0 + $0x1f8] sm:$0xff]  }
  0x1d   : > { %2063 = vmatpush3.bf16.msra.mxu0 %v2305_v22  ;;  %v2350_v63 = vld [vmem:[%s2983_s0 + $0x1a8] sm:$0xff]   ;;  %v2354_v3 = vld [vmem:[%s2983_s0 + $0x1b0] sm:$0xff]   ;;  %v2361_v9 = vld [vmem:[%s2983_s0 + $0x1b8] sm:$0xff]  }
  0x1e   : > { %2091 = vmatpush3.bf16.msra.mxu1 %v2306_v23  ;;  %2064 = vmatprep.subr.bf16.mxu0 %v2307_v24  ;;  %v2358_v7 = vld [vmem:[%s2984_s1 + $0x10] ss:$52 sps:$4 sm:$0xff]   ;;  %v2360_v8 = vld [vmem:[%s2984_s1 + $0x14] ss:$52 sps:$4 sm:$0xff]   ;;  %v2363_v11 = vld [vmem:[%s2984_s1 + $0x18] ss:$52 sps:$4 sm:$0xff]  }
  0x1f   : > { %2092 = vmatprep.subr.bf16.mxu1 %v2308_v25  ;;  %v2362_v10 = vld [vmem:[%s2983_s0 + $0x240] sm:$0xff]   ;;  %v2365_v12 = vld [vmem:[%s2984_s1 + $0x1c] ss:$52 sps:$4 sm:$0xff]   ;;  %v2369_v16 = vld [vmem:[%s2983_s0 + $0x248] sm:$0xff]  }
  0x20   : > { %v2366_v13 = vld [vmem:[%s2983_s0 + $0x200] sm:$0xff]   ;;  %v2370_v17 = vld [vmem:[%s2983_s0 + $0x208] sm:$0xff]   ;;  %v2372_v19 = vld [vmem:[%s2984_s1 + $0x7c] ss:$52 sps:$4 sm:$0xff]  }
  0x21   : > { %2065 = vmatpush3.bf16.msra.mxu0 %v2309_v26  ;;  %v2367_v14 = vld [vmem:[%s2983_s0 + $0x2c0] sm:$0xff]   ;;  %v2371_v18 = vld [vmem:[%s2983_s0 + $0x2c8] sm:$0xff]   ;;  %v2376_v22 = vld [vmem:[%s2983_s0 + $0x250] sm:$0xff]  }
  0x22   : > { %2093 = vmatpush3.bf16.msra.mxu1 %v2310_v27  ;;  %2066 = vmatprep.subr.bf16.mxu0 %v2311_v28  ;;  %v2368_v15 = vld [vmem:[%s2983_s0 + $0x280] sm:$0xff]   ;;  %v2374_v20 = vld [vmem:[%s2983_s0 + $0x288] sm:$0xff]   ;;  %v2379_v24 = vld [vmem:[%s2983_s0 + $0x210] sm:$0xff]  }
  0x23   : > { %2094 = vmatprep.subr.bf16.mxu1 %v2312_v29  ;;  %v2375_v21 = vld [vmem:[%s2984_s1 + $0x78] ss:$52 sps:$4 sm:$0xff]   ;;  %v2380_v25 = vld [vmem:[%s2984_s1 + $0x80] ss:$52 sps:$4 sm:$0xff]  }
  0x24   : > { %v2377_v23 = vld [vmem:[%s2984_s1 + $0x84] ss:$52 sps:$4 sm:$0xff]   ;;  %v2381_v26 = vld [vmem:[%s2983_s0 + $0x2d0] sm:$0xff]  }
  0x25   : > { %2067 = vmatpush3.bf16.msra.mxu0 %v2313_v30  ;;  %v2382_v27 = vld [vmem:[%s2983_s0 + $0x290] sm:$0xff]   ;;  %v2383_v28 = vld [vmem:[%s2983_s0 + $0x258] sm:$0xff]   ;;  %v2388_v33 = vld [vmem:[%s2983_s0 + $0x220] sm:$0xff]  }
  0x26   : > { %2095 = vmatpush3.bf16.msra.mxu1 %v2314_v31  ;;  %2108 = vmatprep.subr.bf16.mxu0 %v2321_v36  ;;  %v2384_v29 = vld [vmem:[%s2983_s0 + $0x218] sm:$0xff]   ;;  %v2390_v35 = vld [vmem:[%s2983_s0 + $0x2a0] sm:$0xff]   ;;  %v2391_v36 = vld [vmem:[%s2983_s0 + $0x268] sm:$0xff]  }
  0x27   : > { %2136 = vmatprep.subr.bf16.mxu1 %v2323_v38  ;;  %v2385_v30 = vld [vmem:[%s2983_s0 + $0x2d8] sm:$0xff]   ;;  %v2393_v38 = vld [vmem:[%s2983_s0 + $0x2e8] sm:$0xff]  }
  0x28   : > { %1242 = vmatmul.mubr.bf16.vlgmr.msra.gmra.mrb[0].mxu0 %v2315_v32  ;;  %v2386_v31 = vld [vmem:[%s2983_s0 + $0x298] sm:$0xff]   ;;  %v2387_v32 = vld [vmem:[%s2983_s0 + $0x260] sm:$0xff]  }
  0x29   : > { %1291 = vmatmul.mubr.bf16.vlgmr.msra.gmra.mrb[0].mxu1 %v2318_v34  ;;  %2109 = vmatpush3.bf16.msra.mxu0 %v2322_v37  ;;  %v2389_v34 = vld [vmem:[%s2983_s0 + $0x2e0] sm:$0xff]   ;;  %v2392_v37 = vld [vmem:[%s2983_s0 + $0x228] sm:$0xff]  }
  0x2a   : > { %2137 = vmatpush3.bf16.msra.mxu1 %v2324_v39  ;;  %2110 = vmatprep.subr.bf16.mxu0 %v2325_v40  ;;  %v2394_v39 = vld [vmem:[%s2983_s0 + $0x2a8] sm:$0xff]   ;;  %v2395_v40 = vld [vmem:[%s2983_s0 + $0x270] sm:$0xff]  }
  0x2b   : > { %2138 = vmatprep.subr.bf16.mxu1 %v2327_v42  ;;  %1249 = vmatprep.mubr.bf16.mxu0 %v2342_v57  ;;  %v2397_v42 = vld [vmem:[%s2983_s0 + $0x2f0] sm:$0xff]  }
  0x2c   : > { %1298 = vmatprep.mubr.bf16.mxu1 %v2344_v58  ;;  %v2417_v57 = vld [vmem:[%s2984_s1 + $0x30] ss:$52 sps:$4 sm:$0xff]  }
  0x2d   : > { %2111 = vmatpush3.bf16.msra.mxu0 %v2326_v41  ;;  %v2396_v41 = vld [vmem:[%s2983_s0 + $0x230] sm:$0xff]  }
  0x2e   : > { %2139 = vmatpush3.bf16.msra.mxu1 %v2328_v43  ;;  %2112 = vmatprep.subr.bf16.mxu0 %v2329_v44  ;;  %v2398_v43 = vld [vmem:[%s2983_s0 + $0x2b0] sm:$0xff]   ;;  %v2399_v44 = vld [vmem:[%s2983_s0 + $0x278] sm:$0xff]  }
  0x2f   : > { %2140 = vmatprep.subr.bf16.mxu1 %v2331_v46  ;;  %v2401_v46 = vld [vmem:[%s2983_s0 + $0x2f8] sm:$0xff]   ;;  %v2416_v58 = vld [vmem:[%s2984_s1 + $0x90] ss:$52 sps:$4 sm:$0xff]  }
  0x30   : > { %1250 = vmatmul.mubr.bf16.gmra.mrb[4].mxu0 %v2347_v60 }
  0x31   : > { %2113 = vmatpush3.bf16.msra.mxu0 %v2330_v45  ;;  %1299 = vmatmul.mubr.bf16.gmra.mrb[4].mxu1 %v2348_v61  ;;  %v2400_v45 = vld [vmem:[%s2983_s0 + $0x238] sm:$0xff]  }
  0x32   : > { %2141 = vmatpush3.bf16.msra.mxu1 %v2332_v47  ;;  %2114 = vmatprep.subr.bf16.mxu0 %v2333_v48  ;;  %v2402_v47 = vld [vmem:[%s2984_s1 + $0x20] ss:$52 sps:$4 sm:$0xff]   ;;  %v2404_v48 = vld [vmem:[%s2984_s1 + $0x24] ss:$52 sps:$4 sm:$0xff]  }
  0x33   : > { %2142 = vmatprep.subr.bf16.mxu1 %v2335_v50  ;;  %1339 = vmatprep.mubr.bf16.mxu0 %v2360_v8  ;;  %v2406_v50 = vld [vmem:[%s2983_s0 + $0x300] sm:$0xff]  }
  0x34   : > { %1388 = vmatprep.mubr.bf16.mxu1 %v2365_v12 }
  0x35   : > { %2115 = vmatpush3.bf16.msra.mxu0 %v2334_v49  ;;  %v2405_v49 = vld [vmem:[%s2983_s0 + $0x2b8] sm:$0xff]  }
  0x36   : > { %2143 = vmatpush3.bf16.msra.mxu1 %v2336_v51  ;;  %2116 = vmatprep.subr.bf16.mxu0 %v2337_v52  ;;  %v2407_v51 = vld [vmem:[%s2984_s1 + $0x28] ss:$52 sps:$4 sm:$0xff]   ;;  %v2409_v52 = vld [vmem:[%s2984_s1 + $0x2c] ss:$52 sps:$4 sm:$0xff]  }
  0x37   : > { %2144 = vmatprep.subr.bf16.mxu1 %v2339_v54  ;;  %v2413_v54 = vld [vmem:[%s2983_s0 + $0x308] sm:$0xff]  }
  0x39   : > { %2117 = vmatpush3.bf16.msra.mxu0 %v2338_v53  ;;  %v2410_v53 = vld [vmem:[%s2984_s1 + $0x8c] ss:$52 sps:$4 sm:$0xff]  }
  0x3a   : > { %2145 = vmatpush3.bf16.msra.mxu1 %v2340_v55  ;;  %2118 = vmatprep.subr.bf16.mxu0 %v2341_v56  ;;  %v2412_v55 = vld [vmem:[%s2984_s1 + $0x88] ss:$52 sps:$4 sm:$0xff]  }
  0x3b   : > { %2146 = vmatprep.subr.bf16.mxu1 %v2349_v62  ;;  %v2414_v56 = vld [vmem:[%s2984_s1 + $0x94] ss:$52 sps:$4 sm:$0xff]  }
  0x3d   : > { %2119 = vmatpush3.bf16.msra.mxu0 %v2346_v59  ;;  %v2418_v59 = vld [vmem:[%s2984_s1 + $0x98] ss:$52 sps:$4 sm:$0xff]  }
  0x3e   : > { %2147 = vmatpush3.bf16.msra.mxu1 %v2350_v63  ;;  %2120 = vmatprep.subr.bf16.mxu0 %v2351_v0 }
  0x3f   : > { %2148 = vmatprep.subr.bf16.mxu1 %v2353_v2 }
  0x41   : > { %2121 = vmatpush3.bf16.msra.mxu0 %v2352_v1 }
  0x42   : > { %2149 = vmatpush3.bf16.msra.mxu1 %v2354_v3  ;;  %2122 = vmatprep.subr.bf16.mxu0 %v2355_v4 }
  0x43   : > { %2150 = vmatprep.subr.bf16.mxu1 %v2357_v6 }
  0x45   : > { %2123 = vmatpush3.bf16.msra.mxu0 %v2356_v5 }
  0x46   : > { %2151 = vmatpush3.bf16.msra.mxu1 %v2361_v9  ;;  %2164 = vmatprep.subr.bf16.mxu0 %v2362_v10 }
  0x47   : > { %2192 = vmatprep.subr.bf16.mxu1 %v2367_v14 }
  0x48   : > { %1340 = vmatmul.mubr.bf16.vlgmr.msra.gmra.mrb[8].mxu0 %v2358_v7 }
  0x49   : > { %2165 = vmatpush3.bf16.msra.mxu0 %v2366_v13  ;;  %1389 = vmatmul.mubr.bf16.vlgmr.msra.gmra.mrb[8].mxu1 %v2363_v11 }
  0x4a   : > { %2193 = vmatpush3.bf16.msra.mxu1 %v2368_v15  ;;  %2166 = vmatprep.subr.bf16.mxu0 %v2369_v16 }
  0x4b   : > { %2194 = vmatprep.subr.bf16.mxu1 %v2371_v18  ;;  %1347 = vmatprep.mubr.bf16.mxu0 %v2372_v19 }
  0x4c   : > { %1396 = vmatprep.mubr.bf16.mxu1 %v2377_v23 }
  0x4d   : > { %2167 = vmatpush3.bf16.msra.mxu0 %v2370_v17 }
  0x4e   : > { %2195 = vmatpush3.bf16.msra.mxu1 %v2374_v20  ;;  %2168 = vmatprep.subr.bf16.mxu0 %v2376_v22 }
  0x4f   : > { %2196 = vmatprep.subr.bf16.mxu1 %v2381_v26 }
  0x50   : > { %1348 = vmatmul.mubr.bf16.gmra.mrb[12].mxu0 %v2375_v21 }
  0x51   : > { %2169 = vmatpush3.bf16.msra.mxu0 %v2379_v24  ;;  %1397 = vmatmul.mubr.bf16.gmra.mrb[12].mxu1 %v2380_v25 }
  0x52   : > { %2197 = vmatpush3.bf16.msra.mxu1 %v2382_v27  ;;  %2170 = vmatprep.subr.bf16.mxu0 %v2383_v28 }
  0x53   : > { %2198 = vmatprep.subr.bf16.mxu1 %v2385_v30  ;;  %1437 = vmatprep.mubr.bf16.mxu0 %v2404_v48 }
  0x54   : > { %1486 = vmatprep.mubr.bf16.mxu1 %v2409_v52 }
  0x55   : > { %2171 = vmatpush3.bf16.msra.mxu0 %v2384_v29 }
  0x56   : > { %2199 = vmatpush3.bf16.msra.mxu1 %v2386_v31  ;;  %2172 = vmatprep.subr.bf16.mxu0 %v2387_v32 }
  0x57   : > { %2200 = vmatprep.subr.bf16.mxu1 %v2389_v34 }
  0x59   : > { %2173 = vmatpush3.bf16.msra.mxu0 %v2388_v33 }
  0x5a   : > { %2201 = vmatpush3.bf16.msra.mxu1 %v2390_v35  ;;  %2174 = vmatprep.subr.bf16.mxu0 %v2391_v36 }
  0x5b   : > { %2202 = vmatprep.subr.bf16.mxu1 %v2393_v38 }
  0x5d   : > { %2175 = vmatpush3.bf16.msra.mxu0 %v2392_v37 }
  0x5e   : > { %2203 = vmatpush3.bf16.msra.mxu1 %v2394_v39  ;;  %2176 = vmatprep.subr.bf16.mxu0 %v2395_v40 }
  0x5f   : > { %2204 = vmatprep.subr.bf16.mxu1 %v2397_v42 }
  0x61   : > { %2177 = vmatpush3.bf16.msra.mxu0 %v2396_v41 }
  0x62   : > { %2205 = vmatpush3.bf16.msra.mxu1 %v2398_v43  ;;  %2178 = vmatprep.subr.bf16.mxu0 %v2399_v44 }
  0x63   : > { %2206 = vmatprep.subr.bf16.mxu1 %v2401_v46 }
  0x65   : > { %2179 = vmatpush3.bf16.msra.mxu0 %v2400_v45 }
  0x66   : > { %2207 = vmatpush3.bf16.msra.mxu1 %v2405_v49  ;;  %2230 = vmatprep.subr.bf16.mxu0 %v2406_v50 }
  0x68   : > { %1438 = vmatmul.mubr.bf16.vlgmr.msra.gmra.mrb[16].mxu0 %v2402_v47 }
  0x69   : > { %2231 = vmatpush3.bf16.msra.mxu0 %v2406_v50  ;;  %1487 = vmatmul.mubr.bf16.vlgmr.msra.gmra.mrb[16].mxu1 %v2407_v51 }
  0x6a   : > { %1445 = vmatprep.mubr.bf16.mxu0 %v2410_v53  ;;  %2232 = vmatprep.subr.bf16.mxu0 %v2413_v54 }
  0x6b   : > { %1494 = vmatprep.mubr.bf16.mxu1 %v2414_v56 }
  0x6d   : > { %2233 = vmatpush3.bf16.msra.mxu0 %v2413_v54 }
  0x70   : > { %1446 = vmatmul.mubr.bf16.gmra.mrb[20].mxu0 %v2412_v55 }
  0x71   : > { %2234 = vmatprep.mubr.msk.bf16.mxu0 %vm1202_vm0, %v2417_v57  ;;  %1495 = vmatmul.mubr.bf16.gmra.mrb[20].mxu1 %v2416_v58 }
  0x78   : > { %2235 = vmatmul.mubr.msk.bf16.vlgmr.msra.gmra.mrb[24].mxu0 %vm1202_vm0, %v2418_v59 }
  0xfb   : > { %v2068_v60 = vpop.f32.mrb[0].mxu0 }
  0xfc   : > { %v2096_v61 = vpop.f32.mrb[0].mxu1  ;;  %v2069_v62 = vpop.f32.mrb[1].mxu0 }
  0xfd   : > { %v2070_v63 = vadd.f32 %v2069_v62, %v2068_v60  ;;  %v2097_v0 = vpop.f32.mrb[1].mxu1  ;;  %v2071_v1 = vpop.f32.mrb[2].mxu0 }
  0xfe   : > { %v2098_v2 = vadd.f32 %v2097_v0, %v2096_v61  ;;  %v2099_v3 = vpop.f32.mrb[2].mxu1  ;;  %v2072_v4 = vpop.f32.mrb[3].mxu0 }
  0xff   : > { %v2073_v5 = vadd.f32 %v2072_v4, %v2071_v1  ;;  %v2100_v6 = vpop.f32.mrb[3].mxu1 }
 0x100   : > { %v1293_v7 = vadd.f32 %v2098_v2, %v2070_v63  ;;  %v2101_v8 = vadd.f32 %v2100_v6, %v2099_v3 }
 0x102   : > { %v1296_v9 = vadd.f32 %v2101_v8, %v2073_v5 }
 0x103   : > { %v2074_v10 = vpop.f32.mrb[4].mxu0 }
 0x104   : > { %v2102_v11 = vpop.f32.mrb[4].mxu1  ;;  %v2075_v12 = vpop.f32.mrb[5].mxu0 }
 0x105   : > { %v2103_v13 = vpop.f32.mrb[5].mxu1  ;;  %v2076_v14 = vadd.f32 %v2075_v12, %v2074_v10  ;;  %v2077_v16 = vpop.f32.mrb[6].mxu0 }
 0x106   : > { %v2104_v15 = vadd.f32 %v2103_v13, %v2102_v11  ;;  %v2105_v17 = vpop.f32.mrb[6].mxu1  ;;  %v2078_v18 = vpop.f32.mrb[7].mxu0 }
 0x107   : > { %v2106_v19 = vpop.f32.mrb[7].mxu1  ;;  %v2079_v21 = vadd.f32 %v2078_v18, %v2077_v16 }
 0x108   : > { %v1301_v20 = vadd.f32 %v2104_v15, %v2076_v14  ;;  %v2107_v22 = vadd.f32 %v2106_v19, %v2105_v17 }
 0x10a   : > { %v1304_v23 = vadd.f32 %v2107_v22, %v2079_v21 }
 0x11b   : > { %v2124_v24 = vpop.f32.mrb[8].mxu0 }
 0x11c   : > { %v2125_v25 = vpop.f32.mrb[9].mxu0  ;;  %v2152_v28 = vpop.f32.mrb[8].mxu1 }
 0x11d   : > { %v2126_v26 = vadd.f32 %v2125_v25, %v2124_v24  ;;  %v2127_v27 = vpop.f32.mrb[10].mxu0  ;;  %v2153_v32 = vpop.f32.mrb[9].mxu1 }
 0x11e   : > { %v2128_v29 = vpop.f32.mrb[11].mxu0  ;;  %v2154_v33 = vadd.f32 %v2153_v32, %v2152_v28  ;;  %v2155_v34 = vpop.f32.mrb[10].mxu1  ;;  %v2453_v32 = vmov (%p1552_p4), 0.0  }
 0x11f   : > { %v1342_v30 = vadd.f32 %v2126_v26, %v1293_v7  ;;  %v2129_v31 = vadd.f32 %v2128_v29, %v2127_v27  ;;  %v2156_v36 = vpop.f32.mrb[11].mxu1  ;;  %1559 = vst.msk [vmem:[#allocation2] sm:$0xff] (%p1552_p4), %vm1558_vm1, %v2453_v32  ;;  %1560 = vst.msk [vmem:[#allocation2 + $0x8] sm:$0xff] (%p1552_p4), %vm1558_vm1, %v2453_v32 }
 0x120   : > { %v2157_v38 = vadd.f32 %v2156_v36, %v2155_v34  ;;  %1561 = vst.msk [vmem:[#allocation2 + $0x10] sm:$0xff] (%p1552_p4), %vm1558_vm1, %v2453_v32  ;;  %1562 = vst.msk [vmem:[#allocation2 + $0x18] sm:$0xff] (%p1552_p4), %vm1558_vm1, %v2453_v32 }
 0x121   : > { %v1345_v35 = vadd.f32 %v2129_v31, %v1296_v9  ;;  %v1391_v37 = vadd.f32 %v2154_v33, %v1342_v30  ;;  %1563 = vst.msk [vmem:[#allocation3] sm:$0xff] (%p1552_p4), %vm1558_vm1, %v2453_v32  ;;  %1564 = vst.msk [vmem:[#allocation3 + $0x8] sm:$0xff] (%p1552_p4), %vm1558_vm1, %v2453_v32 }
 0x122   : > { %1565 = vst.msk [vmem:[#allocation3 + $0x10] sm:$0xff] (%p1552_p4), %vm1558_vm1, %v2453_v32  ;;  %1566 = vst.msk [vmem:[#allocation3 + $0x18] sm:$0xff] (%p1552_p4), %vm1558_vm1, %v2453_v32 }
 0x123   : > { %v1394_v39 = vadd.f32 %v2157_v38, %v1345_v35  ;;  %v2130_v40 = vpop.f32.mrb[12].mxu0 }
 0x124   : > { %v2131_v41 = vpop.f32.mrb[13].mxu0  ;;  %v2158_v44 = vpop.f32.mrb[12].mxu1 }
 0x125   : > { %v2132_v42 = vadd.f32 %v2131_v41, %v2130_v40  ;;  %v2133_v43 = vpop.f32.mrb[14].mxu0  ;;  %v2159_v48 = vpop.f32.mrb[13].mxu1 }
 0x126   : > { %v2134_v45 = vpop.f32.mrb[15].mxu0  ;;  %v2160_v49 = vadd.f32 %v2159_v48, %v2158_v44  ;;  %v2161_v50 = vpop.f32.mrb[14].mxu1 }
 0x127   : > { %v1350_v46 = vadd.f32 %v2132_v42, %v1301_v20  ;;  %v2135_v47 = vadd.f32 %v2134_v45, %v2133_v43  ;;  %v2162_v52 = vpop.f32.mrb[15].mxu1 }
 0x128   : > { %v2163_v54 = vadd.f32 %v2162_v52, %v2161_v50 }
 0x129   : > { %v1353_v51 = vadd.f32 %v2135_v47, %v1304_v23  ;;  %v1399_v53 = vadd.f32 %v2160_v49, %v1350_v46 }
 0x12b   : > { %v1402_v55 = vadd.f32 %v2163_v54, %v1353_v51 }
 0x13b   : > { %v2180_v56 = vpop.f32.mrb[16].mxu0 }
 0x13c   : > { %v2181_v57 = vpop.f32.mrb[17].mxu0  ;;  %v2208_v62 = vpop.f32.mrb[16].mxu1 }
 0x13d   : > { %v2182_v58 = vadd.f32 %v2181_v57, %v2180_v56  ;;  %v2183_v59 = vpop.f32.mrb[18].mxu0  ;;  %v2209_v0 = vpop.f32.mrb[17].mxu1 }
 0x13e   : > { %v2184_v60 = vpop.f32.mrb[19].mxu0  ;;  %v2210_v2 = vadd.f32 %v2209_v0, %v2208_v62  ;;  %v2211_v3 = vpop.f32.mrb[18].mxu1 }
 0x13f   : > { %v1440_v61 = vadd.f32 %v2182_v58, %v1391_v37  ;;  %v2185_v63 = vadd.f32 %v2184_v60, %v2183_v59  ;;  %v2212_v4 = vpop.f32.mrb[19].mxu1 }
 0x140   : > { %v2213_v5 = vadd.f32 %v2212_v4, %v2211_v3 }
 0x141   : > { %v1443_v1 = vadd.f32 %v2185_v63, %v1394_v39  ;;  %v1489_v7 = vadd.f32 %v2210_v2, %v1440_v61 }
 0x143   : > { %v2186_v6 = vpop.f32.mrb[20].mxu0  ;;  %v1492_v11 = vadd.f32 %v2213_v5, %v1443_v1 }
 0x144   : > { %v2187_v8 = vpop.f32.mrb[21].mxu0  ;;  %v2214_v14 = vpop.f32.mrb[20].mxu1 }
 0x145   : > { %v2188_v9 = vadd.f32 %v2187_v8, %v2186_v6  ;;  %v2189_v10 = vpop.f32.mrb[22].mxu0  ;;  %v2215_v16 = vpop.f32.mrb[21].mxu1 }
 0x146   : > { %v2190_v12 = vpop.f32.mrb[23].mxu0  ;;  %v2216_v18 = vadd.f32 %v2215_v16, %v2214_v14  ;;  %v2217_v19 = vpop.f32.mrb[22].mxu1 }
 0x147   : > { %v1448_v13 = vadd.f32 %v2188_v9, %v1399_v53  ;;  %v2191_v15 = vadd.f32 %v2190_v12, %v2189_v10  ;;  %v2218_v20 = vpop.f32.mrb[23].mxu1 }
 0x148   : > { %v2219_v21 = vadd.f32 %v2218_v20, %v2217_v19 }
 0x149   : > { %v1451_v17 = vadd.f32 %v2191_v15, %v1402_v55  ;;  %v1497_v22 = vadd.f32 %v2216_v18, %v1448_v13  ;;  %1557 = sbr.rel (!%p1552_p4) target bundleno = 336 (0x150), region = 48 }
 0x14b   : > { %v2236_v23 = vpop.f32.mrb[24].mxu0  ;;  %v1500_v27 = vadd.f32 %v2219_v21, %v1451_v17 }
 0x14c   : > { %v1537_v24 = vpop.f32.mrb[25].mxu0  ;;  %v2885_v25 = vadd.f32 %v2236_v23, %v1497_v22 }
 0x14d   : > { %v2887_v26 = vadd.f32 %v1537_v24, %v1489_v7  ;;  %v2237_v28 = vpop.f32.mrb[26].mxu0 }
 0x14e   : > { %v1540_v29 = vpop.f32.mrb[27].mxu0  ;;  %v2889_v30 = vadd.f32 %v2237_v28, %v1500_v27 }
 0x14f   : > { %v2891_v31 = vadd.f32 %v1540_v29, %v1492_v11 }
 0x150 PF: > { %p2042_p5 = scmp.ne.s32.totalorder %s2443_s21, 0 }
 0x151   : > { %1578 = vadd.xlane.f32.xlu1 (!%p2042_p5), %v2885_v25  ;;  %1574 = vadd.xlane.f32.xlu0 (!%p2042_p5), %v2887_v26  ;;  %v1596_v33 = vmul.f32 (!%p2042_p5), %v2891_v31, %v2891_v31  ;;  %v1595_v34 = vmul.f32 (!%p2042_p5), %v2887_v26, %v2887_v26  ;;  %v1598_v35 = vmul.f32 (!%p2042_p5), %v2889_v30, %v2889_v30  ;;  %v1572_v37 = vld [vmem:[#allocation2 + $0x10] sm:$0xff] (!%p2042_p5)  ;;  %v1570_v38 = vld [vmem:[#allocation2] sm:$0xff] (!%p2042_p5)  ;;  %vm1586_vm2 = vcmask (!%p2042_p5), 7168   ;;  %v1573_v43 = vld [vmem:[#allocation2 + $0x18] sm:$0xff] (!%p2042_p5) }
 0x152   : > { %1569 = sbr.rel (%p2042_p5) target bundleno = 494 (0x1ee), region = 52  ;;  %v1597_v36 = vmul.f32 (!%p2042_p5), %v2885_v25, %v2885_v25  ;;  %v1571_v44 = vld [vmem:[#allocation2 + $0x8] sm:$0xff] (!%p2042_p5)  ;;  %v1591_v50 = vld [vmem:[#allocation3] sm:$0xff] (!%p2042_p5)  ;;  %v1594_v55 = vld [vmem:[#allocation3 + $0x18] sm:$0xff] (!%p2042_p5) }
 0x153   : > { %v1592_v49 = vld [vmem:[#allocation3 + $0x8] sm:$0xff] (!%p2042_p5)  ;;  %v1593_v56 = vld [vmem:[#allocation3 + $0x10] sm:$0xff] (!%p2042_p5) }
 0x155   : > { %1580 = vadd.xlane.f32.xlu1 (!%p2042_p5), %v2889_v30  ;;  %1576 = vadd.xlane.f32.xlu0 (!%p2042_p5), %v2891_v31 }
 0x159   : > { %1601 = vadd.xlane.f32.xlu1 %v1596_v33  ;;  %1599 = vadd.xlane.f32.xlu0 %v1595_v34 }
 0x15d   : > { %1605 = vadd.xlane.f32.xlu1 %v1598_v35  ;;  %1603 = vadd.xlane.f32.xlu0 %v1597_v36 }
 0x1de   : > { %v1579_v39 = vpop.xlane.xlu1 %1578  ;;  %v1575_v40 = vpop.xlane.xlu0 %1574 }
 0x1df   : > { %v1584_v41 = vadd.f32 %v1579_v39, %v1572_v37  ;;  %v1582_v42 = vadd.f32 %v1575_v40, %v1570_v38 }
 0x1e1   : > { %1589 = vst.msk [vmem:[#allocation2 + $0x10] sm:$0xff] %vm1586_vm2, %v1584_v41  ;;  %1587 = vst.msk [vmem:[#allocation2] sm:$0xff] %vm1586_vm2, %v1582_v42 }
 0x1e2   : > { %v1581_v45 = vpop.xlane.xlu1 %1580  ;;  %v1577_v46 = vpop.xlane.xlu0 %1576 }
 0x1e3   : > { %v1585_v47 = vadd.f32 %v1581_v45, %v1573_v43  ;;  %v1583_v48 = vadd.f32 %v1577_v46, %v1571_v44 }
 0x1e5   : > { %1590 = vst.msk [vmem:[#allocation2 + $0x18] sm:$0xff] %vm1586_vm2, %v1585_v47  ;;  %1588 = vst.msk [vmem:[#allocation2 + $0x8] sm:$0xff] %vm1586_vm2, %v1583_v48 }
 0x1e6   : > { %v1602_v51 = vpop.xlane.xlu1 %1601  ;;  %v1600_v52 = vpop.xlane.xlu0 %1599 }
 0x1e7   : > { %v1608_v53 = vadd.f32 %v1602_v51, %v1592_v49  ;;  %v1607_v54 = vadd.f32 %v1600_v52, %v1591_v50 }
 0x1e9   : > { %1612 = vst.msk [vmem:[#allocation3 + $0x8] sm:$0xff] %vm1586_vm2, %v1608_v53  ;;  %1611 = vst.msk [vmem:[#allocation3] sm:$0xff] %vm1586_vm2, %v1607_v54 }
 0x1ea   : > { %v1606_v57 = vpop.xlane.xlu1 %1605  ;;  %v1604_v58 = vpop.xlane.xlu0 %1603 }
 0x1eb   : > { %v1610_v59 = vadd.f32 %v1606_v57, %v1594_v55  ;;  %v1609_v60 = vadd.f32 %v1604_v58, %v1593_v56 }
 0x1ed   : > { %1614 = vst.msk [vmem:[#allocation3 + $0x18] sm:$0xff] %vm1586_vm2, %v1610_v59  ;;  %1613 = vst.msk [vmem:[#allocation3 + $0x10] sm:$0xff] %vm1586_vm2, %v1609_v60 }
 0x1ee PF: > { %p1615_p6 = scmp.eq.s32.totalorder %s2443_s21, 1 }
 0x1ef   : > { %v1620_v61 = vld [vmem:[#allocation2] sm:$0xff] (%p1615_p6)  ;;  %v1621_v1 = vld [vmem:[#allocation2 + $0x8] sm:$0xff] (%p1615_p6)  ;;  %v1622_v5 = vld [vmem:[#allocation2 + $0x10] sm:$0xff] (%p1615_p6)  ;;  %vm1660_vm3 = vcmask (%p1615_p6), 7168  }
 0x1f0   : > { %1619 = sbr.rel (!%p1615_p6) target bundleno = 526 (0x20e), region = 56  ;;  %v1628_v62 = vld [vmem:[#allocation3] sm:$0xff] (%p1615_p6)  ;;  %v1624_v63 = vmul.f32 (%p1615_p6), 0.5, %v1620_v61  ;;  %v1629_v2 = vld [vmem:[#allocation3 + $0x8] sm:$0xff] (%p1615_p6)  ;;  %v1625_v3 = vmul.f32 (%p1615_p6), 0.5, %v1621_v1  ;;  %v1626_v8 = vmul.f32 (%p1615_p6), 0.5, %v1622_v5 }
 0x1f1   : > { %v1632_v0 = vmul.f32 (%p1615_p6), 0.5, %v1628_v62  ;;  %v1633_v4 = vmul.f32 (%p1615_p6), 0.5, %v1629_v2  ;;  %v1623_v10 = vld [vmem:[#allocation2 + $0x18] sm:$0xff] (%p1615_p6)  ;;  %v1644_v27 = vld [vmem:[%s2985_s2] sm:$0xff] (%p1615_p6)  ;;  %v1645_v28 = vld [vmem:[%s2985_s2 + $0x8] sm:$0xff] (%p1615_p6) }
 0x1f2   : > { %v1636_v7 = vmul.f32 (%p1615_p6), %v1624_v63, %v1624_v63  ;;  %v1637_v12 = vmul.f32 (%p1615_p6), %v1625_v3, %v1625_v3  ;;  %v1627_v13 = vmul.f32 (%p1615_p6), 0.5, %v1623_v10  ;;  %v1638_v16 = vmul.f32 (%p1615_p6), %v1626_v8, %v1626_v8  ;;  %v1646_v32 = vld [vmem:[%s2985_s2 + $0x10] sm:$0xff] (%p1615_p6)  ;;  %v1647_v35 = vld [vmem:[%s2985_s2 + $0x18] sm:$0xff] (%p1615_p6)  ;;  %v1665_v38 = vld [vmem:[%s2986_s3] sm:$0xff] (%p1615_p6) }
 0x1f3   : > { %v1666_v42 = vld [vmem:[%s2986_s3 + $0x8] sm:$0xff] (%p1615_p6)  ;;  %v1667_v45 = vld [vmem:[%s2986_s3 + $0x10] sm:$0xff] (%p1615_p6)  ;;  %v1668_v48 = vld [vmem:[%s2986_s3 + $0x18] sm:$0xff] (%p1615_p6) }
 0x1f4   : > { %v1630_v6 = vld [vmem:[#allocation3 + $0x10] sm:$0xff] (%p1615_p6)  ;;  %v1631_v11 = vld [vmem:[#allocation3 + $0x18] sm:$0xff] (%p1615_p6)  ;;  %v1640_v15 = vsub.f32 (%p1615_p6), %v1632_v0, %v1636_v7  ;;  %v1641_v17 = vsub.f32 (%p1615_p6), %v1633_v4, %v1637_v12  ;;  %v1639_v18 = vmul.f32 (%p1615_p6), %v1627_v13, %v1627_v13 }
 0x1f5   : > { %v1634_v9 = vmul.f32 (%p1615_p6), 0.5, %v1630_v6  ;;  %v1635_v14 = vmul.f32 (%p1615_p6), 0.5, %v1631_v11 }
 0x1f6   : > { %v1648_v19 = vadd.f32 (%p1615_p6), 1e-05, %v1640_v15  ;;  %v1649_v21 = vadd.f32 (%p1615_p6), 1e-05, %v1641_v17 }
 0x1f7   : > { %v1642_v20 = vsub.f32 %v1634_v9, %v1638_v16  ;;  %v1643_v22 = vsub.f32 %v1635_v14, %v1639_v18 }
 0x1f8   : > { %2419 = vrsqrt.f32 %v1648_v19 }
 0x1f9   : > { %v1650_v23 = vadd.f32 1e-05, %v1642_v20  ;;  %2421 = vrsqrt.f32 %v1649_v21  ;;  %v1651_v24 = vadd.f32 1e-05, %v1643_v22 }
 0x1fb   : > { %2423 = vrsqrt.f32 %v1650_v23 }
 0x1fc   : > { %2425 = vrsqrt.f32 %v1651_v24 }
 0x202   : > { %v2420_v29 = vpop.eup %2419 }
 0x203   : > { %v2422_v33 = vpop.eup %2421  ;;  %v1656_v34 = vmul.f32 %v2420_v29, %v1644_v27 }
 0x204   : > { %v1657_v37 = vmul.f32 %v2422_v33, %v1645_v28 }
 0x205   : > { %v2424_v36 = vpop.eup %2423  ;;  %1661 = vst.msk [vmem:[#allocation4] sm:$0xff] %vm1660_vm3, %v1656_v34  ;;  %v1669_v41 = vmul.f32 %v1656_v34, %v1624_v63 }
 0x206   : > { %v2426_v39 = vpop.eup %2425  ;;  %v1658_v40 = vmul.f32 %v2424_v36, %v1646_v32  ;;  %1662 = vst.msk [vmem:[#allocation4 + $0x8] sm:$0xff] %vm1660_vm3, %v1657_v37  ;;  %v1670_v44 = vmul.f32 %v1657_v37, %v1625_v3 }
 0x207   : > { %v1659_v43 = vmul.f32 %v2426_v39, %v1647_v35  ;;  %v1673_v46 = vsub.f32 %v1665_v38, %v1669_v41 }
 0x208   : > { %1663 = vst.msk [vmem:[#allocation4 + $0x10] sm:$0xff] %vm1660_vm3, %v1658_v40  ;;  %v1671_v47 = vmul.f32 %v1658_v40, %v1626_v8  ;;  %v1674_v49 = vsub.f32 %v1666_v42, %v1670_v44 }
 0x209   : > { %1664 = vst.msk [vmem:[#allocation4 + $0x18] sm:$0xff] %vm1660_vm3, %v1659_v43  ;;  %v1672_v50 = vmul.f32 %v1659_v43, %v1627_v13  ;;  %1677 = vst.msk [vmem:[#allocation5] sm:$0xff] %vm1660_vm3, %v1673_v46 }
 0x20a   : > { %v1675_v51 = vsub.f32 %v1667_v45, %v1671_v47  ;;  %1678 = vst.msk [vmem:[#allocation5 + $0x8] sm:$0xff] %vm1660_vm3, %v1674_v49 }
 0x20b   : > { %v1676_v52 = vsub.f32 %v1668_v48, %v1672_v50 }
 0x20c   : > { %1679 = vst.msk [vmem:[#allocation5 + $0x10] sm:$0xff] %vm1660_vm3, %v1675_v51 }
 0x20d   : > { %1680 = vst.msk [vmem:[#allocation5 + $0x18] sm:$0xff] %vm1660_vm3, %v1676_v52 }
 0x20e PF: > { %p2044_p7 = scmp.ne.s32.totalorder %s2443_s21, 1 }
 0x20f   : > { %v1684_v54 = vld [vmem:[#allocation4] sm:$0xff] (!%p2044_p7)  ;;  %v2454_v55 = vmov (!%p2044_p7), 0   ;;  %v1685_v57 = vld [vmem:[#allocation4 + $0x8] sm:$0xff] (!%p2044_p7)  ;;  %v1686_v59 = vld [vmem:[#allocation4 + $0x10] sm:$0xff] (!%p2044_p7) }
 0x210   : > { %1683 = sbr.rel (%p2044_p7) target bundleno = 896 (0x380), region = 60  ;;  %v1712_v53 = vld [vmem:[#allocation5] sm:$0xff] (!%p2044_p7)  ;;  %2428 = vset.pattern.permute.xlu1 (!%p2044_p7), %v2454_v55  ;;  %2427 = vset.pattern.permute.xlu0 (!%p2044_p7), %v2454_v55  ;;  %v1687_v58 = vld [vmem:[#allocation4 + $0x18] sm:$0xff] (!%p2044_p7)  ;;  %v1755_v62 = vld [vmem:[%s2988_s5 + $0x8] sm:$0xff] (!%p2044_p7) }
 0x211   : > { %1718 = vperm.xlu1 (!%p2044_p7), %2428, %v1712_v53   ;;  %1690 = vperm.xlu0 (!%p2044_p7), %2427, %v1684_v54   ;;  %v1713_v56 = vld [vmem:[#allocation5 + $0x8] sm:$0xff] (!%p2044_p7)  ;;  %v1754_v63 = vld [vmem:[%s2988_s5] sm:$0xff] (!%p2044_p7) }
 0x212   : > { %v1752_v0 = vld [vmem:[%s2987_s4] sm:$0xff] (!%p2044_p7) }
 0x213   : > { %v1714_v61 = vld [vmem:[#allocation5 + $0x10] sm:$0xff] (!%p2044_p7)  ;;  %2246 = vmatprep.mubr.msk.f32.mxu0 (!%p2044_p7), %vm1202_vm0, %v1752_v0 }
 0x214   : > { %v1715_v60 = vld [vmem:[#allocation5 + $0x18] sm:$0xff] (!%p2044_p7) }
 0x215   : > { %1723 = vperm.xlu1 (!%p2044_p7), %2428, %v1713_v56   ;;  %1695 = vperm.xlu0 (!%p2044_p7), %2427, %v1685_v57  }
 0x219   : > { %1705 = vperm.xlu1 %2428, %v1687_v58   ;;  %1700 = vperm.xlu0 %2427, %v1686_v59  }
 0x21d   : > { %1733 = vperm.xlu1 %2428, %v1715_v60   ;;  %1728 = vperm.xlu0 %2427, %v1714_v61  }
 0x221   : > { %1763 = vperm.xlu1 %2428, %v1755_v62   ;;  %1758 = vperm.xlu0 %2427, %v1754_v63  }
 0x290   : > { %v1719_v1 = vpop.permute.xlu1 %1718  ;;  %v1691_v2 = vpop.permute.xlu0 %1690 }
 0x291   : > { %v1708_v3 = vmul.f32 %v1691_v2, %v2887_v26 }
 0x293   : > { %v1736_v4 = vadd.f32 %v1719_v1, %v1708_v3 }
 0x294   : > { %v1724_v5 = vpop.permute.xlu1 %1723  ;;  %v1696_v6 = vpop.permute.xlu0 %1695 }
 0x295   : > { %v1709_v7 = vmul.f32 %v1696_v6, %v2891_v31  ;;  %v1744_v9 = vmul.f32 0.2, %v1736_v4  ;;  %vm1740_vm4 = vcmp.gt.f32.partialorder %v1736_v4, 0.0 }
 0x297   : > { %v1737_v8 = vadd.f32 %v1724_v5, %v1709_v7  ;;  %v1748_v15 = vsel %vm1740_vm4, %v1736_v4, %v1744_v9 }
 0x298   : > { %v1706_v10 = vpop.permute.xlu1 %1705  ;;  %v1701_v11 = vpop.permute.xlu0 %1700 }
 0x299   : > { %vm1741_vm5 = vcmp.gt.f32.partialorder %v1737_v8, 0.0  ;;  %v1745_v12 = vmul.f32 0.2, %v1737_v8  ;;  %v1711_v13 = vmul.f32 %v1706_v10, %v2889_v30  ;;  %v1710_v14 = vmul.f32 %v1701_v11, %v2885_v25  ;;  %v1753_v25 = vld [vmem:[%s2987_s4 + $0x8] sm:$0xff] }
 0x29b   : > { %v1749_v16 = vsel %vm1741_vm5, %v1737_v8, %v1745_v12 }
 0x29c   : > { %v1734_v17 = vpop.permute.xlu1 %1733  ;;  %v1729_v26 = vpop.permute.xlu0 %1728  ;;  %v2249_v18 = vpack.c.bf16 %v1749_v16, %v1748_v15 }
 0x29d   : > { %v1739_v19 = vadd.f32 %v1734_v17, %v1711_v13  ;;  %v1738_v20 = vadd.f32 %v1729_v26, %v1710_v14 }
 0x29e   : > { %2250 = vmatprep.subr.bf16.mxu0 %v2249_v18 }
 0x29f   : > { %vm1743_vm6 = vcmp.gt.f32.partialorder %v1739_v19, 0.0  ;;  %v1747_v31 = vmul.f32 0.2, %v1739_v19  ;;  %vm1742_vm7 = vcmp.gt.f32.partialorder %v1738_v20, 0.0  ;;  %v1746_v21 = vmul.f32 0.2, %v1738_v20  ;;  %2252 = vmatpush3.bf16.msra.mxu0 %v2249_v18 }
 0x2a0   : > { %v1764_v30 = vpop.permute.xlu1 %1763  ;;  %v1759_v28 = vpop.permute.xlu0 %1758 }
 0x2a1   : > { %v1750_v22 = vsel %vm1742_vm7, %v1738_v20, %v1746_v21  ;;  %v1751_v23 = vsel %vm1743_vm6, %v1739_v19, %v1747_v31 }
 0x2a2   : > { %v2253_v24 = vpack.c.bf16 %v1751_v23, %v1750_v22 }
 0x2a4   : > { %2254 = vmatprep.subr.bf16.mxu0 %v2253_v24 }
 0x2a5   : > { %2256 = vmatpush3.bf16.msra.mxu0 %v2253_v24 }
 0x2a8   : > { %2247 = vmatmul.mubr.msk.f32.vlgmr.msra.gmra.mrb[0].mxu0 %vm1202_vm0, %v1753_v25 }
 0x37b   : > { %v2248_v27 = vpop.f32.mrb[0].mxu0 }
 0x37c   : > { %v1844_v29 = vadd.f32 %v2248_v27, %v1764_v30  ;;  %v1838_v32 = vpop.f32.mrb[1].mxu0 }
 0x37d   : > { %v1839_v33 = vadd.f32 %v1838_v32, %v1759_v28 }
 0x37e   : > { %1848 = vst [vmem:[%s2989_s6 + $0x8] sm:$0xff] %v1844_v29 }
 0x37f   : > { %1847 = vst [vmem:[%s2989_s6] sm:$0xff] %v1839_v33 }
 0x380 PF: > { %s16_s23 = sadd.s32 1, %s2451_s23   ;;  %s2990_s21 = smov %s2447_s22 }
 0x381   : > { %p13_p8 = scmp.ge.s32.totalorder %s16_s23, 4   ;;  %s2991_s22 = smov %s2993_s24 }
 0x383   :  { %15 = sbr.rel (!%p13_p8) target bundleno = 2 (0x2), region = 90 }

</bundles_post_ra>
